<compile_context>
chip_gen: v7x
topology: tpu7x:2x2x1
jax: 0.10.0
libtpu: 0.0.40
codegen_flags: <defaults>
</compile_context>

<pallas_src>
import functools
import math

import jax
import jax.numpy as jnp
from jax import lax
from jax.experimental import pallas as pl
from jax.experimental.pallas import tpu as pltpu

# Raise scoped VMEM (v5e default 16 MiB, v6e/v7x 32 MiB) but stay below v7x's
# 64 MiB physical VMEM.
_VMEM_LIMIT = 48 * 1024 * 1024


def _cparams(dimension_semantics):
    return pltpu.CompilerParams(dimension_semantics=dimension_semantics,
                                vmem_limit_bytes=_VMEM_LIMIT)


def _pick_tile(dim, candidates):
    """Largest candidate tile that evenly divides `dim`; falls back to full dim."""
    for c in candidates:
        if c <= dim and dim % c == 0:
            return c
    return dim


# ----------------------------- in-kernel math ------------------------------

def _erf(x):
    # Abramowitz & Stegun 7.1.26 polynomial approximation of erf
    # (|error| < 1.5e-7), so the exact (erf-based) GELU torch uses by default
    # stays inside the kernel with ops that lower cleanly on Mosaic.
    p = 0.3275911
    a1, a2, a3, a4, a5 = (0.254829592, -0.284496736, 1.421413741,
                          -1.453152027, 1.061405429)
    s = jnp.where(x >= 0.0, 1.0, -1.0)
    z = jnp.abs(x)
    t = 1.0 / (1.0 + p * z)
    poly = ((((a5 * t + a4) * t + a3) * t + a2) * t + a1) * t
    return s * (1.0 - poly * jnp.exp(-z * z))


def _gelu(x):
    # torch F.gelu default ("exact" erf formulation)
    return 0.5 * x * (1.0 + _erf(x * (1.0 / math.sqrt(2.0))))


def _ln_rows(x_f32, gamma, beta, eps):
    mu = jnp.mean(x_f32, axis=-1, keepdims=True)
    xc = x_f32 - mu
    var = jnp.mean(xc * xc, axis=-1, keepdims=True)
    return (xc * lax.rsqrt(var + eps)) * gamma + beta


# --------------------------- tiled linear kernel ----------------------------

def _linear_kernel(*refs, activation, has_residual):
    if has_residual:
        x_ref, w_ref, b_ref, r_ref, o_ref, acc_ref = refs
    else:
        x_ref, w_ref, b_ref, o_ref, acc_ref = refs
        r_ref = None
    k = pl.program_id(2)

    @pl.when(k == 0)
    def _():
        acc_ref[...] = jnp.zeros_like(acc_ref)

    acc_ref[...] += jnp.dot(x_ref[...].astype(jnp.bfloat16), w_ref[...],
                            preferred_element_type=jnp.float32)

    @pl.when(k == pl.num_programs(2) - 1)
    def _():
        y = acc_ref[...] + b_ref[...].astype(jnp.float32)
        if activation == "gelu":
            y = _gelu(y)
        if has_residual:
            y = y + r_ref[...].astype(jnp.float32)
        o_ref[...] = y.astype(o_ref.dtype)


def linear(x2d, w, b, residual=None, activation=None):
    """y = x2d @ w + b (+ optional fused GELU and fused residual add).

    x2d: (M, K) f32, w: (K, N) bf16, b: (N,) f32, residual: (M, N) f32 or None.
    Tiled (M, N, K) grid with an f32 accumulator and bf16 MXU inputs.
    """
    m, k = x2d.shape
    k2, n = w.shape
    assert k == k2
    tm = _pick_tile(m, (512, 256, 128, 64, 32, 16, 8))
    tn = _pick_tile(n, (512, 256, 128))
    tk = _pick_tile(k, (512, 256, 128))

    in_specs = [
        pl.BlockSpec((tm, tk), lambda i, j, kk: (i, kk)),
        pl.BlockSpec((tk, tn), lambda i, j, kk: (kk, j)),
        pl.BlockSpec((1, tn), lambda i, j, kk: (0, j)),
    ]
    args = [x2d, w, b.reshape(1, n)]
    if residual is not None:
        in_specs.append(pl.BlockSpec((tm, tn), lambda i, j, kk: (i, j)))
        args.append(residual)

    return pl.pallas_call(
        functools.partial(_linear_kernel, activation=activation,
                          has_residual=residual is not None),
        out_shape=jax.ShapeDtypeStruct((m, n), jnp.float32),
        grid=(m // tm, n // tn, k // tk),
        in_specs=in_specs,
        out_specs=pl.BlockSpec((tm, tn), lambda i, j, kk: (i, j)),
        scratch_shapes=[pltpu.VMEM((tm, tn), jnp.float32)],
        compiler_params=_cparams(("parallel", "parallel", "arbitrary")),
    )(*args)


# ------------------------------ layernorm kernel ----------------------------

def _layernorm_kernel(x_ref, g_ref, b_ref, o_ref, *, eps):
    xn = _ln_rows(x_ref[...].astype(jnp.float32), g_ref[...], b_ref[...], eps)
    o_ref[...] = xn.astype(o_ref.dtype)


def layernorm(x2d, gamma, beta, eps=1e-5):
    m, n = x2d.shape
    tm = _pick_tile(m, (512, 256, 128, 64, 32, 16, 8))
    return pl.pallas_call(
        functools.partial(_layernorm_kernel, eps=eps),
        out_shape=jax.ShapeDtypeStruct((m, n), jnp.float32),
        grid=(m // tm,),
        in_specs=[
            pl.BlockSpec((tm, n), lambda i: (i, 0)),
            pl.BlockSpec((1, n), lambda i: (0, 0)),
            pl.BlockSpec((1, n), lambda i: (0, 0)),
        ],
        out_specs=pl.BlockSpec((tm, n), lambda i: (i, 0)),
        compiler_params=_cparams(("parallel",)),
    )(x2d, gamma.reshape(1, n), beta.reshape(1, n))


# ----------------------- fused LayerNorm + linear kernel ---------------------

def _ln_linear_kernel(x_ref, g_ref, b_ref, w_ref, bias_ref, o_ref,
                      *, eps, activation):
    xn = _ln_rows(x_ref[...].astype(jnp.float32), g_ref[...], b_ref[...], eps)
    y = jnp.dot(xn.astype(jnp.bfloat16), w_ref[...],
                preferred_element_type=jnp.float32)
    y = y + bias_ref[...].astype(jnp.float32)
    if activation == "gelu":
        y = _gelu(y)
    o_ref[...] = y.astype(o_ref.dtype)


def ln_linear(x2d, gamma, beta, w, bias, activation=None, eps=1e-5):
    """LayerNorm(x2d) @ w + bias (+ optional GELU); LN stats in f32 in-kernel."""
    m, k = x2d.shape
    k2, n = w.shape
    assert k == k2
    tm = _pick_tile(m, (256, 128, 64, 32, 16, 8))
    tn = _pick_tile(n, (512, 256, 128))
    return pl.pallas_call(
        functools.partial(_ln_linear_kernel, eps=eps, activation=activation),
        out_shape=jax.ShapeDtypeStruct((m, n), jnp.float32),
        grid=(m // tm, n // tn),
        in_specs=[
            pl.BlockSpec((tm, k), lambda i, j: (i, 0)),
            pl.BlockSpec((1, k), lambda i, j: (0, 0)),
            pl.BlockSpec((1, k), lambda i, j: (0, 0)),
            pl.BlockSpec((k, tn), lambda i, j: (0, j)),
            pl.BlockSpec((1, tn), lambda i, j: (0, j)),
        ],
        out_specs=pl.BlockSpec((tm, tn), lambda i, j: (i, j)),
        compiler_params=_cparams(("parallel", "parallel")),
    )(x2d, gamma.reshape(1, k), beta.reshape(1, k), w, bias.reshape(1, n))


# ------------------------ fused LayerNorm + QKV kernel -----------------------

def _ln_qkv_kernel(x_ref, g_ref, b_ref, wq_ref, wk_ref, wv_ref, bq_ref, bv_ref,
                   q_ref, k_ref, v_ref, *, eps):
    xn = _ln_rows(x_ref[...].astype(jnp.float32), g_ref[...], b_ref[...], eps)
    xb = xn.astype(jnp.bfloat16)
    q = jnp.dot(xb, wq_ref[...], preferred_element_type=jnp.float32) + bq_ref[...]
    k = jnp.dot(xb, wk_ref[...], preferred_element_type=jnp.float32)  # no k bias
    v = jnp.dot(xb, wv_ref[...], preferred_element_type=jnp.float32) + bv_ref[...]
    q_ref[...] = q.astype(q_ref.dtype)
    k_ref[...] = k.astype(k_ref.dtype)
    v_ref[...] = v.astype(v_ref.dtype)


def ln_qkv(x2d, gamma, beta, wq, wk, wv, bq, bv, eps=1e-5):
    """Fused attn_ln + q/k/v projections (x read once, LN done once)."""
    m, n = x2d.shape
    tm = _pick_tile(m, (256, 128, 64, 32, 16, 8))
    row_spec = pl.BlockSpec((tm, n), lambda i: (i, 0))
    vec_spec = pl.BlockSpec((1, n), lambda i: (0, 0))
    w_spec = pl.BlockSpec((n, n), lambda i: (0, 0))
    out = jax.ShapeDtypeStruct((m, n), jnp.float32)
    return pl.pallas_call(
        functools.partial(_ln_qkv_kernel, eps=eps),
        out_shape=(out, out, out),
        grid=(m // tm,),
        in_specs=[row_spec, vec_spec, vec_spec, w_spec, w_spec, w_spec,
                  vec_spec, vec_spec],
        out_specs=(row_spec, row_spec, row_spec),
        compiler_params=_cparams(("parallel",)),
    )(x2d, gamma.reshape(1, n), beta.reshape(1, n), wq, wk, wv,
      bq.reshape(1, n), bv.reshape(1, n))


# ---------------------- flash-style attention kernel -------------------------

def _attention_kernel(q_ref, k_ref, v_ref, o_ref, m_ref, l_ref, acc_ref,
                      *, heads_per_blk, head_dim):
    ki = pl.program_id(3)

    @pl.when(ki == 0)
    def _():
        m_ref[...] = jnp.full_like(m_ref, -jnp.inf)
        l_ref[...] = jnp.zeros_like(l_ref)
        acc_ref[...] = jnp.zeros_like(acc_ref)

    q = q_ref[0].astype(jnp.bfloat16)      # (tq, heads_per_blk * head_dim)
    kk = k_ref[0].astype(jnp.bfloat16)     # (tk, heads_per_blk * head_dim)
    vv = v_ref[0].astype(jnp.bfloat16)

    for h in range(heads_per_blk):
        lo = h * head_dim
        hi = lo + head_dim
        qh = q[:, lo:hi]
        kh = kk[:, lo:hi]
        vh = vv[:, lo:hi]
        # scores (tq, tk); the d**-0.25 scale is folded into the q/k weights.
        s = lax.dot_general(qh, kh, (((1,), (1,)), ((), ())),
                            preferred_element_type=jnp.float32)
        m_prev = m_ref[h]                                        # (tq, 1)
        m_new = jnp.maximum(m_prev, jnp.max(s, axis=-1, keepdims=True))
        alpha = jnp.exp(m_prev - m_new)
        p = jnp.exp(s - m_new)                                   # (tq, tk) f32
        l_ref[h] = alpha * l_ref[h] + jnp.sum(p, axis=-1, keepdims=True)
        acc_ref[h] = alpha * acc_ref[h] + jnp.dot(
            p.astype(jnp.bfloat16), vh, preferred_element_type=jnp.float32)
        m_ref[h] = m_new

    @pl.when(ki == pl.num_programs(3) - 1)
    def _():
        parts = []
        for h in range(heads_per_blk):
            inv = pl.reciprocal(l_ref[h], approx=True)           # (tq, 1)
            parts.append(acc_ref[h] * inv)
        out = parts[0] if heads_per_blk == 1 else jnp.concatenate(parts, axis=-1)
        o_ref[0] = out.astype(o_ref.dtype)


def attention(q, k, v, n_head):
    """q, k, v: (B, T, n_state) with heads packed in the last dim -> same shape.

    Flash-style online softmax over KV tiles; heads are grouped per grid point
    so block lane width is >= 128 (or the full n_state) and no XLA transposes
    are needed.
    """
    b, t, n_state = q.shape
    d = n_state // n_head
    if d >= 128:
        hpb = 1
    else:
        hpb = min(n_head, max(1, 128 // d))
        while n_head % hpb:
            hpb -= 1
    gd = hpb * d
    if gd % 128 != 0 and gd != n_state:      # layout-safety fallback
        hpb, gd = n_head, n_state
    n_groups = n_head // hpb

    tq = _pick_tile(t, (256, 128, 64, 32, 16, 8))
    tk = _pick_tile(t, (512, 256, 128, 64, 32, 16, 8))

    q_spec = pl.BlockSpec((1, tq, gd), lambda bi, g, qi, ki: (bi, qi, g))
    kv_spec = pl.BlockSpec((1, tk, gd), lambda bi, g, qi, ki: (bi, ki, g))
    o_spec = pl.BlockSpec((1, tq, gd), lambda bi, g, qi, ki: (bi, qi, g))

    return pl.pallas_call(
        functools.partial(_attention_kernel, heads_per_blk=hpb, head_dim=d),
        out_shape=jax.ShapeDtypeStruct((b, t, n_state), jnp.float32),
        grid=(b, n_groups, t // tq, t // tk),
        in_specs=[q_spec, kv_spec, kv_spec],
        out_specs=o_spec,
        scratch_shapes=[
            pltpu.VMEM((hpb, tq, 1), jnp.float32),   # running max
            pltpu.VMEM((hpb, tq, 1), jnp.float32),   # running denom
            pltpu.VMEM((hpb, tq, d), jnp.float32),   # running numerator
        ],
        compiler_params=_cparams(("parallel", "parallel", "parallel",
                                  "arbitrary")),
    )(q, k, v)


# ------------------------------ model pieces --------------------------------

def conv1d_gelu(x_btc, w_flat, bias, stride):
    """1D conv (kernel=3, padding=1) + GELU.  x_btc: (B, T_in, C_in),
    w_flat: tap-major (3*C_in, C_out) bf16.  Conv matmul runs in the tiled
    Pallas `linear` kernel with fused bias + GELU."""
    # TODO(synk): accumulate the 3 taps inside the kernel (K-loop over shifted
    # views) to avoid materializing the (B*T_out, 3*C_in) im2col buffer in HBM.
    b, t_in, c_in = x_btc.shape
    ksz = 3
    c_out = w_flat.shape[1]
    x_pad = jnp.pad(x_btc, ((0, 0), (1, 1), (0, 0)))
    t_out = (t_in + 2 - ksz) // stride + 1
    cols = [x_pad[:, tap: tap + stride * t_out: stride, :] for tap in range(ksz)]
    x_unf = jnp.concatenate(cols, axis=-1).reshape(b * t_out, ksz * c_in)
    y = linear(x_unf, w_flat, bias, activation="gelu")
    return y.reshape(b, t_out, c_out)


def residual_block(x, p, n_head):
    b, t, n_state = x.shape
    x2 = x.reshape(b * t, n_state)
    # fused attn_ln + QKV (scale folded into wq/bq, wk at parameter prep)
    q, k, v = ln_qkv(x2, p["attn_ln_g"], p["attn_ln_b"],
                     p["wq"], p["wk"], p["wv"], p["bq"], p["bv"])
    o = attention(q.reshape(b, t, n_state), k.reshape(b, t, n_state),
                  v.reshape(b, t, n_state), n_head)
    # output projection with the residual add fused into the epilogue
    x2 = linear(o.reshape(b * t, n_state), p["wo"], p["bo"], residual=x2)
    # fused mlp_ln + mlp1 + GELU, then mlp2 with fused residual add
    h = ln_linear(x2, p["mlp_ln_g"], p["mlp_ln_b"],
                  p["w_mlp1"], p["b_mlp1"], activation="gelu")
    x2 = linear(h, p["w_mlp2"], p["b_mlp2"], residual=x2)
    return x2.reshape(b, t, n_state)


def sinusoids(length, channels, max_timescale=10000):
    assert channels % 2 == 0
    log_inc = math.log(max_timescale) / (channels // 2 - 1)
    inv_t = jnp.exp(-log_inc * jnp.arange(channels // 2, dtype=jnp.float32))
    scaled = jnp.arange(length, dtype=jnp.float32)[:, None] * inv_t[None, :]
    return jnp.concatenate([jnp.sin(scaled), jnp.cos(scaled)], axis=1)


def audio_encoder(x_ncw, params, n_ctx, n_state, n_head):
    # x_ncw: (B, n_mels, T_in) with T_in == 2 * n_ctx  (PyTorch NCW layout)
    x = jnp.transpose(x_ncw, (0, 2, 1))                             # (B, T, C)
    x = conv1d_gelu(x, params["conv1_w"], params["conv1_b"], stride=1)
    x = conv1d_gelu(x, params["conv2_w"], params["conv2_b"], stride=2)
    assert x.shape[1:] == (n_ctx, n_state), "incorrect audio shape"
    x = x + sinusoids(n_ctx, n_state)[None, :, :]
    for blk in params["blocks"]:
        x = residual_block(x, blk, n_head)
    b, t, c = x.shape
    x = layernorm(x.reshape(b * t, c), params["ln_post_g"], params["ln_post_b"])
    return x.reshape(b, t, c)


# ------------------------------ parameter init ------------------------------

def init_params(key, n_mels, n_state, n_head, n_layer):
    def w(k, shape, scale=0.02):
        return scale * jax.random.normal(k, shape, dtype=jnp.float32)

    def conv_flat(w_oik):
        # torch (C_out, C_in, 3) -> tap-major (3*C_in, C_out), bf16 for MXU
        return jnp.transpose(w_oik, (2, 1, 0)).reshape(
            -1, w_oik.shape[0]).astype(jnp.bfloat16)

    d_head = n_state // n_head
    att_scale = float(d_head) ** (-0.25)      # applied to both q and k

    keys = iter(jax.random.split(key, 4 + 6 * n_layer))
    params = {
        "conv1_w": conv_flat(w(next(keys), (n_state, n_mels, 3))),
        "conv1_b": w(next(keys), (n_state,)),
        "conv2_w": conv_flat(w(next(keys), (n_state, n_state, 3))),
        "conv2_b": w(next(keys), (n_state,)),
        "ln_post_g": jnp.ones((n_state,), jnp.float32),
        "ln_post_b": jnp.zeros((n_state,), jnp.float32),
        "blocks": [],
    }
    for _ in range(n_layer):
        wq = w(next(keys), (n_state, n_state))
        wk = w(next(keys), (n_state, n_state))
        wv = w(next(keys), (n_state, n_state))
        wo = w(next(keys), (n_state, n_state))
        w1 = w(next(keys), (n_state, 4 * n_state))
        w2 = w(next(keys), (4 * n_state, n_state))
        bq = jnp.zeros((n_state,), jnp.float32)
        blk = {
            # d**-0.25 folded into the q/k projections (weights kept bf16)
            "wq": (wq * att_scale).astype(jnp.bfloat16),
            "bq": bq * att_scale,
            "wk": (wk * att_scale).astype(jnp.bfloat16),
            "wv": wv.astype(jnp.bfloat16),
            "bv": jnp.zeros((n_state,), jnp.float32),
            "wo": wo.astype(jnp.bfloat16),
            "bo": jnp.zeros((n_state,), jnp.float32),
            "attn_ln_g": jnp.ones((n_state,), jnp.float32),
            "attn_ln_b": jnp.zeros((n_state,), jnp.float32),
            "w_mlp1": w1.astype(jnp.bfloat16),
            "b_mlp1": jnp.zeros((4 * n_state,), jnp.float32),
            "w_mlp2": w2.astype(jnp.bfloat16),
            "b_mlp2": jnp.zeros((n_state,), jnp.float32),
            "mlp_ln_g": jnp.ones((n_state,), jnp.float32),
            "mlp_ln_b": jnp.zeros((n_state,), jnp.float32),
        }
        params["blocks"].append(blk)
    return params


# ----------------------------------- main ------------------------------------

if __name__ == "__main__":
    # small AudioEncoder config: n_mels=8, n_ctx=8, n_state=32, n_head=4, n_layer=2
    n_mels, n_ctx, n_state, n_head, n_layer = 8, 8, 32, 4, 2
    batch = 2
    t_in = 2 * n_ctx  # conv2 (stride 2) halves the time axis to n_ctx

    key = jax.random.PRNGKey(0)
    k_x, k_p = jax.random.split(key)
    x = jax.random.normal(k_x, (batch, n_mels, t_in), dtype=jnp.float32)
    params = init_params(k_p, n_mels, n_state, n_head, n_layer)

    encode = jax.jit(functools.partial(audio_encoder, n_ctx=n_ctx,
                                       n_state=n_state, n_head=n_head))
    out = encode(x, params)
    out = jax.block_until_ready(out)
    assert out.shape == (batch, n_ctx, n_state)
    assert bool(jnp.all(jnp.isfinite(out)))
    print("KERNEL_OK")
</pallas_src>

<mosaic_0001>
module attributes {stable_mosaic.version = 11 : i64} {
  func.func @_linear_kernel(%arg0: i32, %arg1: i32, %arg2: i32, %arg3: memref<32x24xf32, #tpu.memory_space<vmem>>, %arg4: memref<24x32xbf16, #tpu.memory_space<vmem>>, %arg5: memref<1x32xf32, #tpu.memory_space<vmem>>, %arg6: memref<32x32xf32, #tpu.memory_space<vmem>>, %arg7: memref<32x32xf32, #tpu.memory_space<vmem>>) attributes {dimension_semantics = [#tpu.dimension_semantics<parallel>, #tpu.dimension_semantics<parallel>, #tpu.dimension_semantics<arbitrary>], iteration_bounds = array<i64: 1, 1, 1>, scalar_prefetch = 0 : i64, scratch_operands = 1 : i64, tpu.core_type = #tpu.core_type<tc>, window_params = [{transform_indices = @transform_0, window_bounds = array<i64: 32, 24>}, {transform_indices = @transform_1, window_bounds = array<i64: 24, 32>}, {transform_indices = @transform_2, window_bounds = array<i64: 1, 32>}, {transform_indices = @transform_3, window_bounds = array<i64: 32, 32>}]} {
    %c0_i32 = arith.constant 0 : i32
    %0 = arith.cmpi eq, %arg2, %c0_i32 : i32
    %1 = arith.extui %0 : i1 to i32
    %c0_i32_0 = arith.constant 0 : i32
    %2 = arith.cmpi ne, %1, %c0_i32_0 : i32
    scf.if %2 {
      %cst_10 = arith.constant 0.000000e+00 : f32
      %13 = vector.broadcast %cst_10 : f32 to vector<32x32xf32>
      %c0_11 = arith.constant 0 : index
      %c0_12 = arith.constant 0 : index
      %14 = vector.load %arg7[%c0_11, %c0_12] : memref<32x32xf32, #tpu.memory_space<vmem>>, vector<32x32xf32>
      tpu.vector_store %arg7[%c0_11, %c0_12], %13 {strides = array<i32>} : memref<32x32xf32, #tpu.memory_space<vmem>>, vector<32x32xf32>,
    } else {
    }
    %c0 = arith.constant 0 : index
    %c0_1 = arith.constant 0 : index
    %3 = vector.load %arg7[%c0, %c0_1] : memref<32x32xf32, #tpu.memory_space<vmem>>, vector<32x32xf32>
    %c0_2 = arith.constant 0 : index
    %c0_3 = arith.constant 0 : index
    %4 = vector.load %arg3[%c0_2, %c0_3] : memref<32x24xf32, #tpu.memory_space<vmem>>, vector<32x24xf32>
    %5 = arith.truncf %4 : vector<32x24xf32> to vector<32x24xbf16>
    %c0_4 = arith.constant 0 : index
    %c0_5 = arith.constant 0 : index
    %6 = vector.load %arg4[%c0_4, %c0_5] : memref<24x32xbf16, #tpu.memory_space<vmem>>, vector<24x32xbf16>
    %cst = arith.constant dense<0.000000e+00> : vector<32x32xf32>
    %7 = tpu.matmul %5, %6, %cst {dimension_numbers = #tpu.dot_dimension_numbers<[1], [0], [0], [1], [0, 0, 1, 1], [], []>} : vector<32x24xbf16>, vector<24x32xbf16>, vector<32x32xf32> -> vector<32x32xf32>
    %8 = arith.addf %3, %7 : vector<32x32xf32>
    %c0_6 = arith.constant 0 : index
    %c0_7 = arith.constant 0 : index
    %9 = vector.load %arg7[%c0_6, %c0_7] : memref<32x32xf32, #tpu.memory_space<vmem>>, vector<32x32xf32>
    tpu.vector_store %arg7[%c0_6, %c0_7], %8 {strides = array<i32>} : memref<32x32xf32, #tpu.memory_space<vmem>>, vector<32x32xf32>,
    %c0_i32_8 = arith.constant 0 : i32
    %10 = arith.cmpi eq, %arg2, %c0_i32_8 : i32
    %11 = arith.extui %10 : i1 to i32
    %c0_i32_9 = arith.constant 0 : i32
    %12 = arith.cmpi ne, %11, %c0_i32_9 : i32
    scf.if %12 {
      %c0_10 = arith.constant 0 : index
      %c0_11 = arith.constant 0 : index
      %13 = vector.load %arg7[%c0_10, %c0_11] : memref<32x32xf32, #tpu.memory_space<vmem>>, vector<32x32xf32>
      %c0_12 = arith.constant 0 : index
      %c0_13 = arith.constant 0 : index
      %14 = vector.load %arg5[%c0_12, %c0_13] : memref<1x32xf32, #tpu.memory_space<vmem>>, vector<1x32xf32>
      %15 = vector.broadcast %14 : vector<1x32xf32> to vector<32x32xf32>
      %16 = arith.addf %13, %15 : vector<32x32xf32>
      %cst_14 = arith.constant 5.000000e-01 : f32
      %17 = vector.broadcast %cst_14 : f32 to vector<32x32xf32>
      %18 = arith.mulf %17, %16 : vector<32x32xf32>
      %cst_15 = arith.constant 0.707106769 : f32
      %19 = vector.broadcast %cst_15 : f32 to vector<32x32xf32>
      %20 = arith.mulf %16, %19 : vector<32x32xf32>
      %cst_16 = arith.constant 0.000000e+00 : f32
      %21 = vector.broadcast %cst_16 : f32 to vector<32x32xf32>
      %22 = arith.cmpf oge, %20, %21 : vector<32x32xf32>
      %cst_17 = arith.constant 1.000000e+00 : f32
      %cst_18 = arith.constant -1.000000e+00 : f32
      %23 = vector.broadcast %cst_17 : f32 to vector<32x32xf32>
      %24 = vector.broadcast %cst_18 : f32 to vector<32x32xf32>
      %25 = arith.select %22, %23, %24 : vector<32x32xi1>, vector<32x32xf32>
      %26 = math.absf %20 : vector<32x32xf32>
      %cst_19 = arith.constant 0.327591091 : f32
      %27 = vector.broadcast %cst_19 : f32 to vector<32x32xf32>
      %28 = arith.mulf %27, %26 : vector<32x32xf32>
      %cst_20 = arith.constant 1.000000e+00 : f32
      %29 = vector.broadcast %cst_20 : f32 to vector<32x32xf32>
      %30 = arith.addf %29, %28 : vector<32x32xf32>
      %cst_21 = arith.constant 1.000000e+00 : f32
      %31 = vector.broadcast %cst_21 : f32 to vector<32x32xf32>
      %32 = arith.divf %31, %30 : vector<32x32xf32>
      %cst_22 = arith.constant 1.06140542 : f32
      %33 = vector.broadcast %cst_22 : f32 to vector<32x32xf32>
      %34 = arith.mulf %33, %32 : vector<32x32xf32>
      %cst_23 = arith.constant -1.45315206 : f32
      %35 = vector.broadcast %cst_23 : f32 to vector<32x32xf32>
      %36 = arith.addf %34, %35 : vector<32x32xf32>
      %37 = arith.mulf %36, %32 : vector<32x32xf32>
      %cst_24 = arith.constant 1.42141378 : f32
      %38 = vector.broadcast %cst_24 : f32 to vector<32x32xf32>
      %39 = arith.addf %37, %38 : vector<32x32xf32>
      %40 = arith.mulf %39, %32 : vector<32x32xf32>
      %cst_25 = arith.constant -0.284496725 : f32
      %41 = vector.broadcast %cst_25 : f32 to vector<32x32xf32>
      %42 = arith.addf %40, %41 : vector<32x32xf32>
      %43 = arith.mulf %42, %32 : vector<32x32xf32>
      %cst_26 = arith.constant 0.254829586 : f32
      %44 = vector.broadcast %cst_26 : f32 to vector<32x32xf32>
      %45 = arith.addf %43, %44 : vector<32x32xf32>
      %46 = arith.mulf %45, %32 : vector<32x32xf32>
      %cst_27 = arith.constant 0.000000e+00 : f32
      %47 = vector.broadcast %cst_27 : f32 to vector<32x32xf32>
      %48 = arith.subf %47, %26 : vector<32x32xf32>
      %49 = arith.mulf %48, %26 : vector<32x32xf32>
      %50 = math.exp %49 : vector<32x32xf32>
      %51 = arith.mulf %46, %50 : vector<32x32xf32>
      %cst_28 = arith.constant 1.000000e+00 : f32
      %52 = vector.broadcast %cst_28 : f32 to vector<32x32xf32>
      %53 = arith.subf %52, %51 : vector<32x32xf32>
      %54 = arith.mulf %25, %53 : vector<32x32xf32>
      %cst_29 = arith.constant 1.000000e+00 : f32
      %55 = vector.broadcast %cst_29 : f32 to vector<32x32xf32>
      %56 = arith.addf %55, %54 : vector<32x32xf32>
      %57 = arith.mulf %18, %56 : vector<32x32xf32>
      %c0_30 = arith.constant 0 : index
      %c0_31 = arith.constant 0 : index
      %58 = vector.load %arg6[%c0_30, %c0_31] : memref<32x32xf32, #tpu.memory_space<vmem>>, vector<32x32xf32>
      tpu.vector_store %arg6[%c0_30, %c0_31], %57 {strides = array<i32>} : memref<32x32xf32, #tpu.memory_space<vmem>>, vector<32x32xf32>,
    } else {
    }
    return
  }
  func.func @transform_0(%arg0: i32, %arg1: i32, %arg2: i32) -> (i32, i32) {
    %c0_i32 = arith.constant 0 : i32
    return %arg0, %arg2 : i32, i32
  }
  func.func @transform_1(%arg0: i32, %arg1: i32, %arg2: i32) -> (i32, i32) {
    %c0_i32 = arith.constant 0 : i32
    return %arg2, %arg1 : i32, i32
  }
  func.func @transform_2(%arg0: i32, %arg1: i32, %arg2: i32) -> (i32, i32) {
    %c0_i32 = arith.constant 0 : i32
    %c0_i32_0 = arith.constant 0 : i32
    return %c0_i32, %arg1 : i32, i32
  }
  func.func @transform_3(%arg0: i32, %arg1: i32, %arg2: i32) -> (i32, i32) {
    %c0_i32 = arith.constant 0 : i32
    return %arg0, %arg1 : i32, i32
  }
}

module attributes {stable_mosaic.version = 11 : i64} {
  func.func @_linear_kernel(%arg0: i32, %arg1: i32, %arg2: i32, %arg3: memref<16x96xf32, #tpu.memory_space<vmem>>, %arg4: memref<96x32xbf16, #tpu.memory_space<vmem>>, %arg5: memref<1x32xf32, #tpu.memory_space<vmem>>, %arg6: memref<16x32xf32, #tpu.memory_space<vmem>>, %arg7: memref<16x32xf32, #tpu.memory_space<vmem>>) attributes {dimension_semantics = [#tpu.dimension_semantics<parallel>, #tpu.dimension_semantics<parallel>, #tpu.dimension_semantics<arbitrary>], iteration_bounds = array<i64: 1, 1, 1>, scalar_prefetch = 0 : i64, scratch_operands = 1 : i64, tpu.core_type = #tpu.core_type<tc>, window_params = [{transform_indices = @transform_0, window_bounds = array<i64: 16, 96>}, {transform_indices = @transform_1, window_bounds = array<i64: 96, 32>}, {transform_indices = @transform_2, window_bounds = array<i64: 1, 32>}, {transform_indices = @transform_3, window_bounds = array<i64: 16, 32>}]} {
    %c0_i32 = arith.constant 0 : i32
    %0 = arith.cmpi eq, %arg2, %c0_i32 : i32
    %1 = arith.extui %0 : i1 to i32
    %c0_i32_0 = arith.constant 0 : i32
    %2 = arith.cmpi ne, %1, %c0_i32_0 : i32
    scf.if %2 {
      %cst_10 = arith.constant 0.000000e+00 : f32
      %13 = vector.broadcast %cst_10 : f32 to vector<16x32xf32>
      %c0_11 = arith.constant 0 : index
      %c0_12 = arith.constant 0 : index
      %14 = vector.load %arg7[%c0_11, %c0_12] : memref<16x32xf32, #tpu.memory_space<vmem>>, vector<16x32xf32>
      tpu.vector_store %arg7[%c0_11, %c0_12], %13 {strides = array<i32>} : memref<16x32xf32, #tpu.memory_space<vmem>>, vector<16x32xf32>,
    } else {
    }
    %c0 = arith.constant 0 : index
    %c0_1 = arith.constant 0 : index
    %3 = vector.load %arg7[%c0, %c0_1] : memref<16x32xf32, #tpu.memory_space<vmem>>, vector<16x32xf32>
    %c0_2 = arith.constant 0 : index
    %c0_3 = arith.constant 0 : index
    %4 = vector.load %arg3[%c0_2, %c0_3] : memref<16x96xf32, #tpu.memory_space<vmem>>, vector<16x96xf32>
    %5 = arith.truncf %4 : vector<16x96xf32> to vector<16x96xbf16>
    %c0_4 = arith.constant 0 : index
    %c0_5 = arith.constant 0 : index
    %6 = vector.load %arg4[%c0_4, %c0_5] : memref<96x32xbf16, #tpu.memory_space<vmem>>, vector<96x32xbf16>
    %cst = arith.constant dense<0.000000e+00> : vector<16x32xf32>
    %7 = tpu.matmul %5, %6, %cst {dimension_numbers = #tpu.dot_dimension_numbers<[1], [0], [0], [1], [0, 0, 1, 1], [], []>} : vector<16x96xbf16>, vector<96x32xbf16>, vector<16x32xf32> -> vector<16x32xf32>
    %8 = arith.addf %3, %7 : vector<16x32xf32>
    %c0_6 = arith.constant 0 : index
    %c0_7 = arith.constant 0 : index
    %9 = vector.load %arg7[%c0_6, %c0_7] : memref<16x32xf32, #tpu.memory_space<vmem>>, vector<16x32xf32>
    tpu.vector_store %arg7[%c0_6, %c0_7], %8 {strides = array<i32>} : memref<16x32xf32, #tpu.memory_space<vmem>>, vector<16x32xf32>,
    %c0_i32_8 = arith.constant 0 : i32
    %10 = arith.cmpi eq, %arg2, %c0_i32_8 : i32
    %11 = arith.extui %10 : i1 to i32
    %c0_i32_9 = arith.constant 0 : i32
    %12 = arith.cmpi ne, %11, %c0_i32_9 : i32
    scf.if %12 {
      %c0_10 = arith.constant 0 : index
      %c0_11 = arith.constant 0 : index
      %13 = vector.load %arg7[%c0_10, %c0_11] : memref<16x32xf32, #tpu.memory_space<vmem>>, vector<16x32xf32>
      %c0_12 = arith.constant 0 : index
      %c0_13 = arith.constant 0 : index
      %14 = vector.load %arg5[%c0_12, %c0_13] : memref<1x32xf32, #tpu.memory_space<vmem>>, vector<1x32xf32>
      %15 = vector.broadcast %14 : vector<1x32xf32> to vector<16x32xf32>
      %16 = arith.addf %13, %15 : vector<16x32xf32>
      %cst_14 = arith.constant 5.000000e-01 : f32
      %17 = vector.broadcast %cst_14 : f32 to vector<16x32xf32>
      %18 = arith.mulf %17, %16 : vector<16x32xf32>
      %cst_15 = arith.constant 0.707106769 : f32
      %19 = vector.broadcast %cst_15 : f32 to vector<16x32xf32>
      %20 = arith.mulf %16, %19 : vector<16x32xf32>
      %cst_16 = arith.constant 0.000000e+00 : f32
      %21 = vector.broadcast %cst_16 : f32 to vector<16x32xf32>
      %22 = arith.cmpf oge, %20, %21 : vector<16x32xf32>
      %cst_17 = arith.constant 1.000000e+00 : f32
      %cst_18 = arith.constant -1.000000e+00 : f32
      %23 = vector.broadcast %cst_17 : f32 to vector<16x32xf32>
      %24 = vector.broadcast %cst_18 : f32 to vector<16x32xf32>
      %25 = arith.select %22, %23, %24 : vector<16x32xi1>, vector<16x32xf32>
      %26 = math.absf %20 : vector<16x32xf32>
      %cst_19 = arith.constant 0.327591091 : f32
      %27 = vector.broadcast %cst_19 : f32 to vector<16x32xf32>
      %28 = arith.mulf %27, %26 : vector<16x32xf32>
      %cst_20 = arith.constant 1.000000e+00 : f32
      %29 = vector.broadcast %cst_20 : f32 to vector<16x32xf32>
      %30 = arith.addf %29, %28 : vector<16x32xf32>
      %cst_21 = arith.constant 1.000000e+00 : f32
      %31 = vector.broadcast %cst_21 : f32 to vector<16x32xf32>
      %32 = arith.divf %31, %30 : vector<16x32xf32>
      %cst_22 = arith.constant 1.06140542 : f32
      %33 = vector.broadcast %cst_22 : f32 to vector<16x32xf32>
      %34 = arith.mulf %33, %32 : vector<16x32xf32>
      %cst_23 = arith.constant -1.45315206 : f32
      %35 = vector.broadcast %cst_23 : f32 to vector<16x32xf32>
      %36 = arith.addf %34, %35 : vector<16x32xf32>
      %37 = arith.mulf %36, %32 : vector<16x32xf32>
      %cst_24 = arith.constant 1.42141378 : f32
      %38 = vector.broadcast %cst_24 : f32 to vector<16x32xf32>
      %39 = arith.addf %37, %38 : vector<16x32xf32>
      %40 = arith.mulf %39, %32 : vector<16x32xf32>
      %cst_25 = arith.constant -0.284496725 : f32
      %41 = vector.broadcast %cst_25 : f32 to vector<16x32xf32>
      %42 = arith.addf %40, %41 : vector<16x32xf32>
      %43 = arith.mulf %42, %32 : vector<16x32xf32>
      %cst_26 = arith.constant 0.254829586 : f32
      %44 = vector.broadcast %cst_26 : f32 to vector<16x32xf32>
      %45 = arith.addf %43, %44 : vector<16x32xf32>
      %46 = arith.mulf %45, %32 : vector<16x32xf32>
      %cst_27 = arith.constant 0.000000e+00 : f32
      %47 = vector.broadcast %cst_27 : f32 to vector<16x32xf32>
      %48 = arith.subf %47, %26 : vector<16x32xf32>
      %49 = arith.mulf %48, %26 : vector<16x32xf32>
      %50 = math.exp %49 : vector<16x32xf32>
      %51 = arith.mulf %46, %50 : vector<16x32xf32>
      %cst_28 = arith.constant 1.000000e+00 : f32
      %52 = vector.broadcast %cst_28 : f32 to vector<16x32xf32>
      %53 = arith.subf %52, %51 : vector<16x32xf32>
      %54 = arith.mulf %25, %53 : vector<16x32xf32>
      %cst_29 = arith.constant 1.000000e+00 : f32
      %55 = vector.broadcast %cst_29 : f32 to vector<16x32xf32>
      %56 = arith.addf %55, %54 : vector<16x32xf32>
      %57 = arith.mulf %18, %56 : vector<16x32xf32>
      %c0_30 = arith.constant 0 : index
      %c0_31 = arith.constant 0 : index
      %58 = vector.load %arg6[%c0_30, %c0_31] : memref<16x32xf32, #tpu.memory_space<vmem>>, vector<16x32xf32>
      tpu.vector_store %arg6[%c0_30, %c0_31], %57 {strides = array<i32>} : memref<16x32xf32, #tpu.memory_space<vmem>>, vector<16x32xf32>,
    } else {
    }
    return
  }
  func.func @transform_0(%arg0: i32, %arg1: i32, %arg2: i32) -> (i32, i32) {
    %c0_i32 = arith.constant 0 : i32
    return %arg0, %arg2 : i32, i32
  }
  func.func @transform_1(%arg0: i32, %arg1: i32, %arg2: i32) -> (i32, i32) {
    %c0_i32 = arith.constant 0 : i32
    return %arg2, %arg1 : i32, i32
  }
  func.func @transform_2(%arg0: i32, %arg1: i32, %arg2: i32) -> (i32, i32) {
    %c0_i32 = arith.constant 0 : i32
    %c0_i32_0 = arith.constant 0 : i32
    return %c0_i32, %arg1 : i32, i32
  }
  func.func @transform_3(%arg0: i32, %arg1: i32, %arg2: i32) -> (i32, i32) {
    %c0_i32 = arith.constant 0 : i32
    return %arg0, %arg1 : i32, i32
  }
}

module attributes {stable_mosaic.version = 11 : i64} {
  func.func @_ln_qkv_kernel(%arg0: i32, %arg1: memref<16x32xf32, #tpu.memory_space<vmem>>, %arg2: memref<1x32xf32, #tpu.memory_space<vmem>>, %arg3: memref<1x32xf32, #tpu.memory_space<vmem>>, %arg4: memref<32x32xbf16, #tpu.memory_space<vmem>>, %arg5: memref<32x32xbf16, #tpu.memory_space<vmem>>, %arg6: memref<32x32xbf16, #tpu.memory_space<vmem>>, %arg7: memref<1x32xf32, #tpu.memory_space<vmem>>, %arg8: memref<1x32xf32, #tpu.memory_space<vmem>>, %arg9: memref<16x32xf32, #tpu.memory_space<vmem>>, %arg10: memref<16x32xf32, #tpu.memory_space<vmem>>, %arg11: memref<16x32xf32, #tpu.memory_space<vmem>>) attributes {dimension_semantics = [#tpu.dimension_semantics<parallel>], iteration_bounds = array<i64: 1>, scalar_prefetch = 0 : i64, scratch_operands = 0 : i64, tpu.core_type = #tpu.core_type<tc>, window_params = [{transform_indices = @transform_0, window_bounds = array<i64: 16, 32>}, {pipeline_mode = #tpu.pipeline_mode<synchronous>, transform_indices = @transform_1, window_bounds = array<i64: 1, 32>}, {pipeline_mode = #tpu.pipeline_mode<synchronous>, transform_indices = @transform_2, window_bounds = array<i64: 1, 32>}, {pipeline_mode = #tpu.pipeline_mode<synchronous>, transform_indices = @transform_3, window_bounds = array<i64: 32, 32>}, {pipeline_mode = #tpu.pipeline_mode<synchronous>, transform_indices = @transform_4, window_bounds = array<i64: 32, 32>}, {pipeline_mode = #tpu.pipeline_mode<synchronous>, transform_indices = @transform_5, window_bounds = array<i64: 32, 32>}, {pipeline_mode = #tpu.pipeline_mode<synchronous>, transform_indices = @transform_6, window_bounds = array<i64: 1, 32>}, {pipeline_mode = #tpu.pipeline_mode<synchronous>, transform_indices = @transform_7, window_bounds = array<i64: 1, 32>}, {transform_indices = @transform_8, window_bounds = array<i64: 16, 32>}, {transform_indices = @transform_9, window_bounds = array<i64: 16, 32>}, {transform_indices = @transform_10, window_bounds = array<i64: 16, 32>}]} {
    %c0 = arith.constant 0 : index
    %c0_0 = arith.constant 0 : index
    %0 = vector.load %arg1[%c0, %c0_0] : memref<16x32xf32, #tpu.memory_space<vmem>>, vector<16x32xf32>
    %c0_1 = arith.constant 0 : index
    %c0_2 = arith.constant 0 : index
    %1 = vector.load %arg2[%c0_1, %c0_2] : memref<1x32xf32, #tpu.memory_space<vmem>>, vector<1x32xf32>
    %c0_3 = arith.constant 0 : index
    %c0_4 = arith.constant 0 : index
    %2 = vector.load %arg3[%c0_3, %c0_4] : memref<1x32xf32, #tpu.memory_space<vmem>>, vector<1x32xf32>
    %cst = arith.constant dense<0.000000e+00> : vector<16xf32>
    %3 = vector.multi_reduction <add>, %0, %cst [1] : vector<16x32xf32> to vector<16xf32>
    %4 = vector.shape_cast %3 : vector<16xf32> to vector<16x1xf32>
    %cst_5 = arith.constant 3.200000e+01 : f32
    %5 = vector.broadcast %cst_5 : f32 to vector<16x1xf32>
    %6 = arith.divf %4, %5 : vector<16x1xf32>
    %7 = vector.broadcast %6 : vector<16x1xf32> to vector<16x32xf32>
    %8 = arith.subf %0, %7 : vector<16x32xf32>
    %9 = arith.mulf %8, %8 : vector<16x32xf32>
    %cst_6 = arith.constant dense<0.000000e+00> : vector<16xf32>
    %10 = vector.multi_reduction <add>, %9, %cst_6 [1] : vector<16x32xf32> to vector<16xf32>
    %11 = vector.shape_cast %10 : vector<16xf32> to vector<16x1xf32>
    %cst_7 = arith.constant 3.200000e+01 : f32
    %12 = vector.broadcast %cst_7 : f32 to vector<16x1xf32>
    %13 = arith.divf %11, %12 : vector<16x1xf32>
    %cst_8 = arith.constant 9.99999974E-6 : f32
    %14 = vector.broadcast %cst_8 : f32 to vector<16x1xf32>
    %15 = arith.addf %13, %14 : vector<16x1xf32>
    %16 = math.rsqrt %15 : vector<16x1xf32>
    %17 = vector.broadcast %16 : vector<16x1xf32> to vector<16x32xf32>
    %18 = arith.mulf %8, %17 : vector<16x32xf32>
    %19 = vector.broadcast %1 : vector<1x32xf32> to vector<16x32xf32>
    %20 = arith.mulf %18, %19 : vector<16x32xf32>
    %21 = vector.broadcast %2 : vector<1x32xf32> to vector<16x32xf32>
    %22 = arith.addf %20, %21 : vector<16x32xf32>
    %23 = arith.truncf %22 : vector<16x32xf32> to vector<16x32xbf16>
    %c0_9 = arith.constant 0 : index
    %c0_10 = arith.constant 0 : index
    %24 = vector.load %arg4[%c0_9, %c0_10] : memref<32x32xbf16, #tpu.memory_space<vmem>>, vector<32x32xbf16>
    %cst_11 = arith.constant dense<0.000000e+00> : vector<16x32xf32>
    %25 = tpu.matmul %23, %24, %cst_11 {dimension_numbers = #tpu.dot_dimension_numbers<[1], [0], [0], [1], [0, 0, 1, 1], [], []>} : vector<16x32xbf16>, vector<32x32xbf16>, vector<16x32xf32> -> vector<16x32xf32>
    %c0_12 = arith.constant 0 : index
    %c0_13 = arith.constant 0 : index
    %26 = vector.load %arg7[%c0_12, %c0_13] : memref<1x32xf32, #tpu.memory_space<vmem>>, vector<1x32xf32>
    %27 = vector.broadcast %26 : vector<1x32xf32> to vector<16x32xf32>
    %28 = arith.addf %25, %27 : vector<16x32xf32>
    %c0_14 = arith.constant 0 : index
    %c0_15 = arith.constant 0 : index
    %29 = vector.load %arg5[%c0_14, %c0_15] : memref<32x32xbf16, #tpu.memory_space<vmem>>, vector<32x32xbf16>
    %cst_16 = arith.constant dense<0.000000e+00> : vector<16x32xf32>
    %30 = tpu.matmul %23, %29, %cst_16 {dimension_numbers = #tpu.dot_dimension_numbers<[1], [0], [0], [1], [0, 0, 1, 1], [], []>} : vector<16x32xbf16>, vector<32x32xbf16>, vector<16x32xf32> -> vector<16x32xf32>
    %c0_17 = arith.constant 0 : index
    %c0_18 = arith.constant 0 : index
    %31 = vector.load %arg6[%c0_17, %c0_18] : memref<32x32xbf16, #tpu.memory_space<vmem>>, vector<32x32xbf16>
    %cst_19 = arith.constant dense<0.000000e+00> : vector<16x32xf32>
    %32 = tpu.matmul %23, %31, %cst_19 {dimension_numbers = #tpu.dot_dimension_numbers<[1], [0], [0], [1], [0, 0, 1, 1], [], []>} : vector<16x32xbf16>, vector<32x32xbf16>, vector<16x32xf32> -> vector<16x32xf32>
    %c0_20 = arith.constant 0 : index
    %c0_21 = arith.constant 0 : index
    %33 = vector.load %arg8[%c0_20, %c0_21] : memref<1x32xf32, #tpu.memory_space<vmem>>, vector<1x32xf32>
    %34 = vector.broadcast %33 : vector<1x32xf32> to vector<16x32xf32>
    %35 = arith.addf %32, %34 : vector<16x32xf32>
    %c0_22 = arith.constant 0 : index
    %c0_23 = arith.constant 0 : index
    %36 = vector.load %arg9[%c0_22, %c0_23] : memref<16x32xf32, #tpu.memory_space<vmem>>, vector<16x32xf32>
    tpu.vector_store %arg9[%c0_22, %c0_23], %28 {strides = array<i32>} : memref<16x32xf32, #tpu.memory_space<vmem>>, vector<16x32xf32>,
    %c0_24 = arith.constant 0 : index
    %c0_25 = arith.constant 0 : index
    %37 = vector.load %arg10[%c0_24, %c0_25] : memref<16x32xf32, #tpu.memory_space<vmem>>, vector<16x32xf32>
    tpu.vector_store %arg10[%c0_24, %c0_25], %30 {strides = array<i32>} : memref<16x32xf32, #tpu.memory_space<vmem>>, vector<16x32xf32>,
    %c0_26 = arith.constant 0 : index
    %c0_27 = arith.constant 0 : index
    %38 = vector.load %arg11[%c0_26, %c0_27] : memref<16x32xf32, #tpu.memory_space<vmem>>, vector<16x32xf32>
    tpu.vector_store %arg11[%c0_26, %c0_27], %35 {strides = array<i32>} : memref<16x32xf32, #tpu.memory_space<vmem>>, vector<16x32xf32>,
    return
  }
  func.func @transform_0(%arg0: i32) -> (i32, i32) {
    %c0_i32 = arith.constant 0 : i32
    %c0_i32_0 = arith.constant 0 : i32
    return %arg0, %c0_i32 : i32, i32
  }
  func.func @transform_1(%arg0: i32) -> (i32, i32) {
    %c0_i32 = arith.constant 0 : i32
    %c0_i32_0 = arith.constant 0 : i32
    %c0_i32_1 = arith.constant 0 : i32
    return %c0_i32, %c0_i32_0 : i32, i32
  }
  func.func @transform_2(%arg0: i32) -> (i32, i32) {
    %c0_i32 = arith.constant 0 : i32
    %c0_i32_0 = arith.constant 0 : i32
    %c0_i32_1 = arith.constant 0 : i32
    return %c0_i32, %c0_i32_0 : i32, i32
  }
  func.func @transform_3(%arg0: i32) -> (i32, i32) {
    %c0_i32 = arith.constant 0 : i32
    %c0_i32_0 = arith.constant 0 : i32
    %c0_i32_1 = arith.constant 0 : i32
    return %c0_i32, %c0_i32_0 : i32, i32
  }
  func.func @transform_4(%arg0: i32) -> (i32, i32) {
    %c0_i32 = arith.constant 0 : i32
    %c0_i32_0 = arith.constant 0 : i32
    %c0_i32_1 = arith.constant 0 : i32
    return %c0_i32, %c0_i32_0 : i32, i32
  }
  func.func @transform_5(%arg0: i32) -> (i32, i32) {
    %c0_i32 = arith.constant 0 : i32
    %c0_i32_0 = arith.constant 0 : i32
    %c0_i32_1 = arith.constant 0 : i32
    return %c0_i32, %c0_i32_0 : i32, i32
  }
  func.func @transform_6(%arg0: i32) -> (i32, i32) {
    %c0_i32 = arith.constant 0 : i32
    %c0_i32_0 = arith.constant 0 : i32
    %c0_i32_1 = arith.constant 0 : i32
    return %c0_i32, %c0_i32_0 : i32, i32
  }
  func.func @transform_7(%arg0: i32) -> (i32, i32) {
    %c0_i32 = arith.constant 0 : i32
    %c0_i32_0 = arith.constant 0 : i32
    %c0_i32_1 = arith.constant 0 : i32
    return %c0_i32, %c0_i32_0 : i32, i32
  }
  func.func @transform_8(%arg0: i32) -> (i32, i32) {
    %c0_i32 = arith.constant 0 : i32
    %c0_i32_0 = arith.constant 0 : i32
    return %arg0, %c0_i32 : i32, i32
  }
  func.func @transform_9(%arg0: i32) -> (i32, i32) {
    %c0_i32 = arith.constant 0 : i32
    %c0_i32_0 = arith.constant 0 : i32
    return %arg0, %c0_i32 : i32, i32
  }
  func.func @transform_10(%arg0: i32) -> (i32, i32) {
    %c0_i32 = arith.constant 0 : i32
    %c0_i32_0 = arith.constant 0 : i32
    return %arg0, %c0_i32 : i32, i32
  }
}

module attributes {stable_mosaic.version = 11 : i64} {
  func.func @_attention_kernel(%arg0: i32, %arg1: i32, %arg2: i32, %arg3: i32, %arg4: memref<1x8x32xf32, #tpu.memory_space<vmem>>, %arg5: memref<1x8x32xf32, #tpu.memory_space<vmem>>, %arg6: memref<1x8x32xf32, #tpu.memory_space<vmem>>, %arg7: memref<1x8x32xf32, #tpu.memory_space<vmem>>, %arg8: memref<4x8x1xf32, #tpu.memory_space<vmem>>, %arg9: memref<4x8x1xf32, #tpu.memory_space<vmem>>, %arg10: memref<4x8x8xf32, #tpu.memory_space<vmem>>) attributes {dimension_semantics = [#tpu.dimension_semantics<parallel>, #tpu.dimension_semantics<parallel>, #tpu.dimension_semantics<parallel>, #tpu.dimension_semantics<arbitrary>], iteration_bounds = array<i64: 2, 1, 1, 1>, scalar_prefetch = 0 : i64, scratch_operands = 3 : i64, tpu.core_type = #tpu.core_type<tc>, window_params = [{transform_indices = @transform_0, window_bounds = array<i64: 1, 8, 32>}, {transform_indices = @transform_1, window_bounds = array<i64: 1, 8, 32>}, {transform_indices = @transform_2, window_bounds = array<i64: 1, 8, 32>}, {transform_indices = @transform_3, window_bounds = array<i64: 1, 8, 32>}]} {
    %c0_i32 = arith.constant 0 : i32
    %0 = arith.cmpi eq, %arg3, %c0_i32 : i32
    %1 = arith.extui %0 : i1 to i32
    %c0_i32_0 = arith.constant 0 : i32
    %2 = arith.cmpi ne, %1, %c0_i32_0 : i32
    scf.if %2 {
      %cst_95 = arith.constant 0xFF800000 : f32
      %159 = vector.broadcast %cst_95 : f32 to vector<4x8x1xf32>
      %c0_96 = arith.constant 0 : index
      %c0_97 = arith.constant 0 : index
      %c0_98 = arith.constant 0 : index
      %160 = vector.load %arg8[%c0_96, %c0_97, %c0_98] : memref<4x8x1xf32, #tpu.memory_space<vmem>>, vector<4x8x1xf32>
      tpu.vector_store %arg8[%c0_96, %c0_97, %c0_98], %159 {strides = array<i32>} : memref<4x8x1xf32, #tpu.memory_space<vmem>>, vector<4x8x1xf32>,
      %cst_99 = arith.constant 0.000000e+00 : f32
      %161 = vector.broadcast %cst_99 : f32 to vector<4x8x1xf32>
      %c0_100 = arith.constant 0 : index
      %c0_101 = arith.constant 0 : index
      %c0_102 = arith.constant 0 : index
      %162 = vector.load %arg9[%c0_100, %c0_101, %c0_102] : memref<4x8x1xf32, #tpu.memory_space<vmem>>, vector<4x8x1xf32>
      tpu.vector_store %arg9[%c0_100, %c0_101, %c0_102], %161 {strides = array<i32>} : memref<4x8x1xf32, #tpu.memory_space<vmem>>, vector<4x8x1xf32>,
      %cst_103 = arith.constant 0.000000e+00 : f32
      %163 = vector.broadcast %cst_103 : f32 to vector<4x8x8xf32>
      %c0_104 = arith.constant 0 : index
      %c0_105 = arith.constant 0 : index
      %c0_106 = arith.constant 0 : index
      %164 = vector.load %arg10[%c0_104, %c0_105, %c0_106] : memref<4x8x8xf32, #tpu.memory_space<vmem>>, vector<4x8x8xf32>
      tpu.vector_store %arg10[%c0_104, %c0_105, %c0_106], %163 {strides = array<i32>} : memref<4x8x8xf32, #tpu.memory_space<vmem>>, vector<4x8x8xf32>,
    } else {
    }
    %c0 = arith.constant 0 : index
    %c0_1 = arith.constant 0 : index
    %c0_2 = arith.constant 0 : index
    %3 = vector.load %arg4[%c0, %c0_1, %c0_2] : memref<1x8x32xf32, #tpu.memory_space<vmem>>, vector<1x8x32xf32>
    %4 = vector.shape_cast %3 : vector<1x8x32xf32> to vector<8x32xf32>
    %5 = arith.truncf %4 : vector<8x32xf32> to vector<8x32xbf16>
    %c0_3 = arith.constant 0 : index
    %c0_4 = arith.constant 0 : index
    %c0_5 = arith.constant 0 : index
    %6 = vector.load %arg5[%c0_3, %c0_4, %c0_5] : memref<1x8x32xf32, #tpu.memory_space<vmem>>, vector<1x8x32xf32>
    %7 = vector.shape_cast %6 : vector<1x8x32xf32> to vector<8x32xf32>
    %8 = arith.truncf %7 : vector<8x32xf32> to vector<8x32xbf16>
    %c0_6 = arith.constant 0 : index
    %c0_7 = arith.constant 0 : index
    %c0_8 = arith.constant 0 : index
    %9 = vector.load %arg6[%c0_6, %c0_7, %c0_8] : memref<1x8x32xf32, #tpu.memory_space<vmem>>, vector<1x8x32xf32>
    %10 = vector.shape_cast %9 : vector<1x8x32xf32> to vector<8x32xf32>
    %11 = arith.truncf %10 : vector<8x32xf32> to vector<8x32xbf16>
    %12 = vector.extract_strided_slice %5 {offsets = [0, 0], sizes = [8, 8], strides = [1, 1]} : vector<8x32xbf16> to vector<8x8xbf16>
    %13 = vector.extract_strided_slice %8 {offsets = [0, 0], sizes = [8, 8], strides = [1, 1]} : vector<8x32xbf16> to vector<8x8xbf16>
    %14 = vector.extract_strided_slice %11 {offsets = [0, 0], sizes = [8, 8], strides = [1, 1]} : vector<8x32xbf16> to vector<8x8xbf16>
    %cst = arith.constant dense<0.000000e+00> : vector<8x8xf32>
    %15 = tpu.matmul %12, %13, %cst {dimension_numbers = #tpu.dot_dimension_numbers<[1], [1], [0], [0], [0, 0, 1, 0], [], []>} : vector<8x8xbf16>, vector<8x8xbf16>, vector<8x8xf32> -> vector<8x8xf32>
    %c0_9 = arith.constant 0 : index
    %c0_10 = arith.constant 0 : index
    %c0_11 = arith.constant 0 : index
    %16 = vector.load %arg8[%c0_9, %c0_10, %c0_11] : memref<4x8x1xf32, #tpu.memory_space<vmem>>, vector<1x8x1xf32>
    %17 = vector.shape_cast %16 : vector<1x8x1xf32> to vector<8x1xf32>
    %cst_12 = arith.constant dense<0xFF800000> : vector<8xf32>
    %18 = vector.multi_reduction <maximumf>, %15, %cst_12 [1] : vector<8x8xf32> to vector<8xf32>
    %19 = vector.shape_cast %18 : vector<8xf32> to vector<8x1xf32>
    %20 = arith.maximumf %17, %19 : vector<8x1xf32>
    %21 = arith.subf %17, %20 : vector<8x1xf32>
    %22 = math.exp %21 : vector<8x1xf32>
    %23 = vector.broadcast %20 : vector<8x1xf32> to vector<8x8xf32>
    %24 = arith.subf %15, %23 : vector<8x8xf32>
    %25 = math.exp %24 : vector<8x8xf32>
    %c0_13 = arith.constant 0 : index
    %c0_14 = arith.constant 0 : index
    %c0_15 = arith.constant 0 : index
    %26 = vector.load %arg9[%c0_13, %c0_14, %c0_15] : memref<4x8x1xf32, #tpu.memory_space<vmem>>, vector<1x8x1xf32>
    %27 = vector.shape_cast %26 : vector<1x8x1xf32> to vector<8x1xf32>
    %28 = arith.mulf %22, %27 : vector<8x1xf32>
    %cst_16 = arith.constant dense<0.000000e+00> : vector<8xf32>
    %29 = vector.multi_reduction <add>, %25, %cst_16 [1] : vector<8x8xf32> to vector<8xf32>
    %30 = vector.shape_cast %29 : vector<8xf32> to vector<8x1xf32>
    %31 = arith.addf %28, %30 : vector<8x1xf32>
    %c0_17 = arith.constant 0 : index
    %c0_18 = arith.constant 0 : index
    %c0_19 = arith.constant 0 : index
    %32 = vector.load %arg9[%c0_17, %c0_18, %c0_19] : memref<4x8x1xf32, #tpu.memory_space<vmem>>, vector<1x8x1xf32>
    %33 = vector.shape_cast %32 : vector<1x8x1xf32> to vector<8x1xf32>
    %34 = vector.shape_cast %31 : vector<8x1xf32> to vector<1x8x1xf32>
    tpu.vector_store %arg9[%c0_17, %c0_18, %c0_19], %34 {strides = array<i32>} : memref<4x8x1xf32, #tpu.memory_space<vmem>>, vector<1x8x1xf32>,
    %c0_20 = arith.constant 0 : index
    %c0_21 = arith.constant 0 : index
    %c0_22 = arith.constant 0 : index
    %35 = vector.load %arg10[%c0_20, %c0_21, %c0_22] : memref<4x8x8xf32, #tpu.memory_space<vmem>>, vector<1x8x8xf32>
    %36 = vector.shape_cast %35 : vector<1x8x8xf32> to vector<8x8xf32>
    %37 = vector.broadcast %22 : vector<8x1xf32> to vector<8x8xf32>
    %38 = arith.mulf %37, %36 : vector<8x8xf32>
    %39 = arith.truncf %25 : vector<8x8xf32> to vector<8x8xbf16>
    %cst_23 = arith.constant dense<0.000000e+00> : vector<8x8xf32>
    %40 = tpu.matmul %39, %14, %cst_23 {dimension_numbers = #tpu.dot_dimension_numbers<[1], [0], [0], [1], [0, 0, 1, 1], [], []>} : vector<8x8xbf16>, vector<8x8xbf16>, vector<8x8xf32> -> vector<8x8xf32>
    %41 = arith.addf %38, %40 : vector<8x8xf32>
    %c0_24 = arith.constant 0 : index
    %c0_25 = arith.constant 0 : index
    %c0_26 = arith.constant 0 : index
    %42 = vector.load %arg10[%c0_24, %c0_25, %c0_26] : memref<4x8x8xf32, #tpu.memory_space<vmem>>, vector<1x8x8xf32>
    %43 = vector.shape_cast %42 : vector<1x8x8xf32> to vector<8x8xf32>
    %44 = vector.shape_cast %41 : vector<8x8xf32> to vector<1x8x8xf32>
    tpu.vector_store %arg10[%c0_24, %c0_25, %c0_26], %44 {strides = array<i32>} : memref<4x8x8xf32, #tpu.memory_space<vmem>>, vector<1x8x8xf32>,
    %c0_27 = arith.constant 0 : index
    %c0_28 = arith.constant 0 : index
    %c0_29 = arith.constant 0 : index
    %45 = vector.load %arg8[%c0_27, %c0_28, %c0_29] : memref<4x8x1xf32, #tpu.memory_space<vmem>>, vector<1x8x1xf32>
    %46 = vector.shape_cast %45 : vector<1x8x1xf32> to vector<8x1xf32>
    %47 = vector.shape_cast %20 : vector<8x1xf32> to vector<1x8x1xf32>
    tpu.vector_store %arg8[%c0_27, %c0_28, %c0_29], %47 {strides = array<i32>} : memref<4x8x1xf32, #tpu.memory_space<vmem>>, vector<1x8x1xf32>,
    %48 = vector.extract_strided_slice %5 {offsets = [0, 8], sizes = [8, 8], strides = [1, 1]} : vector<8x32xbf16> to vector<8x8xbf16>
    %49 = vector.extract_strided_slice %8 {offsets = [0, 8], sizes = [8, 8], strides = [1, 1]} : vector<8x32xbf16> to vector<8x8xbf16>
    %50 = vector.extract_strided_slice %11 {offsets = [0, 8], sizes = [8, 8], strides = [1, 1]} : vector<8x32xbf16> to vector<8x8xbf16>
    %cst_30 = arith.constant dense<0.000000e+00> : vector<8x8xf32>
    %51 = tpu.matmul %48, %49, %cst_30 {dimension_numbers = #tpu.dot_dimension_numbers<[1], [1], [0], [0], [0, 0, 1, 0], [], []>} : vector<8x8xbf16>, vector<8x8xbf16>, vector<8x8xf32> -> vector<8x8xf32>
    %c1 = arith.constant 1 : index
    %c0_31 = arith.constant 0 : index
    %c0_32 = arith.constant 0 : index
    %52 = vector.load %arg8[%c1, %c0_31, %c0_32] : memref<4x8x1xf32, #tpu.memory_space<vmem>>, vector<1x8x1xf32>
    %53 = vector.shape_cast %52 : vector<1x8x1xf32> to vector<8x1xf32>
    %cst_33 = arith.constant dense<0xFF800000> : vector<8xf32>
    %54 = vector.multi_reduction <maximumf>, %51, %cst_33 [1] : vector<8x8xf32> to vector<8xf32>
    %55 = vector.shape_cast %54 : vector<8xf32> to vector<8x1xf32>
    %56 = arith.maximumf %53, %55 : vector<8x1xf32>
    %57 = arith.subf %53, %56 : vector<8x1xf32>
    %58 = math.exp %57 : vector<8x1xf32>
    %59 = vector.broadcast %56 : vector<8x1xf32> to vector<8x8xf32>
    %60 = arith.subf %51, %59 : vector<8x8xf32>
    %61 = math.exp %60 : vector<8x8xf32>
    %c1_34 = arith.constant 1 : index
    %c0_35 = arith.constant 0 : index
    %c0_36 = arith.constant 0 : index
    %62 = vector.load %arg9[%c1_34, %c0_35, %c0_36] : memref<4x8x1xf32, #tpu.memory_space<vmem>>, vector<1x8x1xf32>
    %63 = vector.shape_cast %62 : vector<1x8x1xf32> to vector<8x1xf32>
    %64 = arith.mulf %58, %63 : vector<8x1xf32>
    %cst_37 = arith.constant dense<0.000000e+00> : vector<8xf32>
    %65 = vector.multi_reduction <add>, %61, %cst_37 [1] : vector<8x8xf32> to vector<8xf32>
    %66 = vector.shape_cast %65 : vector<8xf32> to vector<8x1xf32>
    %67 = arith.addf %64, %66 : vector<8x1xf32>
    %c1_38 = arith.constant 1 : index
    %c0_39 = arith.constant 0 : index
    %c0_40 = arith.constant 0 : index
    %68 = vector.load %arg9[%c1_38, %c0_39, %c0_40] : memref<4x8x1xf32, #tpu.memory_space<vmem>>, vector<1x8x1xf32>
    %69 = vector.shape_cast %68 : vector<1x8x1xf32> to vector<8x1xf32>
    %70 = vector.shape_cast %67 : vector<8x1xf32> to vector<1x8x1xf32>
    tpu.vector_store %arg9[%c1_38, %c0_39, %c0_40], %70 {strides = array<i32>} : memref<4x8x1xf32, #tpu.memory_space<vmem>>, vector<1x8x1xf32>,
    %c1_41 = arith.constant 1 : index
    %c0_42 = arith.constant 0 : index
    %c0_43 = arith.constant 0 : index
    %71 = vector.load %arg10[%c1_41, %c0_42, %c0_43] : memref<4x8x8xf32, #tpu.memory_space<vmem>>, vector<1x8x8xf32>
    %72 = vector.shape_cast %71 : vector<1x8x8xf32> to vector<8x8xf32>
    %73 = vector.broadcast %58 : vector<8x1xf32> to vector<8x8xf32>
    %74 = arith.mulf %73, %72 : vector<8x8xf32>
    %75 = arith.truncf %61 : vector<8x8xf32> to vector<8x8xbf16>
    %cst_44 = arith.constant dense<0.000000e+00> : vector<8x8xf32>
    %76 = tpu.matmul %75, %50, %cst_44 {dimension_numbers = #tpu.dot_dimension_numbers<[1], [0], [0], [1], [0, 0, 1, 1], [], []>} : vector<8x8xbf16>, vector<8x8xbf16>, vector<8x8xf32> -> vector<8x8xf32>
    %77 = arith.addf %74, %76 : vector<8x8xf32>
    %c1_45 = arith.constant 1 : index
    %c0_46 = arith.constant 0 : index
    %c0_47 = arith.constant 0 : index
    %78 = vector.load %arg10[%c1_45, %c0_46, %c0_47] : memref<4x8x8xf32, #tpu.memory_space<vmem>>, vector<1x8x8xf32>
    %79 = vector.shape_cast %78 : vector<1x8x8xf32> to vector<8x8xf32>
    %80 = vector.shape_cast %77 : vector<8x8xf32> to vector<1x8x8xf32>
    tpu.vector_store %arg10[%c1_45, %c0_46, %c0_47], %80 {strides = array<i32>} : memref<4x8x8xf32, #tpu.memory_space<vmem>>, vector<1x8x8xf32>,
    %c1_48 = arith.constant 1 : index
    %c0_49 = arith.constant 0 : index
    %c0_50 = arith.constant 0 : index
    %81 = vector.load %arg8[%c1_48, %c0_49, %c0_50] : memref<4x8x1xf32, #tpu.memory_space<vmem>>, vector<1x8x1xf32>
    %82 = vector.shape_cast %81 : vector<1x8x1xf32> to vector<8x1xf32>
    %83 = vector.shape_cast %56 : vector<8x1xf32> to vector<1x8x1xf32>
    tpu.vector_store %arg8[%c1_48, %c0_49, %c0_50], %83 {strides = array<i32>} : memref<4x8x1xf32, #tpu.memory_space<vmem>>, vector<1x8x1xf32>,
    %84 = vector.extract_strided_slice %5 {offsets = [0, 16], sizes = [8, 8], strides = [1, 1]} : vector<8x32xbf16> to vector<8x8xbf16>
    %85 = vector.extract_strided_slice %8 {offsets = [0, 16], sizes = [8, 8], strides = [1, 1]} : vector<8x32xbf16> to vector<8x8xbf16>
    %86 = vector.extract_strided_slice %11 {offsets = [0, 16], sizes = [8, 8], strides = [1, 1]} : vector<8x32xbf16> to vector<8x8xbf16>
    %cst_51 = arith.constant dense<0.000000e+00> : vector<8x8xf32>
    %87 = tpu.matmul %84, %85, %cst_51 {dimension_numbers = #tpu.dot_dimension_numbers<[1], [1], [0], [0], [0, 0, 1, 0], [], []>} : vector<8x8xbf16>, vector<8x8xbf16>, vector<8x8xf32> -> vector<8x8xf32>
    %c2 = arith.constant 2 : index
    %c0_52 = arith.constant 0 : index
    %c0_53 = arith.constant 0 : index
    %88 = vector.load %arg8[%c2, %c0_52, %c0_53] : memref<4x8x1xf32, #tpu.memory_space<vmem>>, vector<1x8x1xf32>
    %89 = vector.shape_cast %88 : vector<1x8x1xf32> to vector<8x1xf32>
    %cst_54 = arith.constant dense<0xFF800000> : vector<8xf32>
    %90 = vector.multi_reduction <maximumf>, %87, %cst_54 [1] : vector<8x8xf32> to vector<8xf32>
    %91 = vector.shape_cast %90 : vector<8xf32> to vector<8x1xf32>
    %92 = arith.maximumf %89, %91 : vector<8x1xf32>
    %93 = arith.subf %89, %92 : vector<8x1xf32>
    %94 = math.exp %93 : vector<8x1xf32>
    %95 = vector.broadcast %92 : vector<8x1xf32> to vector<8x8xf32>
    %96 = arith.subf %87, %95 : vector<8x8xf32>
    %97 = math.exp %96 : vector<8x8xf32>
    %c2_55 = arith.constant 2 : index
    %c0_56 = arith.constant 0 : index
    %c0_57 = arith.constant 0 : index
    %98 = vector.load %arg9[%c2_55, %c0_56, %c0_57] : memref<4x8x1xf32, #tpu.memory_space<vmem>>, vector<1x8x1xf32>
    %99 = vector.shape_cast %98 : vector<1x8x1xf32> to vector<8x1xf32>
    %100 = arith.mulf %94, %99 : vector<8x1xf32>
    %cst_58 = arith.constant dense<0.000000e+00> : vector<8xf32>
    %101 = vector.multi_reduction <add>, %97, %cst_58 [1] : vector<8x8xf32> to vector<8xf32>
    %102 = vector.shape_cast %101 : vector<8xf32> to vector<8x1xf32>
    %103 = arith.addf %100, %102 : vector<8x1xf32>
    %c2_59 = arith.constant 2 : index
    %c0_60 = arith.constant 0 : index
    %c0_61 = arith.constant 0 : index
    %104 = vector.load %arg9[%c2_59, %c0_60, %c0_61] : memref<4x8x1xf32, #tpu.memory_space<vmem>>, vector<1x8x1xf32>
    %105 = vector.shape_cast %104 : vector<1x8x1xf32> to vector<8x1xf32>
    %106 = vector.shape_cast %103 : vector<8x1xf32> to vector<1x8x1xf32>
    tpu.vector_store %arg9[%c2_59, %c0_60, %c0_61], %106 {strides = array<i32>} : memref<4x8x1xf32, #tpu.memory_space<vmem>>, vector<1x8x1xf32>,
    %c2_62 = arith.constant 2 : index
    %c0_63 = arith.constant 0 : index
    %c0_64 = arith.constant 0 : index
    %107 = vector.load %arg10[%c2_62, %c0_63, %c0_64] : memref<4x8x8xf32, #tpu.memory_space<vmem>>, vector<1x8x8xf32>
    %108 = vector.shape_cast %107 : vector<1x8x8xf32> to vector<8x8xf32>
    %109 = vector.broadcast %94 : vector<8x1xf32> to vector<8x8xf32>
    %110 = arith.mulf %109, %108 : vector<8x8xf32>
    %111 = arith.truncf %97 : vector<8x8xf32> to vector<8x8xbf16>
    %cst_65 = arith.constant dense<0.000000e+00> : vector<8x8xf32>
    %112 = tpu.matmul %111, %86, %cst_65 {dimension_numbers = #tpu.dot_dimension_numbers<[1], [0], [0], [1], [0, 0, 1, 1], [], []>} : vector<8x8xbf16>, vector<8x8xbf16>, vector<8x8xf32> -> vector<8x8xf32>
    %113 = arith.addf %110, %112 : vector<8x8xf32>
    %c2_66 = arith.constant 2 : index
    %c0_67 = arith.constant 0 : index
    %c0_68 = arith.constant 0 : index
    %114 = vector.load %arg10[%c2_66, %c0_67, %c0_68] : memref<4x8x8xf32, #tpu.memory_space<vmem>>, vector<1x8x8xf32>
    %115 = vector.shape_cast %114 : vector<1x8x8xf32> to vector<8x8xf32>
    %116 = vector.shape_cast %113 : vector<8x8xf32> to vector<1x8x8xf32>
    tpu.vector_store %arg10[%c2_66, %c0_67, %c0_68], %116 {strides = array<i32>} : memref<4x8x8xf32, #tpu.memory_space<vmem>>, vector<1x8x8xf32>,
    %c2_69 = arith.constant 2 : index
    %c0_70 = arith.constant 0 : index
    %c0_71 = arith.constant 0 : index
    %117 = vector.load %arg8[%c2_69, %c0_70, %c0_71] : memref<4x8x1xf32, #tpu.memory_space<vmem>>, vector<1x8x1xf32>
    %118 = vector.shape_cast %117 : vector<1x8x1xf32> to vector<8x1xf32>
    %119 = vector.shape_cast %92 : vector<8x1xf32> to vector<1x8x1xf32>
    tpu.vector_store %arg8[%c2_69, %c0_70, %c0_71], %119 {strides = array<i32>} : memref<4x8x1xf32, #tpu.memory_space<vmem>>, vector<1x8x1xf32>,
    %120 = vector.extract_strided_slice %5 {offsets = [0, 24], sizes = [8, 8], strides = [1, 1]} : vector<8x32xbf16> to vector<8x8xbf16>
    %121 = vector.extract_strided_slice %8 {offsets = [0, 24], sizes = [8, 8], strides = [1, 1]} : vector<8x32xbf16> to vector<8x8xbf16>
    %122 = vector.extract_strided_slice %11 {offsets = [0, 24], sizes = [8, 8], strides = [1, 1]} : vector<8x32xbf16> to vector<8x8xbf16>
    %cst_72 = arith.constant dense<0.000000e+00> : vector<8x8xf32>
    %123 = tpu.matmul %120, %121, %cst_72 {dimension_numbers = #tpu.dot_dimension_numbers<[1], [1], [0], [0], [0, 0, 1, 0], [], []>} : vector<8x8xbf16>, vector<8x8xbf16>, vector<8x8xf32> -> vector<8x8xf32>
    %c3 = arith.constant 3 : index
    %c0_73 = arith.constant 0 : index
    %c0_74 = arith.constant 0 : index
    %124 = vector.load %arg8[%c3, %c0_73, %c0_74] : memref<4x8x1xf32, #tpu.memory_space<vmem>>, vector<1x8x1xf32>
    %125 = vector.shape_cast %124 : vector<1x8x1xf32> to vector<8x1xf32>
    %cst_75 = arith.constant dense<0xFF800000> : vector<8xf32>
    %126 = vector.multi_reduction <maximumf>, %123, %cst_75 [1] : vector<8x8xf32> to vector<8xf32>
    %127 = vector.shape_cast %126 : vector<8xf32> to vector<8x1xf32>
    %128 = arith.maximumf %125, %127 : vector<8x1xf32>
    %129 = arith.subf %125, %128 : vector<8x1xf32>
    %130 = math.exp %129 : vector<8x1xf32>
    %131 = vector.broadcast %128 : vector<8x1xf32> to vector<8x8xf32>
    %132 = arith.subf %123, %131 : vector<8x8xf32>
    %133 = math.exp %132 : vector<8x8xf32>
    %c3_76 = arith.constant 3 : index
    %c0_77 = arith.constant 0 : index
    %c0_78 = arith.constant 0 : index
    %134 = vector.load %arg9[%c3_76, %c0_77, %c0_78] : memref<4x8x1xf32, #tpu.memory_space<vmem>>, vector<1x8x1xf32>
    %135 = vector.shape_cast %134 : vector<1x8x1xf32> to vector<8x1xf32>
    %136 = arith.mulf %130, %135 : vector<8x1xf32>
    %cst_79 = arith.constant dense<0.000000e+00> : vector<8xf32>
    %137 = vector.multi_reduction <add>, %133, %cst_79 [1] : vector<8x8xf32> to vector<8xf32>
    %138 = vector.shape_cast %137 : vector<8xf32> to vector<8x1xf32>
    %139 = arith.addf %136, %138 : vector<8x1xf32>
    %c3_80 = arith.constant 3 : index
    %c0_81 = arith.constant 0 : index
    %c0_82 = arith.constant 0 : index
    %140 = vector.load %arg9[%c3_80, %c0_81, %c0_82] : memref<4x8x1xf32, #tpu.memory_space<vmem>>, vector<1x8x1xf32>
    %141 = vector.shape_cast %140 : vector<1x8x1xf32> to vector<8x1xf32>
    %142 = vector.shape_cast %139 : vector<8x1xf32> to vector<1x8x1xf32>
    tpu.vector_store %arg9[%c3_80, %c0_81, %c0_82], %142 {strides = array<i32>} : memref<4x8x1xf32, #tpu.memory_space<vmem>>, vector<1x8x1xf32>,
    %c3_83 = arith.constant 3 : index
    %c0_84 = arith.constant 0 : index
    %c0_85 = arith.constant 0 : index
    %143 = vector.load %arg10[%c3_83, %c0_84, %c0_85] : memref<4x8x8xf32, #tpu.memory_space<vmem>>, vector<1x8x8xf32>
    %144 = vector.shape_cast %143 : vector<1x8x8xf32> to vector<8x8xf32>
    %145 = vector.broadcast %130 : vector<8x1xf32> to vector<8x8xf32>
    %146 = arith.mulf %145, %144 : vector<8x8xf32>
    %147 = arith.truncf %133 : vector<8x8xf32> to vector<8x8xbf16>
    %cst_86 = arith.constant dense<0.000000e+00> : vector<8x8xf32>
    %148 = tpu.matmul %147, %122, %cst_86 {dimension_numbers = #tpu.dot_dimension_numbers<[1], [0], [0], [1], [0, 0, 1, 1], [], []>} : vector<8x8xbf16>, vector<8x8xbf16>, vector<8x8xf32> -> vector<8x8xf32>
    %149 = arith.addf %146, %148 : vector<8x8xf32>
    %c3_87 = arith.constant 3 : index
    %c0_88 = arith.constant 0 : index
    %c0_89 = arith.constant 0 : index
    %150 = vector.load %arg10[%c3_87, %c0_88, %c0_89] : memref<4x8x8xf32, #tpu.memory_space<vmem>>, vector<1x8x8xf32>
    %151 = vector.shape_cast %150 : vector<1x8x8xf32> to vector<8x8xf32>
    %152 = vector.shape_cast %149 : vector<8x8xf32> to vector<1x8x8xf32>
    tpu.vector_store %arg10[%c3_87, %c0_88, %c0_89], %152 {strides = array<i32>} : memref<4x8x8xf32, #tpu.memory_space<vmem>>, vector<1x8x8xf32>,
    %c3_90 = arith.constant 3 : index
    %c0_91 = arith.constant 0 : index
    %c0_92 = arith.constant 0 : index
    %153 = vector.load %arg8[%c3_90, %c0_91, %c0_92] : memref<4x8x1xf32, #tpu.memory_space<vmem>>, vector<1x8x1xf32>
    %154 = vector.shape_cast %153 : vector<1x8x1xf32> to vector<8x1xf32>
    %155 = vector.shape_cast %128 : vector<8x1xf32> to vector<1x8x1xf32>
    tpu.vector_store %arg8[%c3_90, %c0_91, %c0_92], %155 {strides = array<i32>} : memref<4x8x1xf32, #tpu.memory_space<vmem>>, vector<1x8x1xf32>,
    %c0_i32_93 = arith.constant 0 : i32
    %156 = arith.cmpi eq, %arg3, %c0_i32_93 : i32
    %157 = arith.extui %156 : i1 to i32
    %c0_i32_94 = arith.constant 0 : i32
    %158 = arith.cmpi ne, %157, %c0_i32_94 : i32
    scf.if %158 {
      %c0_95 = arith.constant 0 : index
      %c0_96 = arith.constant 0 : index
      %c0_97 = arith.constant 0 : index
      %159 = vector.load %arg9[%c0_95, %c0_96, %c0_97] : memref<4x8x1xf32, #tpu.memory_space<vmem>>, vector<1x8x1xf32>
      %160 = vector.shape_cast %159 : vector<1x8x1xf32> to vector<8x1xf32>
      %161 = tpu.reciprocal %160 {approx = true} : vector<8x1xf32> -> vector<8x1xf32>
      %c0_98 = arith.constant 0 : index
      %c0_99 = arith.constant 0 : index
      %c0_100 = arith.constant 0 : index
      %162 = vector.load %arg10[%c0_98, %c0_99, %c0_100] : memref<4x8x8xf32, #tpu.memory_space<vmem>>, vector<1x8x8xf32>
      %163 = vector.shape_cast %162 : vector<1x8x8xf32> to vector<8x8xf32>
      %164 = vector.broadcast %161 : vector<8x1xf32> to vector<8x8xf32>
      %165 = arith.mulf %163, %164 : vector<8x8xf32>
      %c1_101 = arith.constant 1 : index
      %c0_102 = arith.constant 0 : index
      %c0_103 = arith.constant 0 : index
      %166 = vector.load %arg9[%c1_101, %c0_102, %c0_103] : memref<4x8x1xf32, #tpu.memory_space<vmem>>, vector<1x8x1xf32>
      %167 = vector.shape_cast %166 : vector<1x8x1xf32> to vector<8x1xf32>
      %168 = tpu.reciprocal %167 {approx = true} : vector<8x1xf32> -> vector<8x1xf32>
      %c1_104 = arith.constant 1 : index
      %c0_105 = arith.constant 0 : index
      %c0_106 = arith.constant 0 : index
      %169 = vector.load %arg10[%c1_104, %c0_105, %c0_106] : memref<4x8x8xf32, #tpu.memory_space<vmem>>, vector<1x8x8xf32>
      %170 = vector.shape_cast %169 : vector<1x8x8xf32> to vector<8x8xf32>
      %171 = vector.broadcast %168 : vector<8x1xf32> to vector<8x8xf32>
      %172 = arith.mulf %170, %171 : vector<8x8xf32>
      %c2_107 = arith.constant 2 : index
      %c0_108 = arith.constant 0 : index
      %c0_109 = arith.constant 0 : index
      %173 = vector.load %arg9[%c2_107, %c0_108, %c0_109] : memref<4x8x1xf32, #tpu.memory_space<vmem>>, vector<1x8x1xf32>
      %174 = vector.shape_cast %173 : vector<1x8x1xf32> to vector<8x1xf32>
      %175 = tpu.reciprocal %174 {approx = true} : vector<8x1xf32> -> vector<8x1xf32>
      %c2_110 = arith.constant 2 : index
      %c0_111 = arith.constant 0 : index
      %c0_112 = arith.constant 0 : index
      %176 = vector.load %arg10[%c2_110, %c0_111, %c0_112] : memref<4x8x8xf32, #tpu.memory_space<vmem>>, vector<1x8x8xf32>
      %177 = vector.shape_cast %176 : vector<1x8x8xf32> to vector<8x8xf32>
      %178 = vector.broadcast %175 : vector<8x1xf32> to vector<8x8xf32>
      %179 = arith.mulf %177, %178 : vector<8x8xf32>
      %c3_113 = arith.constant 3 : index
      %c0_114 = arith.constant 0 : index
      %c0_115 = arith.constant 0 : index
      %180 = vector.load %arg9[%c3_113, %c0_114, %c0_115] : memref<4x8x1xf32, #tpu.memory_space<vmem>>, vector<1x8x1xf32>
      %181 = vector.shape_cast %180 : vector<1x8x1xf32> to vector<8x1xf32>
      %182 = tpu.reciprocal %181 {approx = true} : vector<8x1xf32> -> vector<8x1xf32>
      %c3_116 = arith.constant 3 : index
      %c0_117 = arith.constant 0 : index
      %c0_118 = arith.constant 0 : index
      %183 = vector.load %arg10[%c3_116, %c0_117, %c0_118] : memref<4x8x8xf32, #tpu.memory_space<vmem>>, vector<1x8x8xf32>
      %184 = vector.shape_cast %183 : vector<1x8x8xf32> to vector<8x8xf32>
      %185 = vector.broadcast %182 : vector<8x1xf32> to vector<8x8xf32>
      %186 = arith.mulf %184, %185 : vector<8x8xf32>
      %187 = tpu.concatenate %165, %172, %179, %186 in 1 : vector<8x8xf32>, vector<8x8xf32>, vector<8x8xf32>, vector<8x8xf32> -> vector<8x32xf32>
      %c0_119 = arith.constant 0 : index
      %c0_120 = arith.constant 0 : index
      %c0_121 = arith.constant 0 : index
      %188 = vector.load %arg7[%c0_119, %c0_120, %c0_121] : memref<1x8x32xf32, #tpu.memory_space<vmem>>, vector<1x8x32xf32>
      %189 = vector.shape_cast %188 : vector<1x8x32xf32> to vector<8x32xf32>
      %190 = vector.shape_cast %187 : vector<8x32xf32> to vector<1x8x32xf32>
      tpu.vector_store %arg7[%c0_119, %c0_120, %c0_121], %190 {strides = array<i32>} : memref<1x8x32xf32, #tpu.memory_space<vmem>>, vector<1x8x32xf32>,
    } else {
    }
    return
  }
  func.func @transform_0(%arg0: i32, %arg1: i32, %arg2: i32, %arg3: i32) -> (i32, i32, i32) {
    %c0_i32 = arith.constant 0 : i32
    return %arg0, %arg2, %arg1 : i32, i32, i32
  }
  func.func @transform_1(%arg0: i32, %arg1: i32, %arg2: i32, %arg3: i32) -> (i32, i32, i32) {
    %c0_i32 = arith.constant 0 : i32
    return %arg0, %arg3, %arg1 : i32, i32, i32
  }
  func.func @transform_2(%arg0: i32, %arg1: i32, %arg2: i32, %arg3: i32) -> (i32, i32, i32) {
    %c0_i32 = arith.constant 0 : i32
    return %arg0, %arg3, %arg1 : i32, i32, i32
  }
  func.func @transform_3(%arg0: i32, %arg1: i32, %arg2: i32, %arg3: i32) -> (i32, i32, i32) {
    %c0_i32 = arith.constant 0 : i32
    return %arg0, %arg2, %arg1 : i32, i32, i32
  }
}

module attributes {stable_mosaic.version = 11 : i64} {
  func.func @_linear_kernel(%arg0: i32, %arg1: i32, %arg2: i32, %arg3: memref<16x32xf32, #tpu.memory_space<vmem>>, %arg4: memref<32x32xbf16, #tpu.memory_space<vmem>>, %arg5: memref<1x32xf32, #tpu.memory_space<vmem>>, %arg6: memref<16x32xf32, #tpu.memory_space<vmem>>, %arg7: memref<16x32xf32, #tpu.memory_space<vmem>>, %arg8: memref<16x32xf32, #tpu.memory_space<vmem>>) attributes {dimension_semantics = [#tpu.dimension_semantics<parallel>, #tpu.dimension_semantics<parallel>, #tpu.dimension_semantics<arbitrary>], iteration_bounds = array<i64: 1, 1, 1>, scalar_prefetch = 0 : i64, scratch_operands = 1 : i64, tpu.core_type = #tpu.core_type<tc>, window_params = [{transform_indices = @transform_0, window_bounds = array<i64: 16, 32>}, {transform_indices = @transform_1, window_bounds = array<i64: 32, 32>}, {transform_indices = @transform_2, window_bounds = array<i64: 1, 32>}, {transform_indices = @transform_3, window_bounds = array<i64: 16, 32>}, {transform_indices = @transform_4, window_bounds = array<i64: 16, 32>}]} {
    %c0_i32 = arith.constant 0 : i32
    %0 = arith.cmpi eq, %arg2, %c0_i32 : i32
    %1 = arith.extui %0 : i1 to i32
    %c0_i32_0 = arith.constant 0 : i32
    %2 = arith.cmpi ne, %1, %c0_i32_0 : i32
    scf.if %2 {
      %cst_10 = arith.constant 0.000000e+00 : f32
      %13 = vector.broadcast %cst_10 : f32 to vector<16x32xf32>
      %c0_11 = arith.constant 0 : index
      %c0_12 = arith.constant 0 : index
      %14 = vector.load %arg8[%c0_11, %c0_12] : memref<16x32xf32, #tpu.memory_space<vmem>>, vector<16x32xf32>
      tpu.vector_store %arg8[%c0_11, %c0_12], %13 {strides = array<i32>} : memref<16x32xf32, #tpu.memory_space<vmem>>, vector<16x32xf32>,
    } else {
    }
    %c0 = arith.constant 0 : index
    %c0_1 = arith.constant 0 : index
    %3 = vector.load %arg8[%c0, %c0_1] : memref<16x32xf32, #tpu.memory_space<vmem>>, vector<16x32xf32>
    %c0_2 = arith.constant 0 : index
    %c0_3 = arith.constant 0 : index
    %4 = vector.load %arg3[%c0_2, %c0_3] : memref<16x32xf32, #tpu.memory_space<vmem>>, vector<16x32xf32>
    %5 = arith.truncf %4 : vector<16x32xf32> to vector<16x32xbf16>
    %c0_4 = arith.constant 0 : index
    %c0_5 = arith.constant 0 : index
    %6 = vector.load %arg4[%c0_4, %c0_5] : memref<32x32xbf16, #tpu.memory_space<vmem>>, vector<32x32xbf16>
    %cst = arith.constant dense<0.000000e+00> : vector<16x32xf32>
    %7 = tpu.matmul %5, %6, %cst {dimension_numbers = #tpu.dot_dimension_numbers<[1], [0], [0], [1], [0, 0, 1, 1], [], []>} : vector<16x32xbf16>, vector<32x32xbf16>, vector<16x32xf32> -> vector<16x32xf32>
    %8 = arith.addf %3, %7 : vector<16x32xf32>
    %c0_6 = arith.constant 0 : index
    %c0_7 = arith.constant 0 : index
    %9 = vector.load %arg8[%c0_6, %c0_7] : memref<16x32xf32, #tpu.memory_space<vmem>>, vector<16x32xf32>
    tpu.vector_store %arg8[%c0_6, %c0_7], %8 {strides = array<i32>} : memref<16x32xf32, #tpu.memory_space<vmem>>, vector<16x32xf32>,
    %c0_i32_8 = arith.constant 0 : i32
    %10 = arith.cmpi eq, %arg2, %c0_i32_8 : i32
    %11 = arith.extui %10 : i1 to i32
    %c0_i32_9 = arith.constant 0 : i32
    %12 = arith.cmpi ne, %11, %c0_i32_9 : i32
    scf.if %12 {
      %c0_10 = arith.constant 0 : index
      %c0_11 = arith.constant 0 : index
      %13 = vector.load %arg8[%c0_10, %c0_11] : memref<16x32xf32, #tpu.memory_space<vmem>>, vector<16x32xf32>
      %c0_12 = arith.constant 0 : index
      %c0_13 = arith.constant 0 : index
      %14 = vector.load %arg5[%c0_12, %c0_13] : memref<1x32xf32, #tpu.memory_space<vmem>>, vector<1x32xf32>
      %15 = vector.broadcast %14 : vector<1x32xf32> to vector<16x32xf32>
      %16 = arith.addf %13, %15 : vector<16x32xf32>
      %c0_14 = arith.constant 0 : index
      %c0_15 = arith.constant 0 : index
      %17 = vector.load %arg6[%c0_14, %c0_15] : memref<16x32xf32, #tpu.memory_space<vmem>>, vector<16x32xf32>
      %18 = arith.addf %16, %17 : vector<16x32xf32>
      %c0_16 = arith.constant 0 : index
      %c0_17 = arith.constant 0 : index
      %19 = vector.load %arg7[%c0_16, %c0_17] : memref<16x32xf32, #tpu.memory_space<vmem>>, vector<16x32xf32>
      tpu.vector_store %arg7[%c0_16, %c0_17], %18 {strides = array<i32>} : memref<16x32xf32, #tpu.memory_space<vmem>>, vector<16x32xf32>,
    } else {
    }
    return
  }
  func.func @transform_0(%arg0: i32, %arg1: i32, %arg2: i32) -> (i32, i32) {
    %c0_i32 = arith.constant 0 : i32
    return %arg0, %arg2 : i32, i32
  }
  func.func @transform_1(%arg0: i32, %arg1: i32, %arg2: i32) -> (i32, i32) {
    %c0_i32 = arith.constant 0 : i32
    return %arg2, %arg1 : i32, i32
  }
  func.func @transform_2(%arg0: i32, %arg1: i32, %arg2: i32) -> (i32, i32) {
    %c0_i32 = arith.constant 0 : i32
    %c0_i32_0 = arith.constant 0 : i32
    return %c0_i32, %arg1 : i32, i32
  }
  func.func @transform_3(%arg0: i32, %arg1: i32, %arg2: i32) -> (i32, i32) {
    %c0_i32 = arith.constant 0 : i32
    return %arg0, %arg1 : i32, i32
  }
  func.func @transform_4(%arg0: i32, %arg1: i32, %arg2: i32) -> (i32, i32) {
    %c0_i32 = arith.constant 0 : i32
    return %arg0, %arg1 : i32, i32
  }
}

module attributes {stable_mosaic.version = 11 : i64} {
  func.func @_linear_kernel(%arg0: i32, %arg1: i32, %arg2: i32, %arg3: memref<16x128xf32, #tpu.memory_space<vmem>>, %arg4: memref<128x32xbf16, #tpu.memory_space<vmem>>, %arg5: memref<1x32xf32, #tpu.memory_space<vmem>>, %arg6: memref<16x32xf32, #tpu.memory_space<vmem>>, %arg7: memref<16x32xf32, #tpu.memory_space<vmem>>, %arg8: memref<16x32xf32, #tpu.memory_space<vmem>>) attributes {dimension_semantics = [#tpu.dimension_semantics<parallel>, #tpu.dimension_semantics<parallel>, #tpu.dimension_semantics<arbitrary>], iteration_bounds = array<i64: 1, 1, 1>, scalar_prefetch = 0 : i64, scratch_operands = 1 : i64, tpu.core_type = #tpu.core_type<tc>, window_params = [{transform_indices = @transform_0, window_bounds = array<i64: 16, 128>}, {transform_indices = @transform_1, window_bounds = array<i64: 128, 32>}, {transform_indices = @transform_2, window_bounds = array<i64: 1, 32>}, {transform_indices = @transform_3, window_bounds = array<i64: 16, 32>}, {transform_indices = @transform_4, window_bounds = array<i64: 16, 32>}]} {
    %c0_i32 = arith.constant 0 : i32
    %0 = arith.cmpi eq, %arg2, %c0_i32 : i32
    %1 = arith.extui %0 : i1 to i32
    %c0_i32_0 = arith.constant 0 : i32
    %2 = arith.cmpi ne, %1, %c0_i32_0 : i32
    scf.if %2 {
      %cst_10 = arith.constant 0.000000e+00 : f32
      %13 = vector.broadcast %cst_10 : f32 to vector<16x32xf32>
      %c0_11 = arith.constant 0 : index
      %c0_12 = arith.constant 0 : index
      %14 = vector.load %arg8[%c0_11, %c0_12] : memref<16x32xf32, #tpu.memory_space<vmem>>, vector<16x32xf32>
      tpu.vector_store %arg8[%c0_11, %c0_12], %13 {strides = array<i32>} : memref<16x32xf32, #tpu.memory_space<vmem>>, vector<16x32xf32>,
    } else {
    }
    %c0 = arith.constant 0 : index
    %c0_1 = arith.constant 0 : index
    %3 = vector.load %arg8[%c0, %c0_1] : memref<16x32xf32, #tpu.memory_space<vmem>>, vector<16x32xf32>
    %c0_2 = arith.constant 0 : index
    %c0_3 = arith.constant 0 : index
    %4 = vector.load %arg3[%c0_2, %c0_3] : memref<16x128xf32, #tpu.memory_space<vmem>>, vector<16x128xf32>
    %5 = arith.truncf %4 : vector<16x128xf32> to vector<16x128xbf16>
    %c0_4 = arith.constant 0 : index
    %c0_5 = arith.constant 0 : index
    %6 = vector.load %arg4[%c0_4, %c0_5] : memref<128x32xbf16, #tpu.memory_space<vmem>>, vector<128x32xbf16>
    %cst = arith.constant dense<0.000000e+00> : vector<16x32xf32>
    %7 = tpu.matmul %5, %6, %cst {dimension_numbers = #tpu.dot_dimension_numbers<[1], [0], [0], [1], [0, 0, 1, 1], [], []>} : vector<16x128xbf16>, vector<128x32xbf16>, vector<16x32xf32> -> vector<16x32xf32>
    %8 = arith.addf %3, %7 : vector<16x32xf32>
    %c0_6 = arith.constant 0 : index
    %c0_7 = arith.constant 0 : index
    %9 = vector.load %arg8[%c0_6, %c0_7] : memref<16x32xf32, #tpu.memory_space<vmem>>, vector<16x32xf32>
    tpu.vector_store %arg8[%c0_6, %c0_7], %8 {strides = array<i32>} : memref<16x32xf32, #tpu.memory_space<vmem>>, vector<16x32xf32>,
    %c0_i32_8 = arith.constant 0 : i32
    %10 = arith.cmpi eq, %arg2, %c0_i32_8 : i32
    %11 = arith.extui %10 : i1 to i32
    %c0_i32_9 = arith.constant 0 : i32
    %12 = arith.cmpi ne, %11, %c0_i32_9 : i32
    scf.if %12 {
      %c0_10 = arith.constant 0 : index
      %c0_11 = arith.constant 0 : index
      %13 = vector.load %arg8[%c0_10, %c0_11] : memref<16x32xf32, #tpu.memory_space<vmem>>, vector<16x32xf32>
      %c0_12 = arith.constant 0 : index
      %c0_13 = arith.constant 0 : index
      %14 = vector.load %arg5[%c0_12, %c0_13] : memref<1x32xf32, #tpu.memory_space<vmem>>, vector<1x32xf32>
      %15 = vector.broadcast %14 : vector<1x32xf32> to vector<16x32xf32>
      %16 = arith.addf %13, %15 : vector<16x32xf32>
      %c0_14 = arith.constant 0 : index
      %c0_15 = arith.constant 0 : index
      %17 = vector.load %arg6[%c0_14, %c0_15] : memref<16x32xf32, #tpu.memory_space<vmem>>, vector<16x32xf32>
      %18 = arith.addf %16, %17 : vector<16x32xf32>
      %c0_16 = arith.constant 0 : index
      %c0_17 = arith.constant 0 : index
      %19 = vector.load %arg7[%c0_16, %c0_17] : memref<16x32xf32, #tpu.memory_space<vmem>>, vector<16x32xf32>
      tpu.vector_store %arg7[%c0_16, %c0_17], %18 {strides = array<i32>} : memref<16x32xf32, #tpu.memory_space<vmem>>, vector<16x32xf32>,
    } else {
    }
    return
  }
  func.func @transform_0(%arg0: i32, %arg1: i32, %arg2: i32) -> (i32, i32) {
    %c0_i32 = arith.constant 0 : i32
    return %arg0, %arg2 : i32, i32
  }
  func.func @transform_1(%arg0: i32, %arg1: i32, %arg2: i32) -> (i32, i32) {
    %c0_i32 = arith.constant 0 : i32
    return %arg2, %arg1 : i32, i32
  }
  func.func @transform_2(%arg0: i32, %arg1: i32, %arg2: i32) -> (i32, i32) {
    %c0_i32 = arith.constant 0 : i32
    %c0_i32_0 = arith.constant 0 : i32
    return %c0_i32, %arg1 : i32, i32
  }
  func.func @transform_3(%arg0: i32, %arg1: i32, %arg2: i32) -> (i32, i32) {
    %c0_i32 = arith.constant 0 : i32
    return %arg0, %arg1 : i32, i32
  }
  func.func @transform_4(%arg0: i32, %arg1: i32, %arg2: i32) -> (i32, i32) {
    %c0_i32 = arith.constant 0 : i32
    return %arg0, %arg1 : i32, i32
  }
}

module attributes {stable_mosaic.version = 11 : i64} {
  func.func @_ln_linear_kernel(%arg0: i32, %arg1: i32, %arg2: memref<16x32xf32, #tpu.memory_space<vmem>>, %arg3: memref<1x32xf32, #tpu.memory_space<vmem>>, %arg4: memref<1x32xf32, #tpu.memory_space<vmem>>, %arg5: memref<32x128xbf16, #tpu.memory_space<vmem>>, %arg6: memref<1x128xf32, #tpu.memory_space<vmem>>, %arg7: memref<16x128xf32, #tpu.memory_space<vmem>>) attributes {dimension_semantics = [#tpu.dimension_semantics<parallel>, #tpu.dimension_semantics<parallel>], iteration_bounds = array<i64: 1, 1>, scalar_prefetch = 0 : i64, scratch_operands = 0 : i64, tpu.core_type = #tpu.core_type<tc>, window_params = [{transform_indices = @transform_0, window_bounds = array<i64: 16, 32>}, {pipeline_mode = #tpu.pipeline_mode<synchronous>, transform_indices = @transform_1, window_bounds = array<i64: 1, 32>}, {pipeline_mode = #tpu.pipeline_mode<synchronous>, transform_indices = @transform_2, window_bounds = array<i64: 1, 32>}, {transform_indices = @transform_3, window_bounds = array<i64: 32, 128>}, {transform_indices = @transform_4, window_bounds = array<i64: 1, 128>}, {transform_indices = @transform_5, window_bounds = array<i64: 16, 128>}]} {
    %c0 = arith.constant 0 : index
    %c0_0 = arith.constant 0 : index
    %0 = vector.load %arg2[%c0, %c0_0] : memref<16x32xf32, #tpu.memory_space<vmem>>, vector<16x32xf32>
    %c0_1 = arith.constant 0 : index
    %c0_2 = arith.constant 0 : index
    %1 = vector.load %arg3[%c0_1, %c0_2] : memref<1x32xf32, #tpu.memory_space<vmem>>, vector<1x32xf32>
    %c0_3 = arith.constant 0 : index
    %c0_4 = arith.constant 0 : index
    %2 = vector.load %arg4[%c0_3, %c0_4] : memref<1x32xf32, #tpu.memory_space<vmem>>, vector<1x32xf32>
    %cst = arith.constant dense<0.000000e+00> : vector<16xf32>
    %3 = vector.multi_reduction <add>, %0, %cst [1] : vector<16x32xf32> to vector<16xf32>
    %4 = vector.shape_cast %3 : vector<16xf32> to vector<16x1xf32>
    %cst_5 = arith.constant 3.200000e+01 : f32
    %5 = vector.broadcast %cst_5 : f32 to vector<16x1xf32>
    %6 = arith.divf %4, %5 : vector<16x1xf32>
    %7 = vector.broadcast %6 : vector<16x1xf32> to vector<16x32xf32>
    %8 = arith.subf %0, %7 : vector<16x32xf32>
    %9 = arith.mulf %8, %8 : vector<16x32xf32>
    %cst_6 = arith.constant dense<0.000000e+00> : vector<16xf32>
    %10 = vector.multi_reduction <add>, %9, %cst_6 [1] : vector<16x32xf32> to vector<16xf32>
    %11 = vector.shape_cast %10 : vector<16xf32> to vector<16x1xf32>
    %cst_7 = arith.constant 3.200000e+01 : f32
    %12 = vector.broadcast %cst_7 : f32 to vector<16x1xf32>
    %13 = arith.divf %11, %12 : vector<16x1xf32>
    %cst_8 = arith.constant 9.99999974E-6 : f32
    %14 = vector.broadcast %cst_8 : f32 to vector<16x1xf32>
    %15 = arith.addf %13, %14 : vector<16x1xf32>
    %16 = math.rsqrt %15 : vector<16x1xf32>
    %17 = vector.broadcast %16 : vector<16x1xf32> to vector<16x32xf32>
    %18 = arith.mulf %8, %17 : vector<16x32xf32>
    %19 = vector.broadcast %1 : vector<1x32xf32> to vector<16x32xf32>
    %20 = arith.mulf %18, %19 : vector<16x32xf32>
    %21 = vector.broadcast %2 : vector<1x32xf32> to vector<16x32xf32>
    %22 = arith.addf %20, %21 : vector<16x32xf32>
    %23 = arith.truncf %22 : vector<16x32xf32> to vector<16x32xbf16>
    %c0_9 = arith.constant 0 : index
    %c0_10 = arith.constant 0 : index
    %24 = vector.load %arg5[%c0_9, %c0_10] : memref<32x128xbf16, #tpu.memory_space<vmem>>, vector<32x128xbf16>
    %cst_11 = arith.constant dense<0.000000e+00> : vector<16x128xf32>
    %25 = tpu.matmul %23, %24, %cst_11 {dimension_numbers = #tpu.dot_dimension_numbers<[1], [0], [0], [1], [0, 0, 1, 1], [], []>} : vector<16x32xbf16>, vector<32x128xbf16>, vector<16x128xf32> -> vector<16x128xf32>
    %c0_12 = arith.constant 0 : index
    %c0_13 = arith.constant 0 : index
    %26 = vector.load %arg6[%c0_12, %c0_13] : memref<1x128xf32, #tpu.memory_space<vmem>>, vector<1x128xf32>
    %27 = vector.broadcast %26 : vector<1x128xf32> to vector<16x128xf32>
    %28 = arith.addf %25, %27 : vector<16x128xf32>
    %cst_14 = arith.constant 5.000000e-01 : f32
    %29 = vector.broadcast %cst_14 : f32 to vector<16x128xf32>
    %30 = arith.mulf %29, %28 : vector<16x128xf32>
    %cst_15 = arith.constant 0.707106769 : f32
    %31 = vector.broadcast %cst_15 : f32 to vector<16x128xf32>
    %32 = arith.mulf %28, %31 : vector<16x128xf32>
    %cst_16 = arith.constant 0.000000e+00 : f32
    %33 = vector.broadcast %cst_16 : f32 to vector<16x128xf32>
    %34 = arith.cmpf oge, %32, %33 : vector<16x128xf32>
    %cst_17 = arith.constant 1.000000e+00 : f32
    %cst_18 = arith.constant -1.000000e+00 : f32
    %35 = vector.broadcast %cst_17 : f32 to vector<16x128xf32>
    %36 = vector.broadcast %cst_18 : f32 to vector<16x128xf32>
    %37 = arith.select %34, %35, %36 : vector<16x128xi1>, vector<16x128xf32>
    %38 = math.absf %32 : vector<16x128xf32>
    %cst_19 = arith.constant 0.327591091 : f32
    %39 = vector.broadcast %cst_19 : f32 to vector<16x128xf32>
    %40 = arith.mulf %39, %38 : vector<16x128xf32>
    %cst_20 = arith.constant 1.000000e+00 : f32
    %41 = vector.broadcast %cst_20 : f32 to vector<16x128xf32>
    %42 = arith.addf %41, %40 : vector<16x128xf32>
    %cst_21 = arith.constant 1.000000e+00 : f32
    %43 = vector.broadcast %cst_21 : f32 to vector<16x128xf32>
    %44 = arith.divf %43, %42 : vector<16x128xf32>
    %cst_22 = arith.constant 1.06140542 : f32
    %45 = vector.broadcast %cst_22 : f32 to vector<16x128xf32>
    %46 = arith.mulf %45, %44 : vector<16x128xf32>
    %cst_23 = arith.constant -1.45315206 : f32
    %47 = vector.broadcast %cst_23 : f32 to vector<16x128xf32>
    %48 = arith.addf %46, %47 : vector<16x128xf32>
    %49 = arith.mulf %48, %44 : vector<16x128xf32>
    %cst_24 = arith.constant 1.42141378 : f32
    %50 = vector.broadcast %cst_24 : f32 to vector<16x128xf32>
    %51 = arith.addf %49, %50 : vector<16x128xf32>
    %52 = arith.mulf %51, %44 : vector<16x128xf32>
    %cst_25 = arith.constant -0.284496725 : f32
    %53 = vector.broadcast %cst_25 : f32 to vector<16x128xf32>
    %54 = arith.addf %52, %53 : vector<16x128xf32>
    %55 = arith.mulf %54, %44 : vector<16x128xf32>
    %cst_26 = arith.constant 0.254829586 : f32
    %56 = vector.broadcast %cst_26 : f32 to vector<16x128xf32>
    %57 = arith.addf %55, %56 : vector<16x128xf32>
    %58 = arith.mulf %57, %44 : vector<16x128xf32>
    %cst_27 = arith.constant 0.000000e+00 : f32
    %59 = vector.broadcast %cst_27 : f32 to vector<16x128xf32>
    %60 = arith.subf %59, %38 : vector<16x128xf32>
    %61 = arith.mulf %60, %38 : vector<16x128xf32>
    %62 = math.exp %61 : vector<16x128xf32>
    %63 = arith.mulf %58, %62 : vector<16x128xf32>
    %cst_28 = arith.constant 1.000000e+00 : f32
    %64 = vector.broadcast %cst_28 : f32 to vector<16x128xf32>
    %65 = arith.subf %64, %63 : vector<16x128xf32>
    %66 = arith.mulf %37, %65 : vector<16x128xf32>
    %cst_29 = arith.constant 1.000000e+00 : f32
    %67 = vector.broadcast %cst_29 : f32 to vector<16x128xf32>
    %68 = arith.addf %67, %66 : vector<16x128xf32>
    %69 = arith.mulf %30, %68 : vector<16x128xf32>
    %c0_30 = arith.constant 0 : index
    %c0_31 = arith.constant 0 : index
    %70 = vector.load %arg7[%c0_30, %c0_31] : memref<16x128xf32, #tpu.memory_space<vmem>>, vector<16x128xf32>
    tpu.vector_store %arg7[%c0_30, %c0_31], %69 {strides = array<i32>} : memref<16x128xf32, #tpu.memory_space<vmem>>, vector<16x128xf32>,
    return
  }
  func.func @transform_0(%arg0: i32, %arg1: i32) -> (i32, i32) {
    %c0_i32 = arith.constant 0 : i32
    %c0_i32_0 = arith.constant 0 : i32
    return %arg0, %c0_i32 : i32, i32
  }
  func.func @transform_1(%arg0: i32, %arg1: i32) -> (i32, i32) {
    %c0_i32 = arith.constant 0 : i32
    %c0_i32_0 = arith.constant 0 : i32
    %c0_i32_1 = arith.constant 0 : i32
    return %c0_i32, %c0_i32_0 : i32, i32
  }
  func.func @transform_2(%arg0: i32, %arg1: i32) -> (i32, i32) {
    %c0_i32 = arith.constant 0 : i32
    %c0_i32_0 = arith.constant 0 : i32
    %c0_i32_1 = arith.constant 0 : i32
    return %c0_i32, %c0_i32_0 : i32, i32
  }
  func.func @transform_3(%arg0: i32, %arg1: i32) -> (i32, i32) {
    %c0_i32 = arith.constant 0 : i32
    %c0_i32_0 = arith.constant 0 : i32
    return %c0_i32, %arg1 : i32, i32
  }
  func.func @transform_4(%arg0: i32, %arg1: i32) -> (i32, i32) {
    %c0_i32 = arith.constant 0 : i32
    %c0_i32_0 = arith.constant 0 : i32
    return %c0_i32, %arg1 : i32, i32
  }
  func.func @transform_5(%arg0: i32, %arg1: i32) -> (i32, i32) {
    %c0_i32 = arith.constant 0 : i32
    return %arg0, %arg1 : i32, i32
  }
}

module attributes {stable_mosaic.version = 11 : i64} {
  func.func @_layernorm_kernel(%arg0: i32, %arg1: memref<16x32xf32, #tpu.memory_space<vmem>>, %arg2: memref<1x32xf32, #tpu.memory_space<vmem>>, %arg3: memref<1x32xf32, #tpu.memory_space<vmem>>, %arg4: memref<16x32xf32, #tpu.memory_space<vmem>>) attributes {dimension_semantics = [#tpu.dimension_semantics<parallel>], iteration_bounds = array<i64: 1>, scalar_prefetch = 0 : i64, scratch_operands = 0 : i64, tpu.core_type = #tpu.core_type<tc>, window_params = [{transform_indices = @transform_0, window_bounds = array<i64: 16, 32>}, {pipeline_mode = #tpu.pipeline_mode<synchronous>, transform_indices = @transform_1, window_bounds = array<i64: 1, 32>}, {pipeline_mode = #tpu.pipeline_mode<synchronous>, transform_indices = @transform_2, window_bounds = array<i64: 1, 32>}, {transform_indices = @transform_3, window_bounds = array<i64: 16, 32>}]} {
    %c0 = arith.constant 0 : index
    %c0_0 = arith.constant 0 : index
    %0 = vector.load %arg1[%c0, %c0_0] : memref<16x32xf32, #tpu.memory_space<vmem>>, vector<16x32xf32>
    %c0_1 = arith.constant 0 : index
    %c0_2 = arith.constant 0 : index
    %1 = vector.load %arg2[%c0_1, %c0_2] : memref<1x32xf32, #tpu.memory_space<vmem>>, vector<1x32xf32>
    %c0_3 = arith.constant 0 : index
    %c0_4 = arith.constant 0 : index
    %2 = vector.load %arg3[%c0_3, %c0_4] : memref<1x32xf32, #tpu.memory_space<vmem>>, vector<1x32xf32>
    %cst = arith.constant dense<0.000000e+00> : vector<16xf32>
    %3 = vector.multi_reduction <add>, %0, %cst [1] : vector<16x32xf32> to vector<16xf32>
    %4 = vector.shape_cast %3 : vector<16xf32> to vector<16x1xf32>
    %cst_5 = arith.constant 3.200000e+01 : f32
    %5 = vector.broadcast %cst_5 : f32 to vector<16x1xf32>
    %6 = arith.divf %4, %5 : vector<16x1xf32>
    %7 = vector.broadcast %6 : vector<16x1xf32> to vector<16x32xf32>
    %8 = arith.subf %0, %7 : vector<16x32xf32>
    %9 = arith.mulf %8, %8 : vector<16x32xf32>
    %cst_6 = arith.constant dense<0.000000e+00> : vector<16xf32>
    %10 = vector.multi_reduction <add>, %9, %cst_6 [1] : vector<16x32xf32> to vector<16xf32>
    %11 = vector.shape_cast %10 : vector<16xf32> to vector<16x1xf32>
    %cst_7 = arith.constant 3.200000e+01 : f32
    %12 = vector.broadcast %cst_7 : f32 to vector<16x1xf32>
    %13 = arith.divf %11, %12 : vector<16x1xf32>
    %cst_8 = arith.constant 9.99999974E-6 : f32
    %14 = vector.broadcast %cst_8 : f32 to vector<16x1xf32>
    %15 = arith.addf %13, %14 : vector<16x1xf32>
    %16 = math.rsqrt %15 : vector<16x1xf32>
    %17 = vector.broadcast %16 : vector<16x1xf32> to vector<16x32xf32>
    %18 = arith.mulf %8, %17 : vector<16x32xf32>
    %19 = vector.broadcast %1 : vector<1x32xf32> to vector<16x32xf32>
    %20 = arith.mulf %18, %19 : vector<16x32xf32>
    %21 = vector.broadcast %2 : vector<1x32xf32> to vector<16x32xf32>
    %22 = arith.addf %20, %21 : vector<16x32xf32>
    %c0_9 = arith.constant 0 : index
    %c0_10 = arith.constant 0 : index
    %23 = vector.load %arg4[%c0_9, %c0_10] : memref<16x32xf32, #tpu.memory_space<vmem>>, vector<16x32xf32>
    tpu.vector_store %arg4[%c0_9, %c0_10], %22 {strides = array<i32>} : memref<16x32xf32, #tpu.memory_space<vmem>>, vector<16x32xf32>,
    return
  }
  func.func @transform_0(%arg0: i32) -> (i32, i32) {
    %c0_i32 = arith.constant 0 : i32
    %c0_i32_0 = arith.constant 0 : i32
    return %arg0, %c0_i32 : i32, i32
  }
  func.func @transform_1(%arg0: i32) -> (i32, i32) {
    %c0_i32 = arith.constant 0 : i32
    %c0_i32_0 = arith.constant 0 : i32
    %c0_i32_1 = arith.constant 0 : i32
    return %c0_i32, %c0_i32_0 : i32, i32
  }
  func.func @transform_2(%arg0: i32) -> (i32, i32) {
    %c0_i32 = arith.constant 0 : i32
    %c0_i32_0 = arith.constant 0 : i32
    %c0_i32_1 = arith.constant 0 : i32
    return %c0_i32, %c0_i32_0 : i32, i32
  }
  func.func @transform_3(%arg0: i32) -> (i32, i32) {
    %c0_i32 = arith.constant 0 : i32
    %c0_i32_0 = arith.constant 0 : i32
    return %arg0, %c0_i32 : i32, i32
  }
}

</mosaic_0001>

<bundles_post_ra>
// kernel: audio_encoder.15
= control target key start
LH: loop header
LB: loop body
LE: loop exit
PB: predicated region body
PF: predicated region fallthrough
CT: control target
= control target key end

     0   :  { %vm37_vm0 = vcmask 261120   ;;  %v346_v15 = vmov 0.0   ;;  %vm347_vm1 = vmmov 0   ;;  %s473_s0 = inlined_call_operand.vmem [shape: f32[16,32], index: 0, kind: input, shape index: {}]   ;;  %s474_s3 = inlined_call_operand.vmem [shape: bf16[32,32], index: 3, kind: input, shape index: {}]   ;;  %s475_s4 = inlined_call_operand.vmem [shape: bf16[32,32], index: 4, kind: input, shape index: {}]   ;;  %s476_s5 = inlined_call_operand.vmem [shape: bf16[32,32], index: 5, kind: input, shape index: {}]   ;;  %s477_s1 = inlined_call_operand.vmem [shape: f32[1,32], index: 1, kind: input, shape index: {}]   ;;  %s478_s2 = inlined_call_operand.vmem [shape: f32[1,32], index: 2, kind: input, shape index: {}]   ;;  %s479_s6 = inlined_call_operand.vmem [shape: f32[1,32], index: 6, kind: input, shape index: {}]   ;;  %s480_s9 = inlined_call_operand.vmem [shape: f32[16,32], index: 9, kind: output, shape index: {1}]   ;;  %s481_s8 = inlined_call_operand.vmem [shape: f32[16,32], index: 8, kind: output, shape index: {0}]   ;;  %s482_s7 = inlined_call_operand.vmem [shape: f32[1,32], index: 7, kind: input, shape index: {}]   ;;  %s483_s10 = inlined_call_operand.vmem [shape: f32[16,32], index: 10, kind: output, shape index: {2}]  }
   0x1   :  { %v33_v0 = vld [vmem:[%s473_s0] sm:$0xff]  ;;  %v34_v1 = vld [vmem:[%s473_s0 + $0x8] sm:$0xff]  ;;  %310 = vmatprep.subr.bf16.mxu0 %v346_v15  ;;  %318 = vmatprep.subr.bf16.mxu1 %v346_v15 }
   0x2   :  { %v38_v2 = vsel %vm37_vm0, %v33_v0, 0.0  ;;  %v41_v3 = vsel %vm37_vm0, %v34_v1, 0.0  ;;  %v336_v14 = vld [vmem:[%s474_s3] sm:$0xff]   ;;  %v338_v17 = vld [vmem:[%s474_s3 + $0x8] sm:$0xff]   ;;  %314 = vmatprep.mubr.msk.bf16.mxu0 %vm347_vm1, %v346_v15  ;;  %322 = vmatprep.mubr.msk.bf16.mxu1 %vm347_vm1, %v346_v15 }
   0x3   :  { %39 = vadd.xlane.f32.xlu0 %v38_v2  ;;  %v337_v16 = vld [vmem:[%s475_s4] sm:$0xff]   ;;  %311 = vmatpush3.bf16.msra.mxu0 %v336_v14  ;;  %v339_v18 = vld [vmem:[%s475_s4 + $0x8] sm:$0xff]  }
   0x4   :  { %319 = vmatpush3.bf16.msra.mxu1 %v337_v16  ;;  %312 = vmatprep.subr.bf16.mxu0 %v346_v15  ;;  %v288_v27 = vld [vmem:[%s477_s1] ss:$0 sm:$0xff]  ;;  %v341_v37 = vld [vmem:[%s476_s5 + $0x8] sm:$0xff]  }
   0x5   :  { %320 = vmatprep.subr.bf16.mxu1 %v346_v15  ;;  %v289_v31 = vld [vmem:[%s478_s2] ss:$0 sm:$0xff] }
   0x6   :  { %v340_v35 = vld [vmem:[%s476_s5] sm:$0xff]  }
   0x7   :  { %42 = vadd.xlane.f32.xlu0 %v41_v3  ;;  %313 = vmatpush3.bf16.msra.mxu0 %v338_v17  ;;  %v290_v38 = vld [vmem:[%s479_s6] ss:$0 sm:$0xff] }
   0x8   :  { %321 = vmatpush3.bf16.msra.mxu1 %v339_v18  ;;  %326 = vmatprep.subr.bf16.mxu0 %v346_v15  ;;  %v297_v49 = vld [vmem:[%s482_s7] ss:$0 sm:$0xff] }
  0x90   :  { %v40_v4 = vpop.xlane.xlu0 %39 }
  0x91   :  { %v45_v5 = vmul.f32 0.03125, %v40_v4 }
  0x93   :  { %v47_v6 = vsub.f32 %v33_v0, %v45_v5 }
  0x94   :  { %v43_v7 = vpop.xlane.xlu0 %42 }
  0x95   :  { %v46_v8 = vmul.f32 0.03125, %v43_v7  ;;  %v49_v9 = vmul.f32 %v47_v6, %v47_v6 }
  0x97   :  { %v48_v10 = vsub.f32 %v34_v1, %v46_v8  ;;  %v51_v11 = vsel %vm37_vm0, %v49_v9, 0.0 }
  0x98   :  { %52 = vadd.xlane.f32.xlu1 %v51_v11 }
  0x99   :  { %v50_v12 = vmul.f32 %v48_v10, %v48_v10 }
  0x9b   :  { %v54_v13 = vsel %vm37_vm0, %v50_v12, 0.0 }
  0x9c   :  { %55 = vadd.xlane.f32.xlu1 %v54_v13 }
 0x125   :  { %v53_v19 = vpop.xlane.xlu1 %52 }
 0x126   :  { %v57_v20 = vmul.f32 0.03125, %v53_v19 }
 0x128   :  { %v59_v21 = vadd.f32 1e-05, %v57_v20 }
 0x129   :  { %v56_v22 = vpop.xlane.xlu1 %55 }
 0x12a   :  { %342 = vrsqrt.f32 %v59_v21  ;;  %v58_v23 = vmul.f32 0.03125, %v56_v22 }
 0x12c   :  { %v60_v24 = vadd.f32 1e-05, %v58_v23 }
 0x12e   :  { %344 = vrsqrt.f32 %v60_v24 }
 0x134   :  { %v343_v25 = vpop.eup %342 }
 0x135   :  { %v63_v26 = vmul.f32 %v343_v25, %v47_v6 }
 0x137   :  { %v71_v30 = vmul.f32 %v288_v27, %v63_v26 }
 0x138   :  { %v345_v28 = vpop.eup %344 }
 0x139   :  { %v64_v29 = vmul.f32 %v345_v28, %v48_v10  ;;  %v79_v33 = vadd.f32 %v289_v31, %v71_v30 }
 0x13b   :  { %v72_v32 = vmul.f32 %v288_v27, %v64_v29 }
 0x13d   :  { %v80_v34 = vadd.f32 %v289_v31, %v72_v32 }
 0x13f   :  { %v81_v36 = vpack.c.bf16 %v80_v34, %v79_v33 }
 0x141   :  { %315 = vmatmul.mubr.msk.bf16.vlgmr.msra.gmra.mrb[0].mxu0 %vm37_vm0, %v81_v36  ;;  %323 = vmatmul.mubr.msk.bf16.vlgmr.msra.gmra.mrb[0].mxu1 %vm37_vm0, %v81_v36 }
 0x142   :  { %327 = vmatpush3.bf16.msra.mxu0 %v340_v35  ;;  %330 = vmatprep.mubr.msk.bf16.mxu0 %vm347_vm1, %v346_v15 }
 0x143   :  { %328 = vmatprep.subr.bf16.mxu0 %v346_v15 }
 0x146   :  { %329 = vmatpush3.bf16.msra.mxu0 %v341_v37 }
 0x149   :  { %331 = vmatmul.mubr.msk.bf16.vlgmr.msra.gmra.mrb[4].mxu0 %vm37_vm0, %v81_v36 }
 0x214   :  { %v142_v39 = vpop.f32.mrb[0].mxu0  ;;  %v199_v40 = vpop.f32.mrb[0].mxu1 }
 0x215   :  { %v143_v41 = vadd.f32 %v290_v38, %v142_v39  ;;  %272 = vst.msk [vmem:[%s480_s9] sm:$0xff] %vm37_vm0, %v199_v40  ;;  %v316_v42 = vpop.f32.mrb[1].mxu0  ;;  %v324_v43 = vpop.f32.mrb[1].mxu1 }
 0x216   :  { %v145_v44 = vpop.f32.mrb[2].mxu0  ;;  %v202_v45 = vpop.f32.mrb[2].mxu1 }
 0x217   :  { %270 = vst.msk [vmem:[%s481_s8] sm:$0xff] %vm37_vm0, %v143_v41  ;;  %v146_v46 = vadd.f32 %v290_v38, %v145_v44  ;;  %273 = vst.msk [vmem:[%s480_s9 + $0x8] sm:$0xff] %vm37_vm0, %v202_v45  ;;  %v317_v47 = vpop.f32.mrb[3].mxu0  ;;  %v325_v48 = vpop.f32.mrb[3].mxu1 }
 0x219   :  { %271 = vst.msk [vmem:[%s481_s8 + $0x8] sm:$0xff] %vm37_vm0, %v146_v46 }
 0x21c   :  { %v263_v50 = vpop.f32.mrb[4].mxu0 }
 0x21d   :  { %v264_v51 = vadd.f32 %v297_v49, %v263_v50  ;;  %v332_v52 = vpop.f32.mrb[5].mxu0 }
 0x21e   :  { %v266_v53 = vpop.f32.mrb[6].mxu0 }
 0x21f   :  { %274 = vst.msk [vmem:[%s483_s10] sm:$0xff] %vm37_vm0, %v264_v51  ;;  %v267_v54 = vadd.f32 %v297_v49, %v266_v53  ;;  %v333_v55 = vpop.f32.mrb[7].mxu0 }
 0x221   :  { %275 = vst.msk [vmem:[%s483_s10 + $0x8] sm:$0xff] %vm37_vm0, %v267_v54 }

// kernel: audio_encoder.13
= control target key start
LH: loop header
LB: loop body
LE: loop exit
PB: predicated region body
PF: predicated region fallthrough
CT: control target
= control target key end

     0   :  { %vm19_vm0 = vcmask 261120   ;;  %v287_v0 = vmov 0.0   ;;  %vm53_vm1 = vcmask 1043456   ;;  %vm46_vm2 = vcmask 195584   ;;  %s386_s1 = inlined_call_operand.vmem [shape: bf16[24,32], index: 1, kind: input, shape index: {}]   ;;  %s387_s0 = inlined_call_operand.vmem [shape: f32[32,24], index: 0, kind: input, shape index: {}]   ;;  %s388_s2 = inlined_call_operand.vmem [shape: f32[1,32], index: 2, kind: input, shape index: {}]   ;;  %s389_s3 = inlined_call_operand.vmem [shape: f32[32,32], index: 3, kind: output, shape index: {}]  }
   0x1   :  { %22 = vst.msk [vmem:[#allocation2 + $0x10] sm:$0xff] %vm19_vm0, %v287_v0  ;;  %20 = vst.msk [vmem:[#allocation2] sm:$0xff] %vm19_vm0, %v287_v0  ;;  %v269_v1 = vld [vmem:[%s386_s1] sm:$0xff]   ;;  %v270_v2 = vld [vmem:[%s386_s1 + $0x8] ss:$0 sps:$4 sm:$0xff]  }
   0x2   :  { %21 = vst.msk [vmem:[#allocation2 + $0x8] sm:$0xff] %vm19_vm0, %v287_v0  ;;  %23 = vst.msk [vmem:[#allocation2 + $0x18] sm:$0xff] %vm19_vm0, %v287_v0  ;;  %v28_v3 = vld [vmem:[%s387_s0] sm:$0xff]  ;;  %v29_v4 = vld [vmem:[%s387_s0 + $0x8] sm:$0xff]  ;;  %258 = vmatprep.subr.bf16.mxu0 %v269_v1  ;;  %v55_v8 = vsel %vm53_vm1, %v270_v2, 0 }
   0x3   :  { %v32_v5 = vpack.c.bf16 %v29_v4, %v28_v3  ;;  %259 = vmatpush3.bf16.msra.mxu0 %v269_v1  ;;  %v30_v6 = vld [vmem:[%s387_s0 + $0x10] sm:$0xff]  ;;  %v31_v7 = vld [vmem:[%s387_s0 + $0x18] sm:$0xff]  ;;  %v253_v22 = vld [vmem:[%s388_s2] ss:$0 sm:$0xff] }
   0x4   :  { %266 = vmatprep.subr.msk.bf16.mxu0 %vm53_vm1, %v270_v2  ;;  %v33_v9 = vpack.c.bf16 %v31_v7, %v30_v6 }
   0x5   :  { %262 = vmatprep.mubr.msk.bf16.mxu0 %vm46_vm2, %v32_v5 }
   0x7   :  { %261 = vmatpush3.bf16.msra.mxu0 %v55_v8 }
   0x8   :  { %v26_v10 = vld [vmem:[#allocation2 + $0x10] sm:$0xff]  ;;  %v24_v11 = vld [vmem:[#allocation2] sm:$0xff] }
   0x9   :  { %v27_v13 = vld [vmem:[#allocation2 + $0x18] sm:$0xff]  ;;  %v25_v16 = vld [vmem:[#allocation2 + $0x8] sm:$0xff] }
   0xa   :  { %263 = vmatmul.mubr.msk.bf16.vlgmr.msra.gmra.mrb[0].mxu0 %vm46_vm2, %v33_v9 }
  0xdd   :  { %v264_v12 = vpop.f32.mrb[0].mxu0 }
  0xde   :  { %v108_v14 = vadd.f32 %v264_v12, %v26_v10  ;;  %v91_v15 = vpop.f32.mrb[1].mxu0 }
  0xdf   :  { %v106_v17 = vadd.f32 %v91_v15, %v24_v11  ;;  %v265_v18 = vpop.f32.mrb[2].mxu0 }
  0xe0   :  { %113 = vst.msk [vmem:[#allocation2 + $0x10] sm:$0xff] %vm19_vm0, %v108_v14  ;;  %v109_v19 = vadd.f32 %v265_v18, %v27_v13  ;;  %v94_v20 = vpop.f32.mrb[3].mxu0 }
  0xe1   :  { %111 = vst.msk [vmem:[#allocation2] sm:$0xff] %vm19_vm0, %v106_v17  ;;  %v107_v21 = vadd.f32 %v94_v20, %v25_v16 }
  0xe2   :  { %114 = vst.msk [vmem:[#allocation2 + $0x18] sm:$0xff] %vm19_vm0, %v109_v19 }
  0xe3   :  { %112 = vst.msk [vmem:[#allocation2 + $0x8] sm:$0xff] %vm19_vm0, %v107_v21 }
  0xe7   :  { %v120_v23 = vld [vmem:[#allocation2 + $0x10] sm:$0xff] }
  0xe8   :  { %v338_v24 = vadd.f32 %v253_v22, %v120_v23  ;;  %v118_v25 = vld [vmem:[#allocation2] sm:$0xff] }
  0xe9   :  { %v340_v26 = vadd.f32 %v253_v22, %v118_v25  ;;  %v121_v27 = vld [vmem:[#allocation2 + $0x18] sm:$0xff] }
  0xea   :  { %v343_v28 = vmul.f32 0.70710677, %v338_v24  ;;  %v345_v29 = vadd.f32 %v253_v22, %v121_v27  ;;  %v119_v30 = vld [vmem:[#allocation2 + $0x8] sm:$0xff] }
  0xeb   :  { %v348_v31 = vmul.f32 0.70710677, %v340_v26  ;;  %v354_v34 = vadd.f32 %v253_v22, %v119_v30 }
  0xec   :  { %v151_v32 = vand.u32 2147483647, %v343_v28  ;;  %v352_v33 = vmul.f32 0.70710677, %v345_v29  ;;  %vm143_vm3 = vcmp.ge.f32.partialorder %v343_v28, 0.0 }
  0xed   :  { %v149_v35 = vand.u32 2147483647, %v348_v31  ;;  %v359_v40 = vmul.f32 0.70710677, %v354_v34  ;;  %vm141_vm4 = vcmp.ge.f32.partialorder %v348_v31, 0.0 }
  0xee   :  { %v155_v36 = vmul.f32 0.3275911, %v151_v32  ;;  %v152_v38 = vand.u32 2147483647, %v352_v33  ;;  %v207_v47 = vsub.f32 0.0, %v151_v32  ;;  %vm144_vm5 = vcmp.ge.f32.partialorder %v352_v33, 0.0 }
  0xef   :  { %v153_v37 = vmul.f32 0.3275911, %v149_v35  ;;  %v150_v43 = vand.u32 2147483647, %v359_v40  ;;  %v205_v48 = vsub.f32 0.0, %v149_v35  ;;  %vm142_vm6 = vcmp.ge.f32.partialorder %v359_v40, 0.0 }
  0xf0   :  { %v159_v39 = vadd.f32 1.0, %v155_v36  ;;  %v156_v42 = vmul.f32 0.3275911, %v152_v38  ;;  %v211_v50 = vmul.f32 %v207_v47, %v151_v32  ;;  %v208_v51 = vsub.f32 0.0, %v152_v38 }
  0xf1   :  { %v157_v41 = vadd.f32 1.0, %v153_v37  ;;  %v154_v45 = vmul.f32 0.3275911, %v150_v43  ;;  %v209_v54 = vmul.f32 %v205_v48, %v149_v35  ;;  %v206_v56 = vsub.f32 0.0, %v150_v43 }
  0xf2   :  { %271 = vrcp.f32 %v159_v39  ;;  %v160_v44 = vadd.f32 1.0, %v156_v42  ;;  %v217_v59 = vmul.f32 1.442695, %v211_v50  ;;  %v212_v61 = vmul.f32 %v208_v51, %v152_v38 }
  0xf3   :  { %273 = vrcp.f32 %v157_v41  ;;  %v158_v46 = vadd.f32 1.0, %v154_v45  ;;  %v213_v63 = vmul.f32 1.442695, %v209_v54  ;;  %v210_v3 = vmul.f32 %v206_v56, %v150_v43 }
  0xf4   :  { %275 = vrcp.f32 %v160_v44  ;;  %v219_v8 = vmul.f32 1.442695, %v212_v61  ;;  %v288_v48 = vmov -1.0   ;;  %v134_v40 = vmul.f32 0.5, %v354_v34 }
  0xf5   :  { %277 = vrcp.f32 %v158_v46  ;;  %v215_v13 = vmul.f32 1.442695, %v210_v3  ;;  %v147_v50 = vsel %vm143_vm3, 1.0, %v288_v48  ;;  %v148_v61 = vsel %vm144_vm5, 1.0, %v288_v48 }
  0xf6   :  { %279 = vpow2.f32 %v217_v59  ;;  %v133_v59 = vmul.f32 0.5, %v340_v26  ;;  %v146_v33 = vsel %vm142_vm6, 1.0, %v288_v48 }
  0xf7   :  { %281 = vpow2.f32 %v213_v63 }
  0xf8   :  { %283 = vpow2.f32 %v219_v8 }
  0xf9   :  { %285 = vpow2.f32 %v215_v13 }
  0xfc   :  { %v272_v49 = vpop.eup %271 }
  0xfd   :  { %v274_v52 = vpop.eup %273  ;;  %v171_v53 = vmul.f32 1.0614054, %v272_v49 }
  0xfe   :  { %v169_v55 = vmul.f32 1.0614054, %v274_v52  ;;  %v276_v58 = vpop.eup %275 }
  0xff   :  { %v175_v57 = vadd.f32 -1.4531521, %v171_v53  ;;  %v172_v0 = vmul.f32 1.0614054, %v276_v58  ;;  %v278_v1 = vpop.eup %277 }
 0x100   :  { %v173_v60 = vadd.f32 -1.4531521, %v169_v55  ;;  %v170_v6 = vmul.f32 1.0614054, %v278_v1  ;;  %v280_v36 = vpop.eup %279  ;;  %v135_v55 = vmul.f32 0.5, %v338_v24  ;;  %v136_v24 = vmul.f32 0.5, %v345_v29 }
 0x101   :  { %v179_v62 = vmul.f32 %v272_v49, %v175_v57  ;;  %v176_v5 = vadd.f32 -1.4531521, %v172_v0  ;;  %v282_v38 = vpop.eup %281 }
 0x102   :  { %v177_v2 = vmul.f32 %v274_v52, %v173_v60  ;;  %v174_v11 = vadd.f32 -1.4531521, %v170_v6  ;;  %v284_v47 = vpop.eup %283 }
 0x103   :  { %v183_v4 = vadd.f32 1.4214138, %v179_v62  ;;  %v180_v10 = vmul.f32 %v276_v58, %v176_v5  ;;  %v286_v54 = vpop.eup %285 }
 0x104   :  { %v181_v7 = vadd.f32 1.4214138, %v177_v2  ;;  %v178_v16 = vmul.f32 %v278_v1, %v174_v11 }
 0x105   :  { %v187_v9 = vmul.f32 %v272_v49, %v183_v4  ;;  %v184_v15 = vadd.f32 1.4214138, %v180_v10 }
 0x106   :  { %v185_v12 = vmul.f32 %v274_v52, %v181_v7  ;;  %v182_v20 = vadd.f32 1.4214138, %v178_v16 }
 0x107   :  { %v191_v14 = vadd.f32 -0.28449672, %v187_v9  ;;  %v188_v19 = vmul.f32 %v276_v58, %v184_v15 }
 0x108   :  { %v189_v17 = vadd.f32 -0.28449672, %v185_v12  ;;  %v186_v25 = vmul.f32 %v278_v1, %v182_v20 }
 0x109   :  { %v195_v18 = vmul.f32 %v272_v49, %v191_v14  ;;  %v192_v23 = vadd.f32 -0.28449672, %v188_v19 }
 0x10a   :  { %v193_v21 = vmul.f32 %v274_v52, %v189_v17  ;;  %v190_v35 = vadd.f32 -0.28449672, %v186_v25 }
 0x10b   :  { %v199_v22 = vadd.f32 0.2548296, %v195_v18  ;;  %v196_v32 = vmul.f32 %v276_v58, %v192_v23 }
 0x10c   :  { %v197_v27 = vadd.f32 0.2548296, %v193_v21  ;;  %v194_v42 = vmul.f32 %v278_v1, %v190_v35 }
 0x10d   :  { %v203_v30 = vmul.f32 %v272_v49, %v199_v22  ;;  %v200_v41 = vadd.f32 0.2548296, %v196_v32  ;;  %v145_v49 = vsel %vm141_vm4, 1.0, %v288_v48 }
 0x10e   :  { %v201_v37 = vmul.f32 %v274_v52, %v197_v27  ;;  %v198_v46 = vadd.f32 0.2548296, %v194_v42 }
 0x10f   :  { %v223_v39 = vmul.f32 %v280_v36, %v203_v30  ;;  %v204_v45 = vmul.f32 %v276_v58, %v200_v41 }
 0x110   :  { %v221_v43 = vmul.f32 %v282_v38, %v201_v37  ;;  %v202_v52 = vmul.f32 %v278_v1, %v198_v46 }
 0x111   :  { %v227_v44 = vsub.f32 1.0, %v223_v39  ;;  %v224_v28 = vmul.f32 %v284_v47, %v204_v45 }
 0x112   :  { %v225_v51 = vsub.f32 1.0, %v221_v43  ;;  %v222_v58 = vmul.f32 %v286_v54, %v202_v52 }
 0x113   :  { %v231_v53 = vmul.f32 %v227_v44, %v147_v50  ;;  %v228_v57 = vsub.f32 1.0, %v224_v28 }
 0x114   :  { %v229_v31 = vmul.f32 %v225_v51, %v145_v49  ;;  %v226_v0 = vsub.f32 1.0, %v222_v58 }
 0x115   :  { %v235_v56 = vadd.f32 1.0, %v231_v53  ;;  %v232_v63 = vmul.f32 %v228_v57, %v148_v61 }
 0x116   :  { %v233_v60 = vadd.f32 1.0, %v229_v31  ;;  %v230_v3 = vmul.f32 %v226_v0, %v146_v33 }
 0x117   :  { %v239_v62 = vmul.f32 %v235_v56, %v135_v55  ;;  %v236_v1 = vadd.f32 1.0, %v232_v63 }
 0x118   :  { %v237_v2 = vmul.f32 %v233_v60, %v133_v59  ;;  %v234_v4 = vadd.f32 1.0, %v230_v3 }
 0x119   :  { %243 = vst.msk [vmem:[%s389_s3 + $0x10] sm:$0xff] %vm19_vm0, %v239_v62  ;;  %v240_v26 = vmul.f32 %v236_v1, %v136_v24 }
 0x11a   :  { %241 = vst.msk [vmem:[%s389_s3] sm:$0xff] %vm19_vm0, %v237_v2  ;;  %v238_v5 = vmul.f32 %v234_v4, %v134_v40 }
 0x11b   :  { %244 = vst.msk [vmem:[%s389_s3 + $0x18] sm:$0xff] %vm19_vm0, %v240_v26 }
 0x11c   :  { %242 = vst.msk [vmem:[%s389_s3 + $0x8] sm:$0xff] %vm19_vm0, %v238_v5 }

// kernel: audio_encoder.14
= control target key start
LH: loop header
LB: loop body
LE: loop exit
PB: predicated region body
PF: predicated region fallthrough
CT: control target
= control target key end

     0   :  { %vm19_vm0 = vcmask 261120   ;;  %v247_v0 = vmov 0.0   ;;  %vm248_vm1 = vmmov 0   ;;  %vm75_vm2 = vcmask 785408   ;;  %s309_s1 = inlined_call_operand.vmem [shape: bf16[96,32], index: 1, kind: input, shape index: {}]   ;;  %s310_s0 = inlined_call_operand.vmem [shape: f32[16,96], index: 0, kind: input, shape index: {}]   ;;  %s311_s2 = inlined_call_operand.vmem [shape: f32[1,32], index: 2, kind: input, shape index: {}]   ;;  %s312_s3 = inlined_call_operand.vmem [shape: f32[16,32], index: 3, kind: output, shape index: {}]  }
   0x1   :  { %214 = vmatprep.subr.bf16.mxu0 %v247_v0  ;;  %v233_v1 = vld [vmem:[%s309_s1] sm:$0xff]   ;;  %226 = vmatprep.mubr.msk.bf16.mxu0 %vm248_vm1, %v247_v0  ;;  %20 = vst.msk [vmem:[#allocation2] sm:$0xff] %vm19_vm0, %v247_v0  ;;  %21 = vst.msk [vmem:[#allocation2 + $0x8] sm:$0xff] %vm19_vm0, %v247_v0  ;;  %v234_v2 = vld [vmem:[%s309_s1 + $0x8] sm:$0xff]   ;;  %v249_v61 = vmov -1.0  }
   0x2   :  { %215 = vmatpush3.bf16.msra.mxu0 %v233_v1  ;;  %v235_v3 = vld [vmem:[%s309_s1 + $0x10] sm:$0xff]   ;;  %v236_v4 = vld [vmem:[%s309_s1 + $0x18] sm:$0xff]   ;;  %v237_v5 = vld [vmem:[%s309_s1 + $0x20] sm:$0xff]  }
   0x3   :  { %216 = vmatprep.subr.bf16.mxu0 %v247_v0  ;;  %v238_v6 = vld [vmem:[%s309_s1 + $0x28] sm:$0xff]   ;;  %v24_v7 = vld [vmem:[%s310_s0] sm:$0xff] }
   0x4   :  { %v25_v8 = vld [vmem:[%s310_s0 + $0x8] sm:$0xff]  ;;  %v206_v18 = vld [vmem:[%s311_s2] ss:$0 sm:$0xff] }
   0x5   :  { %v26_v9 = vpack.c.bf16 %v25_v8, %v24_v7 }
   0x6   :  { %217 = vmatpush3.bf16.msra.mxu0 %v234_v2 }
   0x7   :  { %218 = vmatprep.subr.bf16.mxu0 %v247_v0 }
   0x8   :  { %v22_v10 = vld [vmem:[#allocation2] sm:$0xff]  ;;  %v23_v12 = vld [vmem:[#allocation2 + $0x8] sm:$0xff] }
   0xa   :  { %219 = vmatpush3.bf16.msra.mxu0 %v235_v3 }
   0xb   :  { %220 = vmatprep.subr.bf16.mxu0 %v247_v0 }
   0xe   :  { %221 = vmatpush3.bf16.msra.mxu0 %v236_v4 }
   0xf   :  { %222 = vmatprep.subr.bf16.mxu0 %v247_v0 }
  0x12   :  { %223 = vmatpush3.bf16.msra.mxu0 %v237_v5 }
  0x13   :  { %224 = vmatprep.subr.bf16.mxu0 %v247_v0 }
  0x16   :  { %225 = vmatpush3.bf16.msra.mxu0 %v238_v6 }
  0x19   :  { %227 = vmatmul.mubr.msk.bf16.vlgmr.msra.gmra.mrb[0].mxu0 %vm75_vm2, %v26_v9 }
  0xec   :  { %v113_v11 = vpop.f32.mrb[0].mxu0 }
  0xed   :  { %v120_v13 = vadd.f32 %v113_v11, %v22_v10  ;;  %v228_v14 = vpop.f32.mrb[1].mxu0 }
  0xee   :  { %v116_v15 = vpop.f32.mrb[2].mxu0 }
  0xef   :  { %123 = vst.msk [vmem:[#allocation2] sm:$0xff] %vm19_vm0, %v120_v13  ;;  %v121_v16 = vadd.f32 %v116_v15, %v23_v12  ;;  %v229_v17 = vpop.f32.mrb[3].mxu0 }
  0xf1   :  { %124 = vst.msk [vmem:[#allocation2 + $0x8] sm:$0xff] %vm19_vm0, %v121_v16 }
  0xf6   :  { %v128_v19 = vld [vmem:[#allocation2] sm:$0xff] }
  0xf7   :  { %v137_v20 = vadd.f32 %v206_v18, %v128_v19 }
  0xf8   :  { %v129_v21 = vld [vmem:[#allocation2 + $0x8] sm:$0xff] }
  0xf9   :  { %v141_v22 = vmul.f32 0.70710677, %v137_v20  ;;  %v138_v23 = vadd.f32 %v206_v18, %v129_v21  ;;  %v139_v2 = vmul.f32 0.5, %v137_v20 }
  0xfb   :  { %v147_v24 = vand.u32 2147483647, %v141_v22  ;;  %v142_v25 = vmul.f32 0.70710677, %v138_v23  ;;  %vm143_vm3 = vcmp.ge.f32.partialorder %v141_v22, 0.0  ;;  %v140_v7 = vmul.f32 0.5, %v138_v23 }
  0xfc   :  { %v145_v62 = vsel %vm143_vm3, 1.0, %v249_v61 }
  0xfd   :  { %v149_v26 = vmul.f32 0.3275911, %v147_v24  ;;  %v148_v27 = vand.u32 2147483647, %v142_v25  ;;  %v175_v31 = vsub.f32 0.0, %v147_v24  ;;  %vm144_vm4 = vcmp.ge.f32.partialorder %v142_v25, 0.0 }
  0xfe   :  { %v146_v4 = vsel %vm144_vm4, 1.0, %v249_v61 }
  0xff   :  { %v151_v28 = vadd.f32 1.0, %v149_v26  ;;  %v150_v29 = vmul.f32 0.3275911, %v148_v27  ;;  %v176_v32 = vsub.f32 0.0, %v148_v27  ;;  %v177_v34 = vmul.f32 %v175_v31, %v147_v24 }
 0x101   :  { %239 = vrcp.f32 %v151_v28  ;;  %v152_v30 = vadd.f32 1.0, %v150_v29  ;;  %v178_v38 = vmul.f32 %v176_v32, %v148_v27  ;;  %v179_v39 = vmul.f32 1.442695, %v177_v34 }
 0x103   :  { %241 = vrcp.f32 %v152_v30  ;;  %v181_v44 = vmul.f32 1.442695, %v178_v38 }
 0x104   :  { %243 = vpow2.f32 %v179_v39 }
 0x105   :  { %245 = vpow2.f32 %v181_v44 }
 0x10b   :  { %v240_v33 = vpop.eup %239 }
 0x10c   :  { %v157_v35 = vmul.f32 1.0614054, %v240_v33 }
 0x10d   :  { %v242_v36 = vpop.eup %241 }
 0x10e   :  { %v159_v37 = vadd.f32 -1.4531521, %v157_v35  ;;  %v158_v40 = vmul.f32 1.0614054, %v242_v36  ;;  %v244_v55 = vpop.eup %243 }
 0x10f   :  { %v246_v59 = vpop.eup %245 }
 0x110   :  { %v161_v41 = vmul.f32 %v240_v33, %v159_v37  ;;  %v160_v42 = vadd.f32 -1.4531521, %v158_v40 }
 0x112   :  { %v163_v43 = vadd.f32 1.4214138, %v161_v41  ;;  %v162_v45 = vmul.f32 %v242_v36, %v160_v42 }
 0x114   :  { %v165_v46 = vmul.f32 %v240_v33, %v163_v43  ;;  %v164_v47 = vadd.f32 1.4214138, %v162_v45 }
 0x116   :  { %v167_v48 = vadd.f32 -0.28449672, %v165_v46  ;;  %v166_v49 = vmul.f32 %v242_v36, %v164_v47 }
 0x118   :  { %v169_v50 = vmul.f32 %v240_v33, %v167_v48  ;;  %v168_v51 = vadd.f32 -0.28449672, %v166_v49 }
 0x11a   :  { %v171_v52 = vadd.f32 0.2548296, %v169_v50  ;;  %v170_v53 = vmul.f32 %v242_v36, %v168_v51 }
 0x11c   :  { %v173_v54 = vmul.f32 %v240_v33, %v171_v52  ;;  %v172_v56 = vadd.f32 0.2548296, %v170_v53 }
 0x11e   :  { %v183_v57 = vmul.f32 %v244_v55, %v173_v54  ;;  %v174_v58 = vmul.f32 %v242_v36, %v172_v56 }
 0x120   :  { %v185_v60 = vsub.f32 1.0, %v183_v57  ;;  %v184_v63 = vmul.f32 %v246_v59, %v174_v58 }
 0x122   :  { %v187_v0 = vmul.f32 %v185_v60, %v145_v62  ;;  %v186_v1 = vsub.f32 1.0, %v184_v63 }
 0x124   :  { %v189_v3 = vadd.f32 1.0, %v187_v0  ;;  %v188_v5 = vmul.f32 %v186_v1, %v146_v4 }
 0x126   :  { %v191_v6 = vmul.f32 %v189_v3, %v139_v2  ;;  %v190_v8 = vadd.f32 1.0, %v188_v5 }
 0x128   :  { %193 = vst.msk [vmem:[%s312_s3] sm:$0xff] %vm19_vm0, %v191_v6  ;;  %v192_v9 = vmul.f32 %v190_v8, %v140_v7 }
 0x12a   :  { %194 = vst.msk [vmem:[%s312_s3 + $0x8] sm:$0xff] %vm19_vm0, %v192_v9 }

// kernel: audio_encoder.16
= control target key start
LH: loop header
LB: loop body
LE: loop exit
PB: predicated region body
PF: predicated region fallthrough
CT: control target
= control target key end

     0   :  { %s1254_s12 = smov 0   ;;  %s1256_s13 = smov 0   ;;  %s1424_s0 = inlined_call_operand.vmem [shape: f32[2,8,32], index: 0, kind: input, shape index: {}]   ;;  %s1425_s1 = inlined_call_operand.vmem [shape: f32[2,8,32], index: 1, kind: input, shape index: {}]   ;;  %s1426_s2 = inlined_call_operand.vmem [shape: f32[2,8,32], index: 2, kind: input, shape index: {}]   ;;  %s1427_s3 = inlined_call_operand.vmem [shape: f32[2,8,32], index: 3, kind: output, shape index: {}]  }
   0x1   :  { %s1258_s14 = smov 0  }
   0x2 LB: > { %s39_s15 = sadd.s32 1, %s1218_s13  ;;  %p1061_p0 = scmp.ge.s32.totalorder %s1222_s14, 1  ;;  %s1222_s14 = sphi %s1258_s14, %s13_s14   ;;  %s1218_s13 = sphi %s1256_s13, %s1429_s13   ;;  %s1214_s12 = sphi %s1254_s12, %s1428_s12  }
   0x3   : > { %p41_p1 = scmp.ge.s32.totalorder %s39_s15, 2  ;;  %p214_p2 = scmp.lt.s32.totalorder %s1222_s14, 3 }
   0x5   : > { %s1431_s15 = smov (%p41_p1, %s39_s15), 0  ;;  %p215_p3 = pnand %p1061_p0, %p214_p2 }
   0x6   : > { %p268_p4 = scmp.lt.s32.totalorder (!%p215_p3), %s1214_s12, 1  ;;  %vm322_vm0 = vcmask (!%p215_p3), 64512   ;;  %v1224_v0 = vmov (!%p215_p3), 0.0   ;;  %vm1225_vm1 = vmmov (!%p215_p3), 0   ;;  %vm313_vm2 = vcmask (!%p215_p3), 7168   ;;  %s1228_s23 = smov (!%p215_p3), 120  }
   0x7   : > { %218 = sbr.rel (%p215_p3) target bundleno = 1465 (0x5b9), region = 32  ;;  %1092 = vmatprep.subr.bf16.mxu0 (!%p215_p3), %v1224_v0  ;;  %323 = vst.msk [vmem:[#allocation4] sm:$0xff] (!%p215_p3), %vm322_vm0, %v1224_v0  ;;  %324 = vst.msk [vmem:[#allocation4 + $0x8] sm:$0xff] (!%p215_p3), %vm322_vm0, %v1224_v0  ;;  %1094 = vmatprep.mubr.msk.bf16.mxu0 (!%p215_p3), %vm1225_vm1, %v1224_v0  ;;  %v1226_v6 = vmov (!%p215_p3), -inf   ;;  %v1227_v12 = vmov (!%p215_p3), 0   ;;  %s1229_s24 = smov (!%p215_p3), 112  }
   0x8   : > { %325 = vst.msk [vmem:[#allocation4 + $0x10] sm:$0xff] (!%p215_p3), %vm322_vm0, %v1224_v0  ;;  %326 = vst.msk [vmem:[#allocation4 + $0x18] sm:$0xff] (!%p215_p3), %vm322_vm0, %v1224_v0  ;;  %1098 = vmatprep.subr.bf16.mxu1 (!%p215_p3), %v1224_v0  ;;  %1100 = vmatprep.mubr.msk.bf16.mxu1 (!%p215_p3), %vm1225_vm1, %v1224_v0  ;;  %s1230_s25 = smov (!%p215_p3), 104   ;;  %vm415_vm3 = vcmask (!%p215_p3), 1043456   ;;  %s1231_s29 = smov (!%p215_p3), 8   ;;  %vm922_vm4 = vcmask (!%p215_p3), 130048  }
   0x9   : > { %314 = vst.msk [vmem:[#allocation2] sm:$0xff] (!%p215_p3), %vm313_vm2, %v1226_v6  ;;  %315 = vst.msk [vmem:[#allocation2 + $0x8] sm:$0xff] (!%p215_p3), %vm313_vm2, %v1226_v6  ;;  %1174 = vset.pattern.permute.xlu0 (!%p215_p3), %v1227_v12  ;;  %1175 = vset.pattern.permute.xlu1 (!%p215_p3), %v1227_v12  ;;  %s1232_s30 = smov (!%p215_p3), 16   ;;  %s1233_s4 = smov (!%p215_p3), 24   ;;  %vm924_vm5 = vcmask (!%p215_p3), 195584   ;;  %vm926_vm6 = vcmask (!%p215_p3), 261120  }
   0xa   : > { %316 = vst.msk [vmem:[#allocation2 + $0x10] sm:$0xff] (!%p215_p3), %vm313_vm2, %v1226_v6  ;;  %317 = vst.msk [vmem:[#allocation2 + $0x18] sm:$0xff] (!%p215_p3), %vm313_vm2, %v1226_v6 }
   0xb   : > { %318 = vst.msk [vmem:[#allocation3] sm:$0xff] (!%p215_p3), %vm313_vm2, %v1224_v0  ;;  %319 = vst.msk [vmem:[#allocation3 + $0x8] sm:$0xff] (!%p215_p3), %vm313_vm2, %v1224_v0 }
   0xc   : > { %320 = vst.msk [vmem:[#allocation3 + $0x10] sm:$0xff] (!%p215_p3), %vm313_vm2, %v1224_v0  ;;  %321 = vst.msk [vmem:[#allocation3 + $0x18] sm:$0xff] (!%p215_p3), %vm313_vm2, %v1224_v0 }
   0xe   : > { %s1433_s12 = smov (!%p268_p4, %s1214_s12), 1 }
   0xf   : > { %s1286_s16 = sshll.u32 %s1433_s12, 3 }
  0x10   : > { %s287_s19 = scalar_lea.vmem %s1425_s1, %s1286_s16  ;;  %s277_s22 = scalar_lea.vmem %s1424_s0, %s1286_s16  ;;  %v1320_v13 = vld [vmem:[#allocation2] sm:$0xff]  ;;  %v515_v53 = vld [vmem:[#allocation2 + $0x8] sm:$0xff] }
  0x11   : > { %v329_v1 = vld [vmem:[%s287_s19] sm:$0xff]  ;;  %s297_s28 = scalar_lea.vmem %s1426_s2, %s1286_s16  ;;  %v1364_v57 = vld [vmem:[#allocation2 + $0x10] sm:$0xff]  ;;  %v786_v61 = vld [vmem:[#allocation2 + $0x18] sm:$0xff]  ;;  %s307_s7 = scalar_lea.vmem %s1427_s3, %s1286_s16 }
  0x12   : > { %v330_v2 = vpack.c.bf16 %v329_v1, %v329_v1  ;;  %v327_v4 = vld [vmem:[%s277_s22] sm:$0xff] }
  0x13   : > { %v328_v5 = vpack.c.bf16 %v327_v4, %v327_v4  ;;  %v331_v17 = vld [vmem:[%s297_s28] sm:$0xff] }
  0x14   : > { %v338_v3 = vsel %vm322_vm0, %v330_v2, 0  ;;  %466 = vrot.lane.b32.xlu1 %v330_v2, %s1228_s23  ;;  %v1334_v18 = vpack.c.bf16 %v331_v17, %v331_v17 }
  0x15   : > { %1093 = vmatpush3.bf16.xpose.msra.mxu0 %v338_v3 }
  0x16   : > { %1110 = vmatprep.subr.bf16.mxu0 %v1224_v0  ;;  %v417_v19 = vsel %vm415_vm3, %v1334_v18, 0 }
  0x17   : > { %1099 = vmatpush3.bf16.msra.mxu1 %v417_v19 }
  0x18   : > { %463 = vrot.lane.b32.xlu1 %v328_v5, %s1228_s23  ;;  %1104 = vmatprep.subr.bf16.mxu1 %v1224_v0 }
  0x1c   : > { %1095 = vmatmul.mubr.msk.bf16.vlgmr.msra.gmra.mrb[0].mxu0 %vm322_vm0, %v328_v5  ;;  %602 = vrot.lane.b32.xlu1 %v330_v2, %s1229_s24 }
  0x1d   : > { %1112 = vmatprep.mubr.msk.bf16.mxu0 %vm1225_vm1, %v1224_v0 }
  0x20   : > { %600 = vrot.lane.b32.xlu1 %v328_v5, %s1229_s24 }
  0x24   : > { %737 = vrot.lane.b32.xlu1 %v330_v2, %s1230_s25 }
  0x28   : > { %735 = vrot.lane.b32.xlu1 %v328_v5, %s1230_s25 }
  0x86   : > { %v467_v23 = vpop.permute.xlu1 %466 }
  0x87   : > { %v472_v26 = vsel %vm322_vm0, %v467_v23, 0 }
  0x8a   : > { %v464_v24 = vpop.permute.xlu1 %463 }
  0x8e   : > { %v603_v28 = vpop.permute.xlu1 %602 }
  0x8f   : > { %v608_v30 = vsel %vm322_vm0, %v603_v28, 0 }
  0x92   : > { %v601_v29 = vpop.permute.xlu1 %600 }
  0x96   : > { %v738_v31 = vpop.permute.xlu1 %737 }
  0x97   : > { %v743_v32 = vsel %vm322_vm0, %v738_v31, 0 }
  0x9a   : > { %v736_v33 = vpop.permute.xlu1 %735 }
  0xef   : > { %v374_v7 = vpop.f32.mrb[0].mxu0 }
  0xf0   : > { %v1096_v8 = vpop.f32.mrb[1].mxu0  ;;  %v381_v9 = vsel %vm322_vm0, %v374_v7, -inf }
  0xf1   : > { %382 = vmax.xlane.f32.xlu0 %v381_v9  ;;  %v377_v10 = vpop.f32.mrb[2].mxu0 }
  0xf2   : > { %v1097_v11 = vpop.f32.mrb[3].mxu0 }
 0x17e   : > { %v383_v14 = vpop.xlane.xlu0 %382 }
 0x17f   : > { %v1323_v15 = vmax.f32 %v1320_v13, %v383_v14 }
 0x181   : > { %v385_v16 = vsub.f32 %v1320_v13, %v1323_v15  ;;  %461 = vst.msk [vmem:[#allocation2] sm:$0xff] %vm313_vm2, %v1323_v15  ;;  %390 = vperm.xlu0 %1174, %v1323_v15  }
 0x200   : > { %v391_v20 = vpop.permute.xlu0 %390 }
 0x201   : > { %v393_v21 = vsub.f32 %v374_v7, %v391_v20 }
 0x203   : > { %v394_v22 = vmul.f32 1.442695, %v393_v21 }
 0x205   : > { %1176 = vpow2.f32 %v394_v22 }
 0x20f   : > { %v1339_v25 = vpop.eup %1176 }
 0x210   : > { %v411_v27 = vpack.c.bf16 %v1339_v25, %v1339_v25  ;;  %v398_v2 = vsel %vm322_vm0, %v1339_v25, 0.0 }
 0x212   : > { %1101 = vmatmul.mubr.msk.bf16.vlgmr.msra.gmra.mrb[0].mxu1 %vm322_vm0, %v411_v27 }
 0x213   : > { %1105 = vmatpush3.bf16.xpose.msra.mxu1 %v472_v26  ;;  %1106 = vmatprep.mubr.msk.bf16.mxu1 %vm1225_vm1, %v1224_v0 }
 0x214   : > { %1116 = vmatprep.subr.bf16.mxu1 %v1224_v0 }
 0x21a   : > { %1107 = vmatmul.mubr.msk.bf16.vlgmr.msra.gmra.mrb[4].mxu1 %vm322_vm0, %v464_v24 }
 0x21b   : > { %1117 = vmatpush3.bf16.xpose.msra.mxu1 %v608_v30  ;;  %1118 = vmatprep.mubr.msk.bf16.mxu1 %vm1225_vm1, %v1224_v0 }
 0x21c   : > { %1128 = vmatprep.subr.bf16.mxu1 %v1224_v0 }
 0x222   : > { %1119 = vmatmul.mubr.msk.bf16.vlgmr.msra.gmra.mrb[8].mxu1 %vm322_vm0, %v601_v29 }
 0x223   : > { %1129 = vmatpush3.bf16.xpose.msra.mxu1 %v743_v32  ;;  %1130 = vmatprep.mubr.msk.bf16.mxu1 %vm1225_vm1, %v1224_v0  ;;  %v386_v32 = vmul.f32 1.442695, %v385_v16  ;;  %v532_v16 = vld [vmem:[#allocation3 + $0x8] sm:$0xff] }
 0x22a   : > { %1131 = vmatmul.mubr.msk.bf16.vlgmr.msra.gmra.mrb[12].mxu1 %vm322_vm0, %v736_v33 }
 0x2e5   : > { %v1358_v34 = vpop.f32.mrb[0].mxu1 }
 0x2e6   : > { %v1102_v35 = vpop.f32.mrb[1].mxu1 }
 0x2e7   : > { %v456_v36 = vpop.f32.mrb[2].mxu1 }
 0x2e8   : > { %v1103_v37 = vpop.f32.mrb[3].mxu1 }
 0x2ed   : > { %v508_v38 = vpop.f32.mrb[4].mxu1 }
 0x2ee   : > { %v1108_v39 = vpop.f32.mrb[5].mxu1  ;;  %v516_v40 = vsel %vm322_vm0, %v508_v38, -inf }
 0x2ef   : > { %517 = vmax.xlane.f32.xlu1 %v516_v40  ;;  %v511_v41 = vpop.f32.mrb[6].mxu1 }
 0x2f0   : > { %v1109_v42 = vpop.f32.mrb[7].mxu1 }
 0x2f5   : > { %v644_v43 = vpop.f32.mrb[8].mxu1 }
 0x2f6   : > { %v1120_v44 = vpop.f32.mrb[9].mxu1  ;;  %v652_v45 = vsel %vm322_vm0, %v644_v43, -inf }
 0x2f7   : > { %653 = vmax.xlane.f32.xlu0 %v652_v45  ;;  %v647_v46 = vpop.f32.mrb[10].mxu1  ;;  %v668_v45 = vld [vmem:[#allocation3 + $0x10] sm:$0xff] }
 0x2f8   : > { %v1121_v47 = vpop.f32.mrb[11].mxu1 }
 0x2fd   : > { %v779_v48 = vpop.f32.mrb[12].mxu1 }
 0x2fe   : > { %v1132_v49 = vpop.f32.mrb[13].mxu1  ;;  %v787_v50 = vsel %vm322_vm0, %v779_v48, -inf }
 0x2ff   : > { %788 = vmax.xlane.f32.xlu1 %v787_v50  ;;  %v782_v51 = vpop.f32.mrb[14].mxu1  ;;  %v803_v50 = vld [vmem:[#allocation3 + $0x18] sm:$0xff] }
 0x300   : > { %v1133_v52 = vpop.f32.mrb[15].mxu1 }
 0x37c   : > { %v518_v54 = vpop.xlane.xlu1 %517 }
 0x37d   : > { %v519_v55 = vmax.f32 %v515_v53, %v518_v54 }
 0x37f   : > { %v520_v56 = vsub.f32 %v515_v53, %v519_v55  ;;  %599 = vst.msk [vmem:[#allocation2 + $0x8] sm:$0xff] %vm313_vm2, %v519_v55  ;;  %525 = vperm.xlu1 %1175, %v519_v55  }
 0x381   : > { %v521_v24 = vmul.f32 1.442695, %v520_v56  ;;  %v404_v56 = vld [vmem:[#allocation4] sm:$0xff] }
 0x384   : > { %v654_v58 = vpop.xlane.xlu0 %653 }
 0x385   : > { %v1367_v59 = vmax.f32 %v1364_v57, %v654_v58 }
 0x387   : > { %v656_v60 = vsub.f32 %v1364_v57, %v1367_v59  ;;  %734 = vst.msk [vmem:[#allocation2 + $0x10] sm:$0xff] %vm313_vm2, %v1367_v59  ;;  %661 = vperm.xlu0 %1174, %v1367_v59  }
 0x389   : > { %v657_v35 = vmul.f32 1.442695, %v656_v60 }
 0x38c   : > { %v789_v62 = vpop.xlane.xlu1 %788 }
 0x38d   : > { %v790_v63 = vmax.f32 %v786_v61, %v789_v62 }
 0x38f   : > { %v791_v1 = vsub.f32 %v786_v61, %v790_v63  ;;  %869 = vst.msk [vmem:[#allocation2 + $0x18] sm:$0xff] %vm313_vm2, %v790_v63  ;;  %796 = vperm.xlu1 %1175, %v790_v63   ;;  %v540_v63 = vld [vmem:[#allocation4 + $0x8] sm:$0xff] }
 0x391   : > { %v792_v27 = vmul.f32 1.442695, %v791_v1 }
 0x393   : > { %549 = vrot.lane.b32.xlu1 %v1334_v18, %s1228_s23 }
 0x397   : > { %684 = vrot.lane.b32.xlu1 %v1334_v18, %s1229_s24 }
 0x39b   : > { %819 = vrot.lane.b32.xlu1 %v1334_v18, %s1230_s25 }
 0x3bf   : > { %399 = vadd.xlane.f32.xlu1 %v398_v2 }
 0x3fe   : > { %v526_v3 = vpop.permute.xlu1 %525 }
 0x3ff   : > { %v528_v4 = vsub.f32 %v508_v38, %v526_v3 }
 0x401   : > { %v529_v5 = vmul.f32 1.442695, %v528_v4 }
 0x403   : > { %1178 = vpow2.f32 %v529_v5 }
 0x406   : > { %v662_v6 = vpop.permute.xlu0 %661 }
 0x407   : > { %v664_v7 = vsub.f32 %v644_v43, %v662_v6 }
 0x409   : > { %v665_v8 = vmul.f32 1.442695, %v664_v7 }
 0x40b   : > { %1180 = vpow2.f32 %v665_v8  ;;  %v676_v8 = vld [vmem:[#allocation4 + $0x10] sm:$0xff] }
 0x40d   : > { %v1179_v9 = vpop.eup %1178 }
 0x40e   : > { %v797_v10 = vpop.permute.xlu1 %796  ;;  %v534_v11 = vsel %vm322_vm0, %v1179_v9, 0.0  ;;  %v547_v20 = vpack.c.bf16 %v1179_v9, %v1179_v9 }
 0x40f   : > { %v799_v12 = vsub.f32 %v779_v48, %v797_v10  ;;  %535 = vadd.xlane.f32.xlu0 %v534_v11 }
 0x411   : > { %v800_v14 = vmul.f32 1.442695, %v799_v12 }
 0x412   : > { %v550_v17 = vpop.permute.xlu1 %549 }
 0x413   : > { %1182 = vpow2.f32 %v800_v14  ;;  %v555_v18 = vsel %vm415_vm3, %v550_v17, 0 }
 0x414   : > { %1111 = vmatpush3.bf16.msra.mxu0 %v555_v18  ;;  %1184 = vpow2.f32 %v521_v24  ;;  %v811_v18 = vld [vmem:[#allocation4 + $0x18] sm:$0xff] }
 0x415   : > { %v1181_v19 = vpop.eup %1180  ;;  %1122 = vmatprep.subr.bf16.mxu0 %v1224_v0  ;;  %1186 = vpow2.f32 %v792_v27 }
 0x416   : > { %v670_v21 = vsel %vm322_vm0, %v1181_v19, 0.0  ;;  %v685_v22 = vpop.permute.xlu1 %684  ;;  %v683_v28 = vpack.c.bf16 %v1181_v19, %v1181_v19  ;;  %1188 = vpow2.f32 %v386_v32 }
 0x417   : > { %1113 = vmatmul.mubr.msk.bf16.vlgmr.msra.gmra.mrb[4].mxu0 %vm322_vm0, %v547_v20  ;;  %671 = vadd.xlane.f32.xlu1 %v670_v21  ;;  %v690_v23 = vsel %vm415_vm3, %v685_v22, 0  ;;  %1190 = vpow2.f32 %v657_v35 }
 0x418   : > { %1123 = vmatpush3.bf16.msra.mxu0 %v690_v23  ;;  %1124 = vmatprep.mubr.msk.bf16.mxu0 %vm1225_vm1, %v1224_v0 }
 0x419   : > { %1134 = vmatprep.subr.bf16.mxu0 %v1224_v0 }
 0x41a   : > { %v820_v25 = vpop.permute.xlu1 %819 }
 0x41b   : > { %v825_v29 = vsel %vm415_vm3, %v820_v25, 0 }
 0x41d   : > { %v1183_v26 = vpop.eup %1182 }
 0x41e   : > { %v805_v30 = vsel %vm322_vm0, %v1183_v26, 0.0  ;;  %v818_v31 = vpack.c.bf16 %v1183_v26, %v1183_v26  ;;  %v1185_v33 = vpop.eup %1184 }
 0x41f   : > { %806 = vadd.xlane.f32.xlu0 %v805_v30  ;;  %1125 = vmatmul.mubr.msk.bf16.vlgmr.msra.gmra.mrb[8].mxu0 %vm322_vm0, %v683_v28  ;;  %v1187_v36 = vpop.eup %1186  ;;  %v533_v42 = vmul.f32 %v1185_v33, %v532_v16 }
 0x420   : > { %1135 = vmatpush3.bf16.msra.mxu0 %v825_v29  ;;  %1136 = vmatprep.mubr.msk.bf16.mxu0 %vm1225_vm1, %v1224_v0  ;;  %v1189_v37 = vpop.eup %1188  ;;  %v396_v0 = vld [vmem:[#allocation3] sm:$0xff]  ;;  %v804_v51 = vmul.f32 %v1187_v36, %v803_v50 }
 0x421   : > { %v1191_v38 = vpop.eup %1190  ;;  %v397_v39 = vmul.f32 %v1189_v37, %v396_v0 }
 0x422   : > { %v669_v46 = vmul.f32 %v1191_v38, %v668_v45 }
 0x427   : > { %1137 = vmatmul.mubr.msk.bf16.vlgmr.msra.gmra.mrb[12].mxu0 %vm322_vm0, %v818_v31 }
 0x428   : > { %543 = vperm.xlu1 %1175, %v1185_v33  }
 0x42c   : > { %814 = vperm.xlu1 %1175, %v1187_v36  }
 0x435   : > { %407 = vperm.xlu0 %1174, %v1189_v37  }
 0x439   : > { %679 = vperm.xlu0 %1174, %v1191_v38  }
 0x44c   : > { %v400_v40 = vpop.xlane.xlu1 %399 }
 0x44d   : > { %v401_v41 = vadd.f32 %v400_v40, %v397_v39 }
 0x44f   : > { %403 = vst.msk [vmem:[#allocation3] sm:$0xff] %vm313_vm2, %v401_v41 }
 0x456   : > { %v873_v13 = vld [vmem:[#allocation3] sm:$0xff] }
 0x457   : > { %1192 = vrcp.f32 %v873_v13 }
 0x461   : > { %v1193_v15 = vpop.eup %1192 }
 0x462   : > { %878 = vperm.xlu1 %1175, %v1193_v15  }
 0x49c   : > { %v536_v43 = vpop.xlane.xlu0 %535 }
 0x49d   : > { %v537_v44 = vadd.f32 %v536_v43, %v533_v42 }
 0x49f   : > { %538 = vst.msk [vmem:[#allocation3 + $0x8] sm:$0xff] %vm313_vm2, %v537_v44 }
 0x4a4   : > { %v672_v47 = vpop.xlane.xlu1 %671 }
 0x4a5   : > { %v673_v48 = vadd.f32 %v672_v47, %v669_v46 }
 0x4a6   : > { %v882_v49 = vld [vmem:[#allocation3 + $0x8] sm:$0xff] }
 0x4a7   : > { %674 = vst.msk [vmem:[#allocation3 + $0x10] sm:$0xff] %vm313_vm2, %v673_v48  ;;  %1194 = vrcp.f32 %v882_v49 }
 0x4a8   : > { %v544_v1 = vpop.permute.xlu1 %543 }
 0x4a9   : > { %v546_v2 = vmul.f32 %v544_v1, %v540_v63 }
 0x4ac   : > { %v807_v52 = vpop.xlane.xlu0 %806  ;;  %v815_v19 = vpop.permute.xlu1 %814 }
 0x4ad   : > { %v808_v53 = vadd.f32 %v807_v52, %v804_v51  ;;  %v817_v20 = vmul.f32 %v815_v19, %v811_v18 }
 0x4ae   : > { %v891_v54 = vld [vmem:[#allocation3 + $0x10] sm:$0xff] }
 0x4af   : > { %809 = vst.msk [vmem:[#allocation3 + $0x18] sm:$0xff] %vm313_vm2, %v808_v53  ;;  %1196 = vrcp.f32 %v891_v54 }
 0x4b1   : > { %v1195_v55 = vpop.eup %1194 }
 0x4b2   : > { %887 = vperm.xlu0 %1174, %v1195_v55  }
 0x4b4   : > { %v408_v57 = vpop.permute.xlu0 %407 }
 0x4b5   : > { %v410_v58 = vmul.f32 %v408_v57, %v404_v56 }
 0x4b6   : > { %v900_v59 = vld [vmem:[#allocation3 + $0x18] sm:$0xff] }
 0x4b7   : > { %v459_v60 = vadd.f32 %v1358_v34, %v410_v58  ;;  %1198 = vrcp.f32 %v900_v59 }
 0x4b8   : > { %v680_v9 = vpop.permute.xlu0 %679 }
 0x4b9   : > { %v1197_v61 = vpop.eup %1196  ;;  %460 = vst.msk [vmem:[#allocation4] sm:$0xff] %vm322_vm0, %v459_v60  ;;  %v682_v34 = vmul.f32 %v680_v9, %v676_v8 }
 0x4ba   : > { %896 = vperm.xlu1 %1175, %v1197_v61  }
 0x4c0   : > { %v875_v37 = vld [vmem:[#allocation4] sm:$0xff] }
 0x4c1   : > { %v1199_v62 = vpop.eup %1198 }
 0x4c2   : > { %905 = vperm.xlu0 %1174, %v1199_v62  }
 0x4e1   : > { %v879_v29 = vpop.permute.xlu1 %878 }
 0x4e2   : > { %v881_v0 = vmul.f32 %v879_v29, %v875_v37 }
 0x4ea   : > { %v591_v3 = vpop.f32.mrb[4].mxu0 }
 0x4eb   : > { %v597_v4 = vadd.f32 %v591_v3, %v546_v2  ;;  %v1114_v5 = vpop.f32.mrb[5].mxu0 }
 0x4ec   : > { %v594_v6 = vpop.f32.mrb[6].mxu0 }
 0x4ed   : > { %598 = vst.msk [vmem:[#allocation4 + $0x8] sm:$0xff] %vm322_vm0, %v597_v4  ;;  %v1115_v7 = vpop.f32.mrb[7].mxu0 }
 0x4f2   : > { %v726_v10 = vpop.f32.mrb[8].mxu0 }
 0x4f3   : > { %v732_v11 = vadd.f32 %v726_v10, %v682_v34  ;;  %v1126_v12 = vpop.f32.mrb[9].mxu0 }
 0x4f4   : > { %v729_v14 = vpop.f32.mrb[10].mxu0  ;;  %v884_v27 = vld [vmem:[#allocation4 + $0x8] sm:$0xff] }
 0x4f5   : > { %733 = vst.msk [vmem:[#allocation4 + $0x10] sm:$0xff] %vm322_vm0, %v732_v11  ;;  %v1127_v17 = vpop.f32.mrb[11].mxu0 }
 0x4fa   : > { %v861_v21 = vpop.f32.mrb[12].mxu0 }
 0x4fb   : > { %v867_v22 = vadd.f32 %v861_v21, %v817_v20  ;;  %v1138_v23 = vpop.f32.mrb[13].mxu0 }
 0x4fc   : > { %v864_v24 = vpop.f32.mrb[14].mxu0  ;;  %v893_v31 = vld [vmem:[#allocation4 + $0x10] sm:$0xff] }
 0x4fd   : > { %868 = vst.msk [vmem:[#allocation4 + $0x18] sm:$0xff] %vm322_vm0, %v867_v22  ;;  %v1139_v25 = vpop.f32.mrb[15].mxu0 }
 0x504   : > { %v902_v35 = vld [vmem:[#allocation4 + $0x18] sm:$0xff] }
 0x531   : > { %v888_v26 = vpop.permute.xlu0 %887 }
 0x532   : > { %v890_v28 = vmul.f32 %v888_v26, %v884_v27 }
 0x534   : > { %910 = vrot.lane.b32.xlu1 %v890_v28, %s1231_s29 }
 0x539   : > { %v897_v30 = vpop.permute.xlu1 %896 }
 0x53a   : > { %v899_v32 = vmul.f32 %v897_v30, %v893_v31 }
 0x53c   : > { %914 = vrot.lane.b32.xlu0 %v899_v32, %s1232_s30 }
 0x541   : > { %v906_v33 = vpop.permute.xlu0 %905 }
 0x542   : > { %v908_v36 = vmul.f32 %v906_v33, %v902_v35 }
 0x544   : > { %918 = vrot.lane.b32.xlu1 %v908_v36, %s1233_s4 }
 0x5a6   : > { %v911_v38 = vpop.permute.xlu1 %910 }
 0x5a7   : > { %v921_v40 = vsel %vm322_vm0, %v881_v0, %v911_v38 }
 0x5ae   : > { %v915_v39 = vpop.permute.xlu0 %914 }
 0x5af   : > { %v923_v41 = vsel %vm922_vm4, %v921_v40, %v915_v39 }
 0x5b6   : > { %v919_v13 = vpop.permute.xlu1 %918 }
 0x5b7   : > { %v925_v15 = vsel %vm924_vm5, %v923_v41, %v919_v13 }
 0x5b8   : > { %927 = vst.msk [vmem:[%s307_s7] sm:$0xff] %vm926_vm6, %v925_v15 }
 0x5b9 PF: > { %s13_s14 = sadd.s32 1, %s1222_s14   ;;  %s1428_s12 = smov %s1218_s13 }
 0x5ba   : > { %p10_p5 = scmp.ge.s32.totalorder %s13_s14, 4   ;;  %s1429_s13 = smov %s1431_s15 }
 0x5bc   :  { %12 = sbr.rel (!%p10_p5) target bundleno = 2 (0x2), region = 85 }

// kernel: audio_encoder.17
= control target key start
LH: loop header
LB: loop body
LE: loop exit
PB: predicated region body
PF: predicated region fallthrough
CT: control target
= control target key end

     0   :  { %vm22_vm0 = vcmask 261120   ;;  %v138_v0 = vmov 0.0   ;;  %vm139_vm1 = vmmov 0   ;;  %s199_s1 = inlined_call_operand.vmem [shape: bf16[32,32], index: 1, kind: input, shape index: {}]   ;;  %s200_s0 = inlined_call_operand.vmem [shape: f32[16,32], index: 0, kind: input, shape index: {}]   ;;  %s201_s2 = inlined_call_operand.vmem [shape: f32[1,32], index: 2, kind: input, shape index: {}]   ;;  %s202_s3 = inlined_call_operand.vmem [shape: f32[16,32], index: 3, kind: input, shape index: {}]   ;;  %s203_s4 = inlined_call_operand.vmem [shape: f32[16,32], index: 4, kind: output, shape index: {}]  }
   0x1   :  { %126 = vmatprep.subr.bf16.mxu0 %v138_v0  ;;  %v136_v1 = vld [vmem:[%s199_s1] sm:$0xff]   ;;  %130 = vmatprep.mubr.msk.bf16.mxu0 %vm139_vm1, %v138_v0  ;;  %23 = vst.msk [vmem:[#allocation2] sm:$0xff] %vm22_vm0, %v138_v0  ;;  %24 = vst.msk [vmem:[#allocation2 + $0x8] sm:$0xff] %vm22_vm0, %v138_v0  ;;  %v137_v2 = vld [vmem:[%s199_s1 + $0x8] sm:$0xff]  }
   0x2   :  { %127 = vmatpush3.bf16.msra.mxu0 %v136_v1  ;;  %v27_v3 = vld [vmem:[%s200_s0] sm:$0xff]  ;;  %v28_v4 = vld [vmem:[%s200_s0 + $0x8] sm:$0xff] }
   0x3   :  { %128 = vmatprep.subr.bf16.mxu0 %v138_v0  ;;  %v29_v5 = vpack.c.bf16 %v28_v4, %v27_v3  ;;  %v122_v14 = vld [vmem:[%s201_s2] ss:$0 sm:$0xff]  ;;  %v110_v19 = vld [vmem:[%s202_s3 + $0x8] sm:$0xff] }
   0x4   :  { %v109_v16 = vld [vmem:[%s202_s3] sm:$0xff] }
   0x6   :  { %129 = vmatpush3.bf16.msra.mxu0 %v137_v2 }
   0x8   :  { %v25_v6 = vld [vmem:[#allocation2] sm:$0xff]  ;;  %v26_v8 = vld [vmem:[#allocation2 + $0x8] sm:$0xff] }
   0x9   :  { %131 = vmatmul.mubr.msk.bf16.vlgmr.msra.gmra.mrb[0].mxu0 %vm22_vm0, %v29_v5 }
  0xdc   :  { %v84_v7 = vpop.f32.mrb[0].mxu0 }
  0xdd   :  { %v91_v9 = vadd.f32 %v84_v7, %v25_v6  ;;  %v132_v10 = vpop.f32.mrb[1].mxu0 }
  0xde   :  { %v87_v11 = vpop.f32.mrb[2].mxu0 }
  0xdf   :  { %93 = vst.msk [vmem:[#allocation2] sm:$0xff] %vm22_vm0, %v91_v9  ;;  %v92_v12 = vadd.f32 %v87_v11, %v26_v8  ;;  %v133_v13 = vpop.f32.mrb[3].mxu0 }
  0xe1   :  { %94 = vst.msk [vmem:[#allocation2 + $0x8] sm:$0xff] %vm22_vm0, %v92_v12 }
  0xe6   :  { %v98_v15 = vld [vmem:[#allocation2] sm:$0xff] }
  0xe7   :  { %v107_v17 = vadd.f32 %v122_v14, %v98_v15 }
  0xe8   :  { %v99_v18 = vld [vmem:[#allocation2 + $0x8] sm:$0xff] }
  0xe9   :  { %v111_v20 = vadd.f32 %v109_v16, %v107_v17  ;;  %v108_v21 = vadd.f32 %v122_v14, %v99_v18 }
  0xeb   :  { %113 = vst.msk [vmem:[%s203_s4] sm:$0xff] %vm22_vm0, %v111_v20  ;;  %v112_v22 = vadd.f32 %v110_v19, %v108_v21 }
  0xed   :  { %114 = vst.msk [vmem:[%s203_s4 + $0x8] sm:$0xff] %vm22_vm0, %v112_v22 }

// kernel: audio_encoder.19
= control target key start
LH: loop header
LB: loop body
LE: loop exit
PB: predicated region body
PF: predicated region fallthrough
CT: control target
= control target key end

     0   :  { %vm22_vm0 = vcmask 261120   ;;  %v212_v0 = vmov 0.0   ;;  %vm213_vm1 = vmmov 0   ;;  %s290_s1 = inlined_call_operand.vmem [shape: bf16[128,32], index: 1, kind: input, shape index: {}]   ;;  %s291_s0 = inlined_call_operand.vmem [shape: f32[16,128], index: 0, kind: input, shape index: {}]   ;;  %s292_s2 = inlined_call_operand.vmem [shape: f32[1,32], index: 2, kind: input, shape index: {}]   ;;  %s293_s3 = inlined_call_operand.vmem [shape: f32[16,32], index: 3, kind: input, shape index: {}]   ;;  %s294_s4 = inlined_call_operand.vmem [shape: f32[16,32], index: 4, kind: output, shape index: {}]  }
   0x1   :  { %182 = vmatprep.subr.bf16.mxu0 %v212_v0  ;;  %v204_v1 = vld [vmem:[%s290_s1] sm:$0xff]   ;;  %198 = vmatprep.mubr.msk.bf16.mxu0 %vm213_vm1, %v212_v0  ;;  %23 = vst.msk [vmem:[#allocation2] sm:$0xff] %vm22_vm0, %v212_v0  ;;  %24 = vst.msk [vmem:[#allocation2 + $0x8] sm:$0xff] %vm22_vm0, %v212_v0  ;;  %v205_v2 = vld [vmem:[%s290_s1 + $0x8] sm:$0xff]  }
   0x2   :  { %183 = vmatpush3.bf16.msra.mxu0 %v204_v1  ;;  %v206_v3 = vld [vmem:[%s290_s1 + $0x10] sm:$0xff]   ;;  %v207_v4 = vld [vmem:[%s290_s1 + $0x18] sm:$0xff]   ;;  %v208_v5 = vld [vmem:[%s290_s1 + $0x20] sm:$0xff]  }
   0x3   :  { %184 = vmatprep.subr.bf16.mxu0 %v212_v0  ;;  %v209_v6 = vld [vmem:[%s290_s1 + $0x28] sm:$0xff]   ;;  %v210_v7 = vld [vmem:[%s290_s1 + $0x30] sm:$0xff]   ;;  %v211_v8 = vld [vmem:[%s290_s1 + $0x38] sm:$0xff]  }
   0x4   :  { %v27_v9 = vld [vmem:[%s291_s0] sm:$0xff]  ;;  %v28_v10 = vld [vmem:[%s291_s0 + $0x8] sm:$0xff] }
   0x5   :  { %v29_v11 = vpack.c.bf16 %v28_v10, %v27_v9  ;;  %v172_v20 = vld [vmem:[%s292_s2] ss:$0 sm:$0xff]  ;;  %v155_v24 = vld [vmem:[%s293_s3 + $0x8] sm:$0xff] }
   0x6   :  { %185 = vmatpush3.bf16.msra.mxu0 %v205_v2  ;;  %v154_v22 = vld [vmem:[%s293_s3] sm:$0xff] }
   0x7   :  { %186 = vmatprep.subr.bf16.mxu0 %v212_v0 }
   0x8   :  { %v25_v12 = vld [vmem:[#allocation2] sm:$0xff]  ;;  %v26_v14 = vld [vmem:[#allocation2 + $0x8] sm:$0xff] }
   0xa   :  { %187 = vmatpush3.bf16.msra.mxu0 %v206_v3 }
   0xb   :  { %188 = vmatprep.subr.bf16.mxu0 %v212_v0 }
   0xe   :  { %189 = vmatpush3.bf16.msra.mxu0 %v207_v4 }
   0xf   :  { %190 = vmatprep.subr.bf16.mxu0 %v212_v0 }
  0x12   :  { %191 = vmatpush3.bf16.msra.mxu0 %v208_v5 }
  0x13   :  { %192 = vmatprep.subr.bf16.mxu0 %v212_v0 }
  0x16   :  { %193 = vmatpush3.bf16.msra.mxu0 %v209_v6 }
  0x17   :  { %194 = vmatprep.subr.bf16.mxu0 %v212_v0 }
  0x1a   :  { %195 = vmatpush3.bf16.msra.mxu0 %v210_v7 }
  0x1b   :  { %196 = vmatprep.subr.bf16.mxu0 %v212_v0 }
  0x1e   :  { %197 = vmatpush3.bf16.msra.mxu0 %v211_v8 }
  0x21   :  { %199 = vmatmul.mubr.bf16.vlgmr.msra.gmra.mrb[0].mxu0 %v29_v11 }
  0xf4   :  { %v128_v13 = vpop.f32.mrb[0].mxu0 }
  0xf5   :  { %v135_v15 = vadd.f32 %v128_v13, %v25_v12  ;;  %v200_v16 = vpop.f32.mrb[1].mxu0 }
  0xf6   :  { %v131_v17 = vpop.f32.mrb[2].mxu0 }
  0xf7   :  { %138 = vst.msk [vmem:[#allocation2] sm:$0xff] %vm22_vm0, %v135_v15  ;;  %v136_v18 = vadd.f32 %v131_v17, %v26_v14  ;;  %v201_v19 = vpop.f32.mrb[3].mxu0 }
  0xf9   :  { %139 = vst.msk [vmem:[#allocation2 + $0x8] sm:$0xff] %vm22_vm0, %v136_v18 }
  0xfe   :  { %v143_v21 = vld [vmem:[#allocation2] sm:$0xff] }
  0xff   :  { %v152_v23 = vadd.f32 %v172_v20, %v143_v21 }
 0x100   :  { %v144_v25 = vld [vmem:[#allocation2 + $0x8] sm:$0xff] }
 0x101   :  { %v156_v26 = vadd.f32 %v154_v22, %v152_v23  ;;  %v153_v27 = vadd.f32 %v172_v20, %v144_v25 }
 0x103   :  { %158 = vst.msk [vmem:[%s294_s4] sm:$0xff] %vm22_vm0, %v156_v26  ;;  %v157_v28 = vadd.f32 %v155_v24, %v153_v27 }
 0x105   :  { %159 = vst.msk [vmem:[%s294_s4 + $0x8] sm:$0xff] %vm22_vm0, %v157_v28 }

// kernel: audio_encoder.25
= control target key start
LH: loop header
LB: loop body
LE: loop exit
PB: predicated region body
PF: predicated region fallthrough
CT: control target
= control target key end

     0   :  { %vm19_vm0 = vcmask 261120   ;;  %s167_s0 = inlined_call_operand.vmem [shape: f32[16,32], index: 0, kind: input, shape index: {}]   ;;  %s168_s1 = inlined_call_operand.vmem [shape: f32[1,32], index: 1, kind: input, shape index: {}]   ;;  %s169_s2 = inlined_call_operand.vmem [shape: f32[1,32], index: 2, kind: input, shape index: {}]   ;;  %s170_s3 = inlined_call_operand.hbm [shape: f32[16,32], index: 3, kind: output, shape index: {}]  }
   0x1   :  { %v15_v0 = vld [vmem:[%s167_s0] sm:$0xff]  ;;  %v16_v1 = vld [vmem:[%s167_s0 + $0x8] sm:$0xff] }
   0x2   :  { %8 = vsyncpa [#allocation3], 0  ;;  %v20_v2 = vsel %vm19_vm0, %v15_v0, 0.0  ;;  %v23_v3 = vsel %vm19_vm0, %v16_v1, 0.0  ;;  %v81_v21 = vld [vmem:[%s168_s1] ss:$0 sm:$0xff] }
   0x3   :  { %21 = vadd.xlane.f32.xlu0 %v20_v2  ;;  %v82_v23 = vld [vmem:[%s169_s2] ss:$0 sm:$0xff]  ;;  %s114_s19 = smov [#allocation2]  }
   0x4   :  { %s70_s20 = sshll.u32 %s114_s19, 4  ;;  %s71_s20 = int_to_ptr.vmem [resolvable:$true] %s70_s20 }
   0x5   :  { %s90_s21 = scalar_lea.vmem %s71_s20, 256  ;;  %p95_p1 = scmp.lt.s32.totalorder %s71_s20, %s71_s20 }
   0x6   :  { %p91_p0 = scmp.ne.s32.totalorder %s71_s20, %s90_s21  ;;  %p96_p2 = scmp.lt.s32.totalorder %s90_s21, %s90_s21 }
   0x7   :  { %24 = vadd.xlane.f32.xlu0 %v23_v3 }
   0x8   :  { %p97_p3 = por %p96_p2, %p95_p1 }
   0xa   :  { %p98_p4 = pnand %p97_p3, %p91_p0 }
  0x90   :  { %v22_v4 = vpop.xlane.xlu0 %21 }
  0x91   :  { %v27_v5 = vmul.f32 0.03125, %v22_v4 }
  0x93   :  { %v29_v6 = vsub.f32 %v15_v0, %v27_v5 }
  0x94   :  { %v25_v7 = vpop.xlane.xlu0 %24 }
  0x95   :  { %v28_v8 = vmul.f32 0.03125, %v25_v7  ;;  %v31_v9 = vmul.f32 %v29_v6, %v29_v6 }
  0x97   :  { %v30_v10 = vsub.f32 %v16_v1, %v28_v8  ;;  %v33_v11 = vsel %vm19_vm0, %v31_v9, 0.0 }
  0x98   :  { %34 = vadd.xlane.f32.xlu1 %v33_v11 }
  0x99   :  { %v32_v12 = vmul.f32 %v30_v10, %v30_v10 }
  0x9b   :  { %v36_v13 = vsel %vm19_vm0, %v32_v12, 0.0 }
  0x9c   :  { %37 = vadd.xlane.f32.xlu1 %v36_v13 }
 0x125   :  { %v35_v14 = vpop.xlane.xlu1 %34 }
 0x126   :  { %v39_v15 = vmul.f32 0.03125, %v35_v14 }
 0x128   :  { %v41_v16 = vadd.f32 1e-05, %v39_v15 }
 0x129   :  { %v38_v17 = vpop.xlane.xlu1 %37 }
 0x12a   :  { %86 = vrsqrt.f32 %v41_v16  ;;  %v40_v18 = vmul.f32 0.03125, %v38_v17 }
 0x12c   :  { %v42_v19 = vadd.f32 1e-05, %v40_v18 }
 0x12e   :  { %88 = vrsqrt.f32 %v42_v19 }
 0x134   :  { %v87_v20 = vpop.eup %86 }
 0x135   :  { %v45_v22 = vmul.f32 %v87_v20, %v29_v6 }
 0x137   :  { %v53_v24 = vmul.f32 %v81_v21, %v45_v22 }
 0x138   :  { %v89_v25 = vpop.eup %88 }
 0x139   :  { %v46_v26 = vmul.f32 %v89_v25, %v30_v10  ;;  %v61_v27 = vadd.f32 %v82_v23, %v53_v24 }
 0x13b   :  { %v54_v28 = vmul.f32 %v81_v21, %v46_v26  ;;  %63 = vst.msk [vmem:[#allocation2] sm:$0xff] %vm19_vm0, %v61_v27 }
 0x13d   :  { %v62_v29 = vadd.f32 %v82_v23, %v54_v28 }
 0x13f   :  { %64 = vst.msk [vmem:[#allocation2 + $0x8] sm:$0xff] %vm19_vm0, %v62_v29 }
 0x140   :  { %101 = shalt.err (!%p98_p4)
}
 0x141   :  { %s102_s22 = scalar_lea.hbm %s170_s3, 256 }
 0x142   :  { %p103_p5 = scmp.ne.s32.totalorder %s170_s3, %s102_s22  ;;  %p106_p6 = scmp.lt.u32.totalorder %s102_s22, %s170_s3 }
 0x144   :  { %p108_p7 = pnand %p106_p6, %p103_p5 }
 0x146   :  { %111 = shalt.err (!%p108_p7)
}
 0x147   :  { %s115_s27 = smov 128   ;;  %s116_s28 = smov 8  }
 0x148   :  { %76 = dma.vmem_to_hbm [thread:$0]  %s71_s20, 256, %s170_s3, [#allocation3], %s115_s27, %s115_s27, %s116_s28  }
 0x149   :  { %112 = dma.done.wait [#allocation3], 256  }
 0x14a   :  { %113 = vsyncadd [#allocation3], 4294967040 }
 0x14b   :  { %80 = vsyncpa [#allocation3], 1 }

// kernel: audio_encoder.18
= control target key start
LH: loop header
LB: loop body
LE: loop exit
PB: predicated region body
PF: predicated region fallthrough
CT: control target
= control target key end

     0   :  { %vm25_vm0 = vcmask 261120   ;;  %v231_v15 = vmov 0.0   ;;  %vm232_vm1 = vmmov 0   ;;  %s296_s0 = inlined_call_operand.vmem [shape: f32[16,32], index: 0, kind: input, shape index: {}]   ;;  %s297_s3 = inlined_call_operand.vmem [shape: bf16[32,128], index: 3, kind: input, shape index: {}]   ;;  %s298_s1 = inlined_call_operand.vmem [shape: f32[1,32], index: 1, kind: input, shape index: {}]   ;;  %s299_s2 = inlined_call_operand.vmem [shape: f32[1,32], index: 2, kind: input, shape index: {}]   ;;  %s300_s4 = inlined_call_operand.vmem [shape: f32[1,128], index: 4, kind: input, shape index: {}]   ;;  %s301_s5 = inlined_call_operand.vmem [shape: f32[16,128], index: 5, kind: output, shape index: {}]  }
   0x1   :  { %v21_v0 = vld [vmem:[%s296_s0] sm:$0xff]  ;;  %v22_v1 = vld [vmem:[%s296_s0 + $0x8] sm:$0xff]  ;;  %206 = vmatprep.subr.bf16.mxu0 %v231_v15  ;;  %210 = vmatprep.mubr.msk.bf16.mxu0 %vm232_vm1, %v231_v15 }
   0x2   :  { %v26_v2 = vsel %vm25_vm0, %v21_v0, 0.0  ;;  %v29_v3 = vsel %vm25_vm0, %v22_v1, 0.0  ;;  %v217_v14 = vld [vmem:[%s297_s3] sm:$0xff]   ;;  %v218_v16 = vld [vmem:[%s297_s3 + $0x8] sm:$0xff]  }
   0x3   :  { %27 = vadd.xlane.f32.xlu0 %v26_v2  ;;  %207 = vmatpush3.bf16.msra.mxu0 %v217_v14  ;;  %v197_v25 = vld [vmem:[%s298_s1] ss:$0 sm:$0xff] }
   0x4   :  { %208 = vmatprep.subr.bf16.mxu0 %v231_v15  ;;  %v198_v29 = vld [vmem:[%s299_s2] ss:$0 sm:$0xff]  ;;  %v233_v15 = vmov -1.0  }
   0x5   :  { %v199_v34 = vld [vmem:[%s300_s4] ss:$0 sm:$0xff] }
   0x7   :  { %30 = vadd.xlane.f32.xlu0 %v29_v3  ;;  %209 = vmatpush3.bf16.msra.mxu0 %v218_v16 }
  0x90   :  { %v28_v4 = vpop.xlane.xlu0 %27 }
  0x91   :  { %v33_v5 = vmul.f32 0.03125, %v28_v4 }
  0x93   :  { %v35_v6 = vsub.f32 %v21_v0, %v33_v5 }
  0x94   :  { %v31_v7 = vpop.xlane.xlu0 %30 }
  0x95   :  { %v34_v8 = vmul.f32 0.03125, %v31_v7  ;;  %v37_v9 = vmul.f32 %v35_v6, %v35_v6 }
  0x97   :  { %v36_v10 = vsub.f32 %v22_v1, %v34_v8  ;;  %v39_v11 = vsel %vm25_vm0, %v37_v9, 0.0 }
  0x98   :  { %40 = vadd.xlane.f32.xlu1 %v39_v11 }
  0x99   :  { %v38_v12 = vmul.f32 %v36_v10, %v36_v10 }
  0x9b   :  { %v42_v13 = vsel %vm25_vm0, %v38_v12, 0.0 }
  0x9c   :  { %43 = vadd.xlane.f32.xlu1 %v42_v13 }
 0x125   :  { %v41_v17 = vpop.xlane.xlu1 %40 }
 0x126   :  { %v45_v18 = vmul.f32 0.03125, %v41_v17 }
 0x128   :  { %v47_v19 = vadd.f32 1e-05, %v45_v18 }
 0x129   :  { %v44_v20 = vpop.xlane.xlu1 %43 }
 0x12a   :  { %219 = vrsqrt.f32 %v47_v19  ;;  %v46_v21 = vmul.f32 0.03125, %v44_v20 }
 0x12c   :  { %v48_v22 = vadd.f32 1e-05, %v46_v21 }
 0x12e   :  { %221 = vrsqrt.f32 %v48_v22 }
 0x134   :  { %v220_v23 = vpop.eup %219 }
 0x135   :  { %v51_v24 = vmul.f32 %v220_v23, %v35_v6 }
 0x137   :  { %v59_v28 = vmul.f32 %v197_v25, %v51_v24 }
 0x138   :  { %v222_v26 = vpop.eup %221 }
 0x139   :  { %v52_v27 = vmul.f32 %v222_v26, %v36_v10  ;;  %v67_v31 = vadd.f32 %v198_v29, %v59_v28 }
 0x13b   :  { %v60_v30 = vmul.f32 %v197_v25, %v52_v27 }
 0x13d   :  { %v68_v32 = vadd.f32 %v198_v29, %v60_v30 }
 0x13f   :  { %v69_v33 = vpack.c.bf16 %v68_v32, %v67_v31 }
 0x141   :  { %211 = vmatmul.mubr.msk.bf16.vlgmr.msra.gmra.mrb[0].mxu0 %vm25_vm0, %v69_v33 }
 0x214   :  { %v130_v35 = vpop.f32.mrb[0].mxu0 }
 0x215   :  { %v131_v36 = vadd.f32 %v199_v34, %v130_v35  ;;  %v212_v37 = vpop.f32.mrb[1].mxu0 }
 0x216   :  { %v133_v38 = vpop.f32.mrb[2].mxu0 }
 0x217   :  { %v139_v39 = vmul.f32 0.70710677, %v131_v36  ;;  %v134_v40 = vadd.f32 %v199_v34, %v133_v38  ;;  %v213_v41 = vpop.f32.mrb[3].mxu0  ;;  %v137_v20 = vmul.f32 0.5, %v131_v36 }
 0x219   :  { %v145_v42 = vand.u32 2147483647, %v139_v39  ;;  %v140_v43 = vmul.f32 0.70710677, %v134_v40  ;;  %vm141_vm2 = vcmp.ge.f32.partialorder %v139_v39, 0.0  ;;  %v138_v25 = vmul.f32 0.5, %v134_v40 }
 0x21a   :  { %v143_v16 = vsel %vm141_vm2, 1.0, %v233_v15 }
 0x21b   :  { %v147_v44 = vmul.f32 0.3275911, %v145_v42  ;;  %v146_v45 = vand.u32 2147483647, %v140_v43  ;;  %v173_v49 = vsub.f32 0.0, %v145_v42  ;;  %vm142_vm3 = vcmp.ge.f32.partialorder %v140_v43, 0.0 }
 0x21c   :  { %v144_v22 = vsel %vm142_vm3, 1.0, %v233_v15 }
 0x21d   :  { %v149_v46 = vadd.f32 1.0, %v147_v44  ;;  %v148_v47 = vmul.f32 0.3275911, %v146_v45  ;;  %v174_v50 = vsub.f32 0.0, %v146_v45  ;;  %v175_v52 = vmul.f32 %v173_v49, %v145_v42 }
 0x21f   :  { %223 = vrcp.f32 %v149_v46  ;;  %v150_v48 = vadd.f32 1.0, %v148_v47  ;;  %v176_v56 = vmul.f32 %v174_v50, %v146_v45  ;;  %v177_v57 = vmul.f32 1.442695, %v175_v52 }
 0x221   :  { %225 = vrcp.f32 %v150_v48  ;;  %v179_v62 = vmul.f32 1.442695, %v176_v56 }
 0x222   :  { %227 = vpow2.f32 %v177_v57 }
 0x223   :  { %229 = vpow2.f32 %v179_v62 }
 0x229   :  { %v224_v51 = vpop.eup %223 }
 0x22a   :  { %v155_v53 = vmul.f32 1.0614054, %v224_v51 }
 0x22b   :  { %v226_v54 = vpop.eup %225 }
 0x22c   :  { %v157_v55 = vadd.f32 -1.4531521, %v155_v53  ;;  %v156_v58 = vmul.f32 1.0614054, %v226_v54  ;;  %v228_v9 = vpop.eup %227 }
 0x22d   :  { %v230_v13 = vpop.eup %229 }
 0x22e   :  { %v159_v59 = vmul.f32 %v224_v51, %v157_v55  ;;  %v158_v60 = vadd.f32 -1.4531521, %v156_v58 }
 0x230   :  { %v161_v61 = vadd.f32 1.4214138, %v159_v59  ;;  %v160_v63 = vmul.f32 %v226_v54, %v158_v60 }
 0x232   :  { %v163_v0 = vmul.f32 %v224_v51, %v161_v61  ;;  %v162_v1 = vadd.f32 1.4214138, %v160_v63 }
 0x234   :  { %v165_v2 = vadd.f32 -0.28449672, %v163_v0  ;;  %v164_v3 = vmul.f32 %v226_v54, %v162_v1 }
 0x236   :  { %v167_v4 = vmul.f32 %v224_v51, %v165_v2  ;;  %v166_v5 = vadd.f32 -0.28449672, %v164_v3 }
 0x238   :  { %v169_v6 = vadd.f32 0.2548296, %v167_v4  ;;  %v168_v7 = vmul.f32 %v226_v54, %v166_v5 }
 0x23a   :  { %v171_v8 = vmul.f32 %v224_v51, %v169_v6  ;;  %v170_v10 = vadd.f32 0.2548296, %v168_v7 }
 0x23c   :  { %v181_v11 = vmul.f32 %v228_v9, %v171_v8  ;;  %v172_v12 = vmul.f32 %v226_v54, %v170_v10 }
 0x23e   :  { %v183_v14 = vsub.f32 1.0, %v181_v11  ;;  %v182_v17 = vmul.f32 %v230_v13, %v172_v12 }
 0x240   :  { %v185_v18 = vmul.f32 %v183_v14, %v143_v16  ;;  %v184_v19 = vsub.f32 1.0, %v182_v17 }
 0x242   :  { %v187_v21 = vadd.f32 1.0, %v185_v18  ;;  %v186_v23 = vmul.f32 %v184_v19, %v144_v22 }
 0x244   :  { %v189_v24 = vmul.f32 %v187_v21, %v137_v20  ;;  %v188_v26 = vadd.f32 1.0, %v186_v23 }
 0x246   :  { %191 = vst [vmem:[%s301_s5] sm:$0xff] %v189_v24  ;;  %v190_v27 = vmul.f32 %v188_v26, %v138_v25 }
 0x248   :  { %192 = vst [vmem:[%s301_s5 + $0x8] sm:$0xff] %v190_v27 }

</bundles_post_ra>
